<compile_context>
chip_gen: v6e
topology: v6e:2x2x1
jax: 0.10.0
libtpu: 0.0.40
codegen_flags: <defaults>
</compile_context>

<pallas_src>
import functools
import math

import jax
import jax.numpy as jnp
import numpy as np
from jax import lax
from jax.experimental import pallas as pl
from jax.experimental.pallas import tpu as pltpu

HID = 128          # mlp hidden width 100, zero-padded to 128 (exact: pads contribute 0)
MLP_WIDTH = 100
NEG_SLOPE = 0.1    # LeakyReLU(negative_slope=0.1)


def _leaky(z):
    # For slope in (0, 1): max(z, slope*z) == leaky_relu(z); one VPU op instead of cmp+select.
    return jnp.maximum(z, NEG_SLOPE * z)


def _default_mlp_config():
    """Per-generation inner chunk width and elementwise dtype for the ValueLayer MLP."""
    kind = ""
    try:
        kind = jax.devices()[0].device_kind.lower()
    except Exception:
        pass
    if ("v6" in kind) or ("v7" in kind):
        # native bf16 VPU; 256 lanes fills the 256-wide MXU N sweep
        return 256, jnp.bfloat16
    # v5e & older (or unknown): no native bf16 VPU -> keep f32 elementwise, 128-lane chunks
    return 128, jnp.float32


# ----------------------------------------------------------------------------
# Kernel 1: ValueLayer MLP for all C bins, fused with values = t * mlp(t - bin_shift).
#   Input:  t (1, tm) per event tile.  Output: (C, tm) per-bin values (sublane-dense).
#   Inside: lane chunks of `chunk` (fori unroll=True) x bins (fori, bounded live ranges).
# ----------------------------------------------------------------------------
def value_mlp_kernel(t_ref, w1_ref, b1_ref, w2_ref, b2_ref, w3_ref, b3_ref, out_ref,
                     *, num_bins, chunk, inv_denom, compute_dtype):
    tm = t_ref.shape[1]
    n_chunks = tm // chunk

    # hoist weight loads / casts out of all loops
    w1f = w1_ref[...]                          # (HID, 1) f32
    b1f = b1_ref[...]                          # (HID, 1) f32
    w1c = w1f.astype(compute_dtype)
    w2 = w2_ref[...]                           # (HID, HID) bf16 (MXU operand)
    b2 = b2_ref[...].astype(compute_dtype)     # (HID, 1)
    w3 = w3_ref[...].astype(compute_dtype)     # (HID, 1) column (layer 3 runs on VPU + XLU)
    b3 = b3_ref[...]                           # (1, 1) f32

    def chunk_body(ci, carry):
        off = pl.multiple_of(ci * chunk, chunk)
        t_f32 = t_ref[:, pl.ds(off, chunk)]                     # (1, chunk) f32
        # layer 1 is affine in its input -> hoist w1*t across all bins
        w1t = w1c * t_f32.astype(compute_dtype)                 # (HID, chunk)

        def bin_body(c, acc):
            shift = c.astype(jnp.float32) * inv_denom           # scalar: i_bin / (C-1)
            b1c = (b1f - w1f * shift).astype(compute_dtype)     # (HID, 1) folded bias, tiny
            z1 = w1t + b1c                                      # (HID, chunk)
            h1 = _leaky(z1)
            # layer 2: MXU, bf16 operands / f32 accumulate
            z2 = jnp.dot(w2, h1.astype(jnp.bfloat16),
                         preferred_element_type=jnp.float32)    # (HID, chunk) f32
            z2 = z2.astype(compute_dtype) + b2
            h2 = _leaky(z2)
            # layer 3: VPU multiply + sublane (XLU) reduce, f32 accumulation; no MXU matvec
            out = jnp.sum((w3 * h2).astype(jnp.float32), axis=0, keepdims=True) + b3
            row = t_f32 * out                                   # (1, chunk) f32
            rowmask = lax.broadcasted_iota(jnp.int32, (num_bins, 1), 0) == c
            return jnp.where(rowmask, row, acc)                 # write row c of the (C, chunk) acc

        acc0 = jnp.zeros((num_bins, chunk), jnp.float32)
        acc = lax.fori_loop(0, num_bins, bin_body, acc0)
        out_ref[:, pl.ds(off, chunk)] = acc
        return carry

    lax.fori_loop(0, n_chunks, chunk_body, 0, unroll=True)


def value_mlp(t_row, padded_params, *, num_bins, tm, chunk, compute_dtype):
    """t_row: (1, Np) f32 normalized timestamps (0 for padded events).
    Returns (num_bins, Np) f32 per-bin values t * mlp(t - bin/(C-1))."""
    Np = t_row.shape[1]
    assert Np % tm == 0 and tm % chunk == 0
    w1c, b1c, w2p, b2c, w3c, b3 = padded_params
    inv_denom = 1.0 / float(max(num_bins - 1, 1))
    kernel = functools.partial(value_mlp_kernel, num_bins=num_bins, chunk=chunk,
                               inv_denom=inv_denom, compute_dtype=compute_dtype)
    return pl.pallas_call(
        kernel,
        out_shape=jax.ShapeDtypeStruct((num_bins, Np), jnp.float32),
        grid_spec=pltpu.PrefetchScalarGridSpec(
            num_scalar_prefetch=0,
            grid=(Np // tm,),
            in_specs=[
                pl.BlockSpec((1, tm), lambda i: (0, i)),      # t
                pl.BlockSpec((HID, 1), lambda i: (0, 0)),     # w1 (column, f32)
                pl.BlockSpec((HID, 1), lambda i: (0, 0)),     # b1 (column, f32)
                pl.BlockSpec((HID, HID), lambda i: (0, 0)),   # w2 (bf16)
                pl.BlockSpec((HID, 1), lambda i: (0, 0)),     # b2 (column, f32)
                pl.BlockSpec((HID, 1), lambda i: (0, 0)),     # w3 (column, f32)
                pl.BlockSpec((1, 1), lambda i: (0, 0)),       # b3
            ],
            out_specs=pl.BlockSpec((num_bins, tm), lambda i: (0, i)),
        ),
        compiler_params=pltpu.CompilerParams(dimension_semantics=("parallel",)),
    )(t_row, w1c, b1c, w2p, b2c, w3c, b3)


# ----------------------------------------------------------------------------
# Kernel 2: scatter-add (vox.put_(idx, values, accumulate=True)) via a bf16 one-hot
#   + (C, sub)@(sub, tv) MXU matmul with f32 accumulation.  Event axis tiled on an
#   "arbitrary" grid axis, output block resident across it (pl.when init at e==0);
#   inside the kernel the event tile is chunked into `sub`-event slices so the live
#   one-hot never exceeds (sub, tv).
# ----------------------------------------------------------------------------
def scatter_add_kernel(idx_ref, val_ref, vox_ref, *, tv, sub):
    e = pl.program_id(1)

    @pl.when(e == 0)
    def _():
        vox_ref[...] = jnp.zeros_like(vox_ref)

    col0 = pl.program_id(0) * tv
    lanes = lax.broadcasted_iota(jnp.int32, (1, tv), 1) + col0          # (1, tv)
    n_sub = idx_ref.shape[0] // sub

    def body(s, carry):
        off = pl.multiple_of(s * sub, sub)
        idx = idx_ref[pl.ds(off, sub), :]                               # (sub, 1) int32
        onehot = (idx == lanes).astype(jnp.bfloat16)                    # (sub, tv) bf16, exact 0/1
        v = val_ref[:, pl.ds(off, sub)].astype(jnp.bfloat16)            # (C, sub) bf16
        vox_ref[...] += jnp.dot(v, onehot, preferred_element_type=jnp.float32)
        return carry

    lax.fori_loop(0, n_sub, body, 0, unroll=True)
    # TODO(synk): at production sizes, bucket/sort events per voxel tile and feed per-tile
    # offsets via PrefetchScalarGridSpec(num_scalar_prefetch=1) so each output tile only
    # sees its own events (O(M+V) instead of O(M*V)).


def scatter_add(idx_col, vals, num_cols_padded, *, tv, tm_e, sub=128):
    """idx_col: (Np, 1) int32 column index (-1 for padding), vals: (C, Np) f32.
    Returns (C, num_cols_padded) f32 with vals scattered-added along columns."""
    Np = idx_col.shape[0]
    C = vals.shape[0]
    assert Np % tm_e == 0 and num_cols_padded % tv == 0 and tm_e % sub == 0
    kernel = functools.partial(scatter_add_kernel, tv=tv, sub=sub)
    return pl.pallas_call(
        kernel,
        out_shape=jax.ShapeDtypeStruct((C, num_cols_padded), jnp.float32),
        grid_spec=pltpu.PrefetchScalarGridSpec(
            num_scalar_prefetch=0,
            grid=(num_cols_padded // tv, Np // tm_e),
            in_specs=[
                pl.BlockSpec((tm_e, 1), lambda j, e: (e, 0)),   # event column indices
                pl.BlockSpec((C, tm_e), lambda j, e: (0, e)),   # per-bin values
            ],
            out_specs=pl.BlockSpec((C, tv), lambda j, e: (0, j)),
        ),
        compiler_params=pltpu.CompilerParams(
            dimension_semantics=("parallel", "arbitrary")),
    )(idx_col, vals)


# ----------------------------------------------------------------------------
# Parameter init (deterministic, torch.nn.Linear-like uniform init) + padding.
# (The original module would load trilinear_init.pth / run init_kernel training;
#  neither is available here, so we use the Linear-style random init.)
# ----------------------------------------------------------------------------
def init_value_layer_params(key, mlp_layers=(1, MLP_WIDTH, MLP_WIDTH, 1)):
    raw = []
    in_c = mlp_layers[0]
    for out_c in mlp_layers[1:]:
        key, kw, kb = jax.random.split(key, 3)
        bound = 1.0 / math.sqrt(in_c)
        W = jax.random.uniform(kw, (out_c, in_c), jnp.float32, -bound, bound)
        Bv = jax.random.uniform(kb, (out_c,), jnp.float32, -bound, bound)
        raw.append((W, Bv))
        in_c = out_c
    return raw


def pad_value_layer_params(raw):
    (W1, B1), (W2, B2), (W3, B3) = raw
    w1c = jnp.zeros((HID, 1), jnp.float32).at[:MLP_WIDTH, :].set(W1)
    b1c = jnp.zeros((HID, 1), jnp.float32).at[:MLP_WIDTH, 0].set(B1)
    # layer-2 weights go to the MXU in bf16 (zero padding is exact in bf16)
    w2p = (jnp.zeros((HID, HID), jnp.float32)
           .at[:MLP_WIDTH, :MLP_WIDTH].set(W2).astype(jnp.bfloat16))
    b2c = jnp.zeros((HID, 1), jnp.float32).at[:MLP_WIDTH, 0].set(B2)
    # layer-3 weight as a column: used with a VPU multiply + sublane reduce (no MXU matvec)
    w3c = jnp.zeros((HID, 1), jnp.float32).at[:MLP_WIDTH, 0].set(W3[0])
    b3 = jnp.reshape(B3, (1, 1)).astype(jnp.float32)
    return w1c, b1c, w2p, b2c, w3c, b3


# ----------------------------------------------------------------------------
# Glue: crop_and_resize_to_resolution (F.pad + nearest F.interpolate semantics)
# ----------------------------------------------------------------------------
def crop_and_resize_to_resolution(x, output_resolution=(256, 256)):
    B, Cc, H, W = x.shape
    if H > W:
        w = (H - W) // 2
        ratio = output_resolution[0] / H
        x = jnp.pad(x, ((0, 0), (0, 0), (0, 0), (w, w)))
        new_pad = (math.ceil(w * ratio), math.ceil(w * ratio), 0, 0)
    else:
        h = (W - H) // 2
        ratio = output_resolution[0] / W
        x = jnp.pad(x, ((0, 0), (0, 0), (h, h), (0, 0)))
        new_pad = (0, 0, math.ceil(h * ratio), math.ceil(h * ratio))
    Hp, Wp = x.shape[2], x.shape[3]
    oh, ow = output_resolution
    src_h = (jnp.arange(oh) * Hp // oh).astype(jnp.int32)   # PyTorch 'nearest' rule
    src_w = (jnp.arange(ow) * Wp // ow).astype(jnp.int32)
    x = x[:, :, src_h[:, None], src_w[None, :]]
    return x, new_pad


# ----------------------------------------------------------------------------
# QuantizationLayer.forward (jittable: B and dim are static Python values)
# ----------------------------------------------------------------------------
def quantization_layer_forward(events, padded_params, *, dim, B,
                               tm=512, tv=1024, mlp_chunk=None, compute_dtype=None,
                               output_resolution=(256, 256)):
    C, H, W = dim
    assert 2 * H * W * B < 2**31, "int32 voxel-column index would overflow; widen indices"
    if mlp_chunk is None or compute_dtype is None:
        d_chunk, d_dtype = _default_mlp_config()
        mlp_chunk = d_chunk if mlp_chunk is None else mlp_chunk
        compute_dtype = d_dtype if compute_dtype is None else compute_dtype

    ev = jnp.asarray(events, jnp.float32)
    N = ev.shape[0]

    x = ev[:, 0].astype(jnp.int32)
    y = ev[:, 1].astype(jnp.int32)
    t = ev[:, 2]
    p = ev[:, 3].astype(jnp.int32)
    b = ev[:, 4].astype(jnp.int32)

    # normalize timestamps per batch element (guard the degenerate all-zero case)
    t_max = jax.ops.segment_max(t, b, num_segments=B)
    t_max = jnp.where(t_max > 0, t_max, 1.0)
    t = t / t_max[b]

    # bin-independent voxel column index: c2 = b*2HW + p*HW + y*W + x  (int32, asserted above)
    c2 = x + W * y + W * H * p + 2 * W * H * b                           # (N,)

    # event tile size shared by both kernels; keep >=2 parallel steps when possible (v7x)
    tm_eff = tm
    while tm_eff > mlp_chunk and (N + tm_eff - 1) // tm_eff < 2:
        tm_eff //= 2

    n_pad = (-N) % tm_eff
    Np = N + n_pad
    # padded events: t = 0 -> value = t * mlp(...) = 0;  idx = -1 -> never matches a lane
    t_row = jnp.pad(t, (0, n_pad)).reshape(1, Np)
    c2 = jnp.pad(c2, (0, n_pad), constant_values=-1)

    # --- Pallas hot path (no (C, N) host materialization; (C, Np) flows kernel->kernel) ---
    vals = value_mlp(t_row, padded_params, num_bins=C, tm=tm_eff,
                     chunk=mlp_chunk, compute_dtype=compute_dtype)       # (C, Np) f32

    V2 = B * 2 * H * W
    tv_eff = tv
    while tv_eff > 128 and (V2 + tv_eff - 1) // tv_eff < 2:
        tv_eff //= 2                       # keep >=2 parallel voxel tiles (v7x dual-TC)
    V2_pad = ((V2 + tv_eff - 1) // tv_eff) * tv_eff
    vox2 = scatter_add(c2.reshape(Np, 1), vals, V2_pad,
                       tv=tv_eff, tm_e=tm_eff)                           # (C, V2_pad)

    # (C, B*2*H*W) -> (B, 2, C, H, W) -> (B, 2C, H, W)  (matches torch view + cat)
    vox = vox2[:, :V2].reshape(C, B, 2, H, W)
    vox = jnp.transpose(vox, (1, 2, 0, 3, 4))
    vox = jnp.concatenate([vox[:, 0], vox[:, 1]], axis=1)

    vox, new_pad = crop_and_resize_to_resolution(vox, output_resolution)
    # TODO(synk): self.unet (unet.UNet, external module) and the subsequent unpadding
    # are not translated because the UNet implementation is not provided.
    return vox, new_pad


# ----------------------------------------------------------------------------
# Pure-JAX reference (mirrors the PyTorch code, all f32) for a correctness check
# ----------------------------------------------------------------------------
def reference_forward(events, raw_params, dim, B, output_resolution=(256, 256)):
    C, H, W = dim
    ev = jnp.asarray(events, jnp.float32)
    x = ev[:, 0].astype(jnp.int32)
    y = ev[:, 1].astype(jnp.int32)
    t = ev[:, 2]
    p = ev[:, 3].astype(jnp.int32)
    b = ev[:, 4].astype(jnp.int32)
    t_max = jax.ops.segment_max(t, b, num_segments=B)
    t_max = jnp.where(t_max > 0, t_max, 1.0)
    t = t / t_max[b]
    (W1, B1), (W2, B2), (W3, B3) = raw_params

    def leaky(v):
        return jnp.where(v > 0, v, NEG_SLOPE * v)

    def mlp(v):
        h = v[..., None]
        h = leaky(h @ W1.T + B1)
        h = leaky(h @ W2.T + B2)
        h = h @ W3.T + B3
        return h[..., 0]

    V = 2 * C * H * W * B
    vox = jnp.zeros((V,), jnp.float32)
    idx_before = x + W * y + W * H * C * p + W * H * C * 2 * b
    denom = float(max(C - 1, 1))
    for i_bin in range(C):
        vals = t * mlp(t - i_bin / denom)
        vox = vox.at[idx_before + W * H * i_bin].add(vals)
    vox = vox.reshape(B, 2, C, H, W)
    vox = jnp.concatenate([vox[:, 0], vox[:, 1]], axis=1)
    vox, new_pad = crop_and_resize_to_resolution(vox, output_resolution)
    return vox, new_pad


# ----------------------------------------------------------------------------
if __name__ == "__main__":
    dim = (9, 16, 16)            # (C, H, W); 2*C = 18 matches the UNet input channels
    N, B = 600, 2

    key = jax.random.PRNGKey(0)
    kx, ky, kt, kp, kparams = jax.random.split(key, 5)
    x = jax.random.randint(kx, (N,), 0, dim[2]).astype(jnp.float32)
    y = jax.random.randint(ky, (N,), 0, dim[1]).astype(jnp.float32)
    t = jax.random.uniform(kt, (N,), jnp.float32, 0.01, 1.0)
    p = jax.random.randint(kp, (N,), 0, 2).astype(jnp.float32)
    b = jnp.concatenate([jnp.zeros(N // 2, jnp.float32),
                         jnp.ones(N - N // 2, jnp.float32)])
    events = jnp.stack([x, y, t, p, b], axis=1)          # (N, 5) = (x, y, t, p, b)

    raw_params = init_value_layer_params(kparams)
    padded_params = pad_value_layer_params(raw_params)

    # B is static -> the whole forward (glue + both Pallas calls) compiles into one program
    fwd = jax.jit(functools.partial(quantization_layer_forward, dim=dim, B=B))
    out, pad = fwd(events, padded_params)
    out = jax.block_until_ready(out)
    pad = tuple(int(v) for v in pad)

    ref, ref_pad = reference_forward(events, raw_params, dim, B)
    assert out.shape == (B, 2 * dim[0], 256, 256), out.shape
    assert pad == ref_pad
    # Layer-2 runs with bf16 MXU operands everywhere; on v6e/v7x the elementwise MLP math is
    # bf16 and scatter values are bf16 at the dot (all accumulation f32), so compare against
    # the pure-f32 reference with a correspondingly looser tolerance.
    np.testing.assert_allclose(np.asarray(out), np.asarray(ref), rtol=3e-2, atol=3e-2)

    print("KERNEL_OK")
</pallas_src>

<mosaic_0001>
module attributes {stable_mosaic.version = 11 : i64} {
  func.func private @main(%arg0: i32) attributes {dimension_semantics = [#tpu.dimension_semantics<core_parallel>], iteration_bounds = array<i64: 2>, tpu.core_type = #tpu.core_type<sc_scalar_subcore>, window_params = []} {
    return
  }
}

module attributes {stable_mosaic.version = 11 : i64} {
  func.func private @main(%arg0: i32) attributes {dimension_semantics = [#tpu.dimension_semantics<core_parallel>], iteration_bounds = array<i64: 2>, tpu.core_type = #tpu.core_type<sc_scalar_subcore>, window_params = []} {
    return
  }
}

module attributes {stable_mosaic.version = 11 : i64} {
  func.func @scatter_add_kernel(%arg0: i32, %arg1: i32, %arg2: memref<512x1xi32, #tpu.memory_space<vmem>>, %arg3: memref<9x512xf32, #tpu.memory_space<vmem>>, %arg4: memref<9x512xf32, #tpu.memory_space<vmem>>) attributes {dimension_semantics = [#tpu.dimension_semantics<parallel>, #tpu.dimension_semantics<arbitrary>], iteration_bounds = array<i64: 2, 2>, scalar_prefetch = 0 : i64, scratch_operands = 0 : i64, tpu.core_type = #tpu.core_type<tc>, window_params = [{transform_indices = @transform_0, window_bounds = array<i64: 512, 1>}, {transform_indices = @transform_1, window_bounds = array<i64: 9, 512>}, {transform_indices = @transform_2, window_bounds = array<i64: 9, 512>}]} {
    %c0_i32 = arith.constant 0 : i32
    %0 = arith.cmpi eq, %arg1, %c0_i32 : i32
    %1 = arith.extui %0 : i1 to i32
    %c0_i32_0 = arith.constant 0 : i32
    %2 = arith.cmpi ne, %1, %c0_i32_0 : i32
    scf.if %2 {
      %cst_31 = arith.constant 0.000000e+00 : f32
      %75 = vector.broadcast %cst_31 : f32 to vector<9x512xf32>
      %c0_32 = arith.constant 0 : index
      %c0_33 = arith.constant 0 : index
      %76 = vector.load %arg4[%c0_32, %c0_33] : memref<9x512xf32, #tpu.memory_space<vmem>>, vector<9x512xf32>
      tpu.vector_store %arg4[%c0_32, %c0_33], %75 {strides = array<i32>} : memref<9x512xf32, #tpu.memory_space<vmem>>, vector<9x512xf32>,
    } else {
    }
    %c512_i32 = arith.constant 512 : i32
    %3 = arith.muli %arg0, %c512_i32 : i32
    %4 = tpu.iota {dimensions = array<i32: 1>} : vector<1x512xi32>
    %5 = vector.broadcast %3 : i32 to vector<1x512xi32>
    %6 = arith.addi %4, %5 : vector<1x512xi32>
    %c0_i32_1 = arith.constant 0 : i32
    %c128_i32 = arith.constant 128 : i32
    %7 = arith.muli %c0_i32_1, %c128_i32 : i32
    %8 = tpu.assume_multiple %7, 128 : i32
    %9 = arith.index_cast %8 : i32 to index
    %c0 = arith.constant 0 : index
    %10 = vector.load %arg2[%9, %c0] : memref<512x1xi32, #tpu.memory_space<vmem>>, vector<128x1xi32>
    %11 = vector.broadcast %10 : vector<128x1xi32> to vector<128x512xi32>
    %12 = vector.broadcast %6 : vector<1x512xi32> to vector<128x512xi32>
    %13 = arith.cmpi eq, %11, %12 : vector<128x512xi32>
    %14 = arith.extui %13 : vector<128x512xi1> to vector<128x512xi32>
    %15 = arith.sitofp %14 : vector<128x512xi32> to vector<128x512xf32>
    %16 = arith.truncf %15 : vector<128x512xf32> to vector<128x512xbf16>
    %c0_2 = arith.constant 0 : index
    %17 = arith.index_cast %8 : i32 to index
    %18 = vector.load %arg3[%c0_2, %17] : memref<9x512xf32, #tpu.memory_space<vmem>>, vector<9x128xf32>
    %19 = arith.truncf %18 : vector<9x128xf32> to vector<9x128xbf16>
    %c0_3 = arith.constant 0 : index
    %c0_4 = arith.constant 0 : index
    %20 = vector.load %arg4[%c0_3, %c0_4] : memref<9x512xf32, #tpu.memory_space<vmem>>, vector<9x512xf32>
    %cst = arith.constant dense<0.000000e+00> : vector<9x512xf32>
    %21 = tpu.matmul %19, %16, %cst {dimension_numbers = #tpu.dot_dimension_numbers<[1], [0], [0], [1], [0, 0, 1, 1], [], []>} : vector<9x128xbf16>, vector<128x512xbf16>, vector<9x512xf32> -> vector<9x512xf32>
    %22 = arith.addf %20, %21 : vector<9x512xf32>
    %c0_5 = arith.constant 0 : index
    %c0_6 = arith.constant 0 : index
    %23 = vector.load %arg4[%c0_5, %c0_6] : memref<9x512xf32, #tpu.memory_space<vmem>>, vector<9x512xf32>
    tpu.vector_store %arg4[%c0_5, %c0_6], %22 {strides = array<i32>} : memref<9x512xf32, #tpu.memory_space<vmem>>, vector<9x512xf32>,
    %c1_i32 = arith.constant 1 : i32
    %c128_i32_7 = arith.constant 128 : i32
    %24 = arith.muli %c1_i32, %c128_i32_7 : i32
    %25 = tpu.assume_multiple %24, 128 : i32
    %26 = arith.index_cast %25 : i32 to index
    %c0_8 = arith.constant 0 : index
    %27 = vector.load %arg2[%26, %c0_8] : memref<512x1xi32, #tpu.memory_space<vmem>>, vector<128x1xi32>
    %28 = vector.broadcast %27 : vector<128x1xi32> to vector<128x512xi32>
    %29 = vector.broadcast %6 : vector<1x512xi32> to vector<128x512xi32>
    %30 = arith.cmpi eq, %28, %29 : vector<128x512xi32>
    %31 = arith.extui %30 : vector<128x512xi1> to vector<128x512xi32>
    %32 = arith.sitofp %31 : vector<128x512xi32> to vector<128x512xf32>
    %33 = arith.truncf %32 : vector<128x512xf32> to vector<128x512xbf16>
    %c0_9 = arith.constant 0 : index
    %34 = arith.index_cast %25 : i32 to index
    %35 = vector.load %arg3[%c0_9, %34] : memref<9x512xf32, #tpu.memory_space<vmem>>, vector<9x128xf32>
    %36 = arith.truncf %35 : vector<9x128xf32> to vector<9x128xbf16>
    %c0_10 = arith.constant 0 : index
    %c0_11 = arith.constant 0 : index
    %37 = vector.load %arg4[%c0_10, %c0_11] : memref<9x512xf32, #tpu.memory_space<vmem>>, vector<9x512xf32>
    %cst_12 = arith.constant dense<0.000000e+00> : vector<9x512xf32>
    %38 = tpu.matmul %36, %33, %cst_12 {dimension_numbers = #tpu.dot_dimension_numbers<[1], [0], [0], [1], [0, 0, 1, 1], [], []>} : vector<9x128xbf16>, vector<128x512xbf16>, vector<9x512xf32> -> vector<9x512xf32>
    %39 = arith.addf %37, %38 : vector<9x512xf32>
    %c0_13 = arith.constant 0 : index
    %c0_14 = arith.constant 0 : index
    %40 = vector.load %arg4[%c0_13, %c0_14] : memref<9x512xf32, #tpu.memory_space<vmem>>, vector<9x512xf32>
    tpu.vector_store %arg4[%c0_13, %c0_14], %39 {strides = array<i32>} : memref<9x512xf32, #tpu.memory_space<vmem>>, vector<9x512xf32>,
    %c2_i32 = arith.constant 2 : i32
    %c128_i32_15 = arith.constant 128 : i32
    %41 = arith.muli %c2_i32, %c128_i32_15 : i32
    %42 = tpu.assume_multiple %41, 128 : i32
    %43 = arith.index_cast %42 : i32 to index
    %c0_16 = arith.constant 0 : index
    %44 = vector.load %arg2[%43, %c0_16] : memref<512x1xi32, #tpu.memory_space<vmem>>, vector<128x1xi32>
    %45 = vector.broadcast %44 : vector<128x1xi32> to vector<128x512xi32>
    %46 = vector.broadcast %6 : vector<1x512xi32> to vector<128x512xi32>
    %47 = arith.cmpi eq, %45, %46 : vector<128x512xi32>
    %48 = arith.extui %47 : vector<128x512xi1> to vector<128x512xi32>
    %49 = arith.sitofp %48 : vector<128x512xi32> to vector<128x512xf32>
    %50 = arith.truncf %49 : vector<128x512xf32> to vector<128x512xbf16>
    %c0_17 = arith.constant 0 : index
    %51 = arith.index_cast %42 : i32 to index
    %52 = vector.load %arg3[%c0_17, %51] : memref<9x512xf32, #tpu.memory_space<vmem>>, vector<9x128xf32>
    %53 = arith.truncf %52 : vector<9x128xf32> to vector<9x128xbf16>
    %c0_18 = arith.constant 0 : index
    %c0_19 = arith.constant 0 : index
    %54 = vector.load %arg4[%c0_18, %c0_19] : memref<9x512xf32, #tpu.memory_space<vmem>>, vector<9x512xf32>
    %cst_20 = arith.constant dense<0.000000e+00> : vector<9x512xf32>
    %55 = tpu.matmul %53, %50, %cst_20 {dimension_numbers = #tpu.dot_dimension_numbers<[1], [0], [0], [1], [0, 0, 1, 1], [], []>} : vector<9x128xbf16>, vector<128x512xbf16>, vector<9x512xf32> -> vector<9x512xf32>
    %56 = arith.addf %54, %55 : vector<9x512xf32>
    %c0_21 = arith.constant 0 : index
    %c0_22 = arith.constant 0 : index
    %57 = vector.load %arg4[%c0_21, %c0_22] : memref<9x512xf32, #tpu.memory_space<vmem>>, vector<9x512xf32>
    tpu.vector_store %arg4[%c0_21, %c0_22], %56 {strides = array<i32>} : memref<9x512xf32, #tpu.memory_space<vmem>>, vector<9x512xf32>,
    %c3_i32 = arith.constant 3 : i32
    %c128_i32_23 = arith.constant 128 : i32
    %58 = arith.muli %c3_i32, %c128_i32_23 : i32
    %59 = tpu.assume_multiple %58, 128 : i32
    %60 = arith.index_cast %59 : i32 to index
    %c0_24 = arith.constant 0 : index
    %61 = vector.load %arg2[%60, %c0_24] : memref<512x1xi32, #tpu.memory_space<vmem>>, vector<128x1xi32>
    %62 = vector.broadcast %61 : vector<128x1xi32> to vector<128x512xi32>
    %63 = vector.broadcast %6 : vector<1x512xi32> to vector<128x512xi32>
    %64 = arith.cmpi eq, %62, %63 : vector<128x512xi32>
    %65 = arith.extui %64 : vector<128x512xi1> to vector<128x512xi32>
    %66 = arith.sitofp %65 : vector<128x512xi32> to vector<128x512xf32>
    %67 = arith.truncf %66 : vector<128x512xf32> to vector<128x512xbf16>
    %c0_25 = arith.constant 0 : index
    %68 = arith.index_cast %59 : i32 to index
    %69 = vector.load %arg3[%c0_25, %68] : memref<9x512xf32, #tpu.memory_space<vmem>>, vector<9x128xf32>
    %70 = arith.truncf %69 : vector<9x128xf32> to vector<9x128xbf16>
    %c0_26 = arith.constant 0 : index
    %c0_27 = arith.constant 0 : index
    %71 = vector.load %arg4[%c0_26, %c0_27] : memref<9x512xf32, #tpu.memory_space<vmem>>, vector<9x512xf32>
    %cst_28 = arith.constant dense<0.000000e+00> : vector<9x512xf32>
    %72 = tpu.matmul %70, %67, %cst_28 {dimension_numbers = #tpu.dot_dimension_numbers<[1], [0], [0], [1], [0, 0, 1, 1], [], []>} : vector<9x128xbf16>, vector<128x512xbf16>, vector<9x512xf32> -> vector<9x512xf32>
    %73 = arith.addf %71, %72 : vector<9x512xf32>
    %c0_29 = arith.constant 0 : index
    %c0_30 = arith.constant 0 : index
    %74 = vector.load %arg4[%c0_29, %c0_30] : memref<9x512xf32, #tpu.memory_space<vmem>>, vector<9x512xf32>
    tpu.vector_store %arg4[%c0_29, %c0_30], %73 {strides = array<i32>} : memref<9x512xf32, #tpu.memory_space<vmem>>, vector<9x512xf32>,
    %c4_i32 = arith.constant 4 : i32
    return
  }
  func.func @transform_0(%arg0: i32, %arg1: i32) -> (i32, i32) {
    %c0_i32 = arith.constant 0 : i32
    %c0_i32_0 = arith.constant 0 : i32
    return %arg1, %c0_i32 : i32, i32
  }
  func.func @transform_1(%arg0: i32, %arg1: i32) -> (i32, i32) {
    %c0_i32 = arith.constant 0 : i32
    %c0_i32_0 = arith.constant 0 : i32
    return %c0_i32, %arg1 : i32, i32
  }
  func.func @transform_2(%arg0: i32, %arg1: i32) -> (i32, i32) {
    %c0_i32 = arith.constant 0 : i32
    %c0_i32_0 = arith.constant 0 : i32
    return %c0_i32, %arg0 : i32, i32
  }
}

module attributes {stable_mosaic.version = 11 : i64} {
  func.func @value_mlp_kernel(%arg0: i32, %arg1: memref<1x512xf32, #tpu.memory_space<vmem>>, %arg2: memref<128x1xf32, #tpu.memory_space<vmem>>, %arg3: memref<128x1xf32, #tpu.memory_space<vmem>>, %arg4: memref<128x128xbf16, #tpu.memory_space<vmem>>, %arg5: memref<128x1xf32, #tpu.memory_space<vmem>>, %arg6: memref<128x1xf32, #tpu.memory_space<vmem>>, %arg7: memref<1x1xf32, #tpu.memory_space<vmem>>, %arg8: memref<9x512xf32, #tpu.memory_space<vmem>>) attributes {dimension_semantics = [#tpu.dimension_semantics<parallel>], iteration_bounds = array<i64: 2>, scalar_prefetch = 0 : i64, scratch_operands = 0 : i64, tpu.core_type = #tpu.core_type<tc>, window_params = [{transform_indices = @transform_0, window_bounds = array<i64: 1, 512>}, {pipeline_mode = #tpu.pipeline_mode<synchronous>, transform_indices = @transform_1, window_bounds = array<i64: 128, 1>}, {pipeline_mode = #tpu.pipeline_mode<synchronous>, transform_indices = @transform_2, window_bounds = array<i64: 128, 1>}, {pipeline_mode = #tpu.pipeline_mode<synchronous>, transform_indices = @transform_3, window_bounds = array<i64: 128, 128>}, {pipeline_mode = #tpu.pipeline_mode<synchronous>, transform_indices = @transform_4, window_bounds = array<i64: 128, 1>}, {pipeline_mode = #tpu.pipeline_mode<synchronous>, transform_indices = @transform_5, window_bounds = array<i64: 128, 1>}, {pipeline_mode = #tpu.pipeline_mode<synchronous>, transform_indices = @transform_6, window_bounds = array<i64: 1, 1>}, {transform_indices = @transform_7, window_bounds = array<i64: 9, 512>}]} {
    %c0 = arith.constant 0 : index
    %c0_0 = arith.constant 0 : index
    %0 = vector.load %arg2[%c0, %c0_0] : memref<128x1xf32, #tpu.memory_space<vmem>>, vector<128x1xf32>
    %c0_1 = arith.constant 0 : index
    %c0_2 = arith.constant 0 : index
    %1 = vector.load %arg3[%c0_1, %c0_2] : memref<128x1xf32, #tpu.memory_space<vmem>>, vector<128x1xf32>
    %c0_3 = arith.constant 0 : index
    %c0_4 = arith.constant 0 : index
    %2 = vector.load %arg4[%c0_3, %c0_4] : memref<128x128xbf16, #tpu.memory_space<vmem>>, vector<128x128xbf16>
    %c0_5 = arith.constant 0 : index
    %c0_6 = arith.constant 0 : index
    %3 = vector.load %arg5[%c0_5, %c0_6] : memref<128x1xf32, #tpu.memory_space<vmem>>, vector<128x1xf32>
    %c0_7 = arith.constant 0 : index
    %c0_8 = arith.constant 0 : index
    %4 = vector.load %arg6[%c0_7, %c0_8] : memref<128x1xf32, #tpu.memory_space<vmem>>, vector<128x1xf32>
    %c0_9 = arith.constant 0 : index
    %c0_10 = arith.constant 0 : index
    %5 = vector.load %arg7[%c0_9, %c0_10] : memref<1x1xf32, #tpu.memory_space<vmem>>, vector<1x1xf32>
    %c0_i32 = arith.constant 0 : i32
    %c128_i32 = arith.constant 128 : i32
    %6 = arith.muli %c0_i32, %c128_i32 : i32
    %7 = tpu.assume_multiple %6, 128 : i32
    %c0_11 = arith.constant 0 : index
    %8 = arith.index_cast %7 : i32 to index
    %9 = vector.load %arg1[%c0_11, %8] : memref<1x512xf32, #tpu.memory_space<vmem>>, vector<1x128xf32>
    %10 = vector.broadcast %0 : vector<128x1xf32> to vector<128x128xf32>
    %11 = vector.broadcast %9 : vector<1x128xf32> to vector<128x128xf32>
    %12 = arith.mulf %10, %11 : vector<128x128xf32>
    %cst = arith.constant 0.000000e+00 : f32
    %13 = vector.broadcast %cst : f32 to vector<9x128xf32>
    %c0_i32_12 = arith.constant 0 : i32
    %c9_i32 = arith.constant 9 : i32
    %14 = arith.addi %c0_i32_12, %c9_i32 : i32
    %c1_i32 = arith.constant 1 : i32
    %15 = scf.for %arg9 = %c0_i32_12 to %14 step %c1_i32 iter_args(%arg10 = %13) -> (vector<9x128xf32>)  : i32 {
      %54 = arith.sitofp %arg9 : i32 to f32
      %cst_40 = arith.constant 1.250000e-01 : f32
      %55 = arith.mulf %54, %cst_40 : f32
      %56 = vector.broadcast %55 : f32 to vector<128x1xf32>
      %57 = arith.mulf %0, %56 : vector<128x1xf32>
      %58 = arith.subf %1, %57 : vector<128x1xf32>
      %59 = vector.broadcast %58 : vector<128x1xf32> to vector<128x128xf32>
      %60 = arith.addf %12, %59 : vector<128x128xf32>
      %cst_41 = arith.constant 1.000000e-01 : f32
      %61 = vector.broadcast %cst_41 : f32 to vector<128x128xf32>
      %62 = arith.mulf %61, %60 : vector<128x128xf32>
      %63 = arith.maximumf %60, %62 : vector<128x128xf32>
      %64 = arith.truncf %63 : vector<128x128xf32> to vector<128x128xbf16>
      %cst_42 = arith.constant dense<0.000000e+00> : vector<128x128xf32>
      %65 = tpu.matmul %2, %64, %cst_42 {dimension_numbers = #tpu.dot_dimension_numbers<[1], [0], [0], [1], [0, 0, 1, 1], [], []>} : vector<128x128xbf16>, vector<128x128xbf16>, vector<128x128xf32> -> vector<128x128xf32>
      %66 = vector.broadcast %3 : vector<128x1xf32> to vector<128x128xf32>
      %67 = arith.addf %65, %66 : vector<128x128xf32>
      %cst_43 = arith.constant 1.000000e-01 : f32
      %68 = vector.broadcast %cst_43 : f32 to vector<128x128xf32>
      %69 = arith.mulf %68, %67 : vector<128x128xf32>
      %70 = arith.maximumf %67, %69 : vector<128x128xf32>
      %71 = vector.broadcast %4 : vector<128x1xf32> to vector<128x128xf32>
      %72 = arith.mulf %71, %70 : vector<128x128xf32>
      %cst_44 = arith.constant dense<0.000000e+00> : vector<128xf32>
      %73 = vector.multi_reduction <add>, %72, %cst_44 [0] : vector<128x128xf32> to vector<128xf32>
      %74 = vector.shape_cast %73 : vector<128xf32> to vector<1x128xf32>
      %75 = vector.broadcast %5 : vector<1x1xf32> to vector<1x128xf32>
      %76 = arith.addf %74, %75 : vector<1x128xf32>
      %77 = arith.mulf %9, %76 : vector<1x128xf32>
      %78 = tpu.iota {dimensions = array<i32: 0>} : vector<9x1xi32>
      %79 = vector.broadcast %arg9 : i32 to vector<9x1xi32>
      %80 = arith.cmpi eq, %78, %79 : vector<9x1xi32>
      %81 = vector.shape_cast %80 : vector<9x1xi1> to vector<9x1xi1>
      %82 = vector.broadcast %81 : vector<9x1xi1> to vector<9x128xi1>
      %83 = vector.shape_cast %77 : vector<1x128xf32> to vector<1x128xf32>
      %84 = vector.broadcast %83 : vector<1x128xf32> to vector<9x128xf32>
      %85 = arith.select %82, %84, %arg10 : vector<9x128xi1>, vector<9x128xf32>
      scf.yield %85 : vector<9x128xf32>
    }
    %c9_i32_13 = arith.constant 9 : i32
    %c0_14 = arith.constant 0 : index
    %16 = arith.index_cast %7 : i32 to index
    %17 = vector.load %arg8[%c0_14, %16] : memref<9x512xf32, #tpu.memory_space<vmem>>, vector<9x128xf32>
    tpu.vector_store %arg8[%c0_14, %16], %15 {strides = array<i32>} : memref<9x512xf32, #tpu.memory_space<vmem>>, vector<9x128xf32>,
    %c1_i32_15 = arith.constant 1 : i32
    %c128_i32_16 = arith.constant 128 : i32
    %18 = arith.muli %c1_i32_15, %c128_i32_16 : i32
    %19 = tpu.assume_multiple %18, 128 : i32
    %c0_17 = arith.constant 0 : index
    %20 = arith.index_cast %19 : i32 to index
    %21 = vector.load %arg1[%c0_17, %20] : memref<1x512xf32, #tpu.memory_space<vmem>>, vector<1x128xf32>
    %22 = vector.broadcast %0 : vector<128x1xf32> to vector<128x128xf32>
    %23 = vector.broadcast %21 : vector<1x128xf32> to vector<128x128xf32>
    %24 = arith.mulf %22, %23 : vector<128x128xf32>
    %cst_18 = arith.constant 0.000000e+00 : f32
    %25 = vector.broadcast %cst_18 : f32 to vector<9x128xf32>
    %c0_i32_19 = arith.constant 0 : i32
    %c9_i32_20 = arith.constant 9 : i32
    %26 = arith.addi %c0_i32_19, %c9_i32_20 : i32
    %c1_i32_21 = arith.constant 1 : i32
    %27 = scf.for %arg9 = %c0_i32_19 to %26 step %c1_i32_21 iter_args(%arg10 = %25) -> (vector<9x128xf32>)  : i32 {
      %54 = arith.sitofp %arg9 : i32 to f32
      %cst_40 = arith.constant 1.250000e-01 : f32
      %55 = arith.mulf %54, %cst_40 : f32
      %56 = vector.broadcast %55 : f32 to vector<128x1xf32>
      %57 = arith.mulf %0, %56 : vector<128x1xf32>
      %58 = arith.subf %1, %57 : vector<128x1xf32>
      %59 = vector.broadcast %58 : vector<128x1xf32> to vector<128x128xf32>
      %60 = arith.addf %24, %59 : vector<128x128xf32>
      %cst_41 = arith.constant 1.000000e-01 : f32
      %61 = vector.broadcast %cst_41 : f32 to vector<128x128xf32>
      %62 = arith.mulf %61, %60 : vector<128x128xf32>
      %63 = arith.maximumf %60, %62 : vector<128x128xf32>
      %64 = arith.truncf %63 : vector<128x128xf32> to vector<128x128xbf16>
      %cst_42 = arith.constant dense<0.000000e+00> : vector<128x128xf32>
      %65 = tpu.matmul %2, %64, %cst_42 {dimension_numbers = #tpu.dot_dimension_numbers<[1], [0], [0], [1], [0, 0, 1, 1], [], []>} : vector<128x128xbf16>, vector<128x128xbf16>, vector<128x128xf32> -> vector<128x128xf32>
      %66 = vector.broadcast %3 : vector<128x1xf32> to vector<128x128xf32>
      %67 = arith.addf %65, %66 : vector<128x128xf32>
      %cst_43 = arith.constant 1.000000e-01 : f32
      %68 = vector.broadcast %cst_43 : f32 to vector<128x128xf32>
      %69 = arith.mulf %68, %67 : vector<128x128xf32>
      %70 = arith.maximumf %67, %69 : vector<128x128xf32>
      %71 = vector.broadcast %4 : vector<128x1xf32> to vector<128x128xf32>
      %72 = arith.mulf %71, %70 : vector<128x128xf32>
      %cst_44 = arith.constant dense<0.000000e+00> : vector<128xf32>
      %73 = vector.multi_reduction <add>, %72, %cst_44 [0] : vector<128x128xf32> to vector<128xf32>
      %74 = vector.shape_cast %73 : vector<128xf32> to vector<1x128xf32>
      %75 = vector.broadcast %5 : vector<1x1xf32> to vector<1x128xf32>
      %76 = arith.addf %74, %75 : vector<1x128xf32>
      %77 = arith.mulf %21, %76 : vector<1x128xf32>
      %78 = tpu.iota {dimensions = array<i32: 0>} : vector<9x1xi32>
      %79 = vector.broadcast %arg9 : i32 to vector<9x1xi32>
      %80 = arith.cmpi eq, %78, %79 : vector<9x1xi32>
      %81 = vector.shape_cast %80 : vector<9x1xi1> to vector<9x1xi1>
      %82 = vector.broadcast %81 : vector<9x1xi1> to vector<9x128xi1>
      %83 = vector.shape_cast %77 : vector<1x128xf32> to vector<1x128xf32>
      %84 = vector.broadcast %83 : vector<1x128xf32> to vector<9x128xf32>
      %85 = arith.select %82, %84, %arg10 : vector<9x128xi1>, vector<9x128xf32>
      scf.yield %85 : vector<9x128xf32>
    }
    %c9_i32_22 = arith.constant 9 : i32
    %c0_23 = arith.constant 0 : index
    %28 = arith.index_cast %19 : i32 to index
    %29 = vector.load %arg8[%c0_23, %28] : memref<9x512xf32, #tpu.memory_space<vmem>>, vector<9x128xf32>
    tpu.vector_store %arg8[%c0_23, %28], %27 {strides = array<i32>} : memref<9x512xf32, #tpu.memory_space<vmem>>, vector<9x128xf32>,
    %c2_i32 = arith.constant 2 : i32
    %c128_i32_24 = arith.constant 128 : i32
    %30 = arith.muli %c2_i32, %c128_i32_24 : i32
    %31 = tpu.assume_multiple %30, 128 : i32
    %c0_25 = arith.constant 0 : index
    %32 = arith.index_cast %31 : i32 to index
    %33 = vector.load %arg1[%c0_25, %32] : memref<1x512xf32, #tpu.memory_space<vmem>>, vector<1x128xf32>
    %34 = vector.broadcast %0 : vector<128x1xf32> to vector<128x128xf32>
    %35 = vector.broadcast %33 : vector<1x128xf32> to vector<128x128xf32>
    %36 = arith.mulf %34, %35 : vector<128x128xf32>
    %cst_26 = arith.constant 0.000000e+00 : f32
    %37 = vector.broadcast %cst_26 : f32 to vector<9x128xf32>
    %c0_i32_27 = arith.constant 0 : i32
    %c9_i32_28 = arith.constant 9 : i32
    %38 = arith.addi %c0_i32_27, %c9_i32_28 : i32
    %c1_i32_29 = arith.constant 1 : i32
    %39 = scf.for %arg9 = %c0_i32_27 to %38 step %c1_i32_29 iter_args(%arg10 = %37) -> (vector<9x128xf32>)  : i32 {
      %54 = arith.sitofp %arg9 : i32 to f32
      %cst_40 = arith.constant 1.250000e-01 : f32
      %55 = arith.mulf %54, %cst_40 : f32
      %56 = vector.broadcast %55 : f32 to vector<128x1xf32>
      %57 = arith.mulf %0, %56 : vector<128x1xf32>
      %58 = arith.subf %1, %57 : vector<128x1xf32>
      %59 = vector.broadcast %58 : vector<128x1xf32> to vector<128x128xf32>
      %60 = arith.addf %36, %59 : vector<128x128xf32>
      %cst_41 = arith.constant 1.000000e-01 : f32
      %61 = vector.broadcast %cst_41 : f32 to vector<128x128xf32>
      %62 = arith.mulf %61, %60 : vector<128x128xf32>
      %63 = arith.maximumf %60, %62 : vector<128x128xf32>
      %64 = arith.truncf %63 : vector<128x128xf32> to vector<128x128xbf16>
      %cst_42 = arith.constant dense<0.000000e+00> : vector<128x128xf32>
      %65 = tpu.matmul %2, %64, %cst_42 {dimension_numbers = #tpu.dot_dimension_numbers<[1], [0], [0], [1], [0, 0, 1, 1], [], []>} : vector<128x128xbf16>, vector<128x128xbf16>, vector<128x128xf32> -> vector<128x128xf32>
      %66 = vector.broadcast %3 : vector<128x1xf32> to vector<128x128xf32>
      %67 = arith.addf %65, %66 : vector<128x128xf32>
      %cst_43 = arith.constant 1.000000e-01 : f32
      %68 = vector.broadcast %cst_43 : f32 to vector<128x128xf32>
      %69 = arith.mulf %68, %67 : vector<128x128xf32>
      %70 = arith.maximumf %67, %69 : vector<128x128xf32>
      %71 = vector.broadcast %4 : vector<128x1xf32> to vector<128x128xf32>
      %72 = arith.mulf %71, %70 : vector<128x128xf32>
      %cst_44 = arith.constant dense<0.000000e+00> : vector<128xf32>
      %73 = vector.multi_reduction <add>, %72, %cst_44 [0] : vector<128x128xf32> to vector<128xf32>
      %74 = vector.shape_cast %73 : vector<128xf32> to vector<1x128xf32>
      %75 = vector.broadcast %5 : vector<1x1xf32> to vector<1x128xf32>
      %76 = arith.addf %74, %75 : vector<1x128xf32>
      %77 = arith.mulf %33, %76 : vector<1x128xf32>
      %78 = tpu.iota {dimensions = array<i32: 0>} : vector<9x1xi32>
      %79 = vector.broadcast %arg9 : i32 to vector<9x1xi32>
      %80 = arith.cmpi eq, %78, %79 : vector<9x1xi32>
      %81 = vector.shape_cast %80 : vector<9x1xi1> to vector<9x1xi1>
      %82 = vector.broadcast %81 : vector<9x1xi1> to vector<9x128xi1>
      %83 = vector.shape_cast %77 : vector<1x128xf32> to vector<1x128xf32>
      %84 = vector.broadcast %83 : vector<1x128xf32> to vector<9x128xf32>
      %85 = arith.select %82, %84, %arg10 : vector<9x128xi1>, vector<9x128xf32>
      scf.yield %85 : vector<9x128xf32>
    }
    %c9_i32_30 = arith.constant 9 : i32
    %c0_31 = arith.constant 0 : index
    %40 = arith.index_cast %31 : i32 to index
    %41 = vector.load %arg8[%c0_31, %40] : memref<9x512xf32, #tpu.memory_space<vmem>>, vector<9x128xf32>
    tpu.vector_store %arg8[%c0_31, %40], %39 {strides = array<i32>} : memref<9x512xf32, #tpu.memory_space<vmem>>, vector<9x128xf32>,
    %c3_i32 = arith.constant 3 : i32
    %c128_i32_32 = arith.constant 128 : i32
    %42 = arith.muli %c3_i32, %c128_i32_32 : i32
    %43 = tpu.assume_multiple %42, 128 : i32
    %c0_33 = arith.constant 0 : index
    %44 = arith.index_cast %43 : i32 to index
    %45 = vector.load %arg1[%c0_33, %44] : memref<1x512xf32, #tpu.memory_space<vmem>>, vector<1x128xf32>
    %46 = vector.broadcast %0 : vector<128x1xf32> to vector<128x128xf32>
    %47 = vector.broadcast %45 : vector<1x128xf32> to vector<128x128xf32>
    %48 = arith.mulf %46, %47 : vector<128x128xf32>
    %cst_34 = arith.constant 0.000000e+00 : f32
    %49 = vector.broadcast %cst_34 : f32 to vector<9x128xf32>
    %c0_i32_35 = arith.constant 0 : i32
    %c9_i32_36 = arith.constant 9 : i32
    %50 = arith.addi %c0_i32_35, %c9_i32_36 : i32
    %c1_i32_37 = arith.constant 1 : i32
    %51 = scf.for %arg9 = %c0_i32_35 to %50 step %c1_i32_37 iter_args(%arg10 = %49) -> (vector<9x128xf32>)  : i32 {
      %54 = arith.sitofp %arg9 : i32 to f32
      %cst_40 = arith.constant 1.250000e-01 : f32
      %55 = arith.mulf %54, %cst_40 : f32
      %56 = vector.broadcast %55 : f32 to vector<128x1xf32>
      %57 = arith.mulf %0, %56 : vector<128x1xf32>
      %58 = arith.subf %1, %57 : vector<128x1xf32>
      %59 = vector.broadcast %58 : vector<128x1xf32> to vector<128x128xf32>
      %60 = arith.addf %48, %59 : vector<128x128xf32>
      %cst_41 = arith.constant 1.000000e-01 : f32
      %61 = vector.broadcast %cst_41 : f32 to vector<128x128xf32>
      %62 = arith.mulf %61, %60 : vector<128x128xf32>
      %63 = arith.maximumf %60, %62 : vector<128x128xf32>
      %64 = arith.truncf %63 : vector<128x128xf32> to vector<128x128xbf16>
      %cst_42 = arith.constant dense<0.000000e+00> : vector<128x128xf32>
      %65 = tpu.matmul %2, %64, %cst_42 {dimension_numbers = #tpu.dot_dimension_numbers<[1], [0], [0], [1], [0, 0, 1, 1], [], []>} : vector<128x128xbf16>, vector<128x128xbf16>, vector<128x128xf32> -> vector<128x128xf32>
      %66 = vector.broadcast %3 : vector<128x1xf32> to vector<128x128xf32>
      %67 = arith.addf %65, %66 : vector<128x128xf32>
      %cst_43 = arith.constant 1.000000e-01 : f32
      %68 = vector.broadcast %cst_43 : f32 to vector<128x128xf32>
      %69 = arith.mulf %68, %67 : vector<128x128xf32>
      %70 = arith.maximumf %67, %69 : vector<128x128xf32>
      %71 = vector.broadcast %4 : vector<128x1xf32> to vector<128x128xf32>
      %72 = arith.mulf %71, %70 : vector<128x128xf32>
      %cst_44 = arith.constant dense<0.000000e+00> : vector<128xf32>
      %73 = vector.multi_reduction <add>, %72, %cst_44 [0] : vector<128x128xf32> to vector<128xf32>
      %74 = vector.shape_cast %73 : vector<128xf32> to vector<1x128xf32>
      %75 = vector.broadcast %5 : vector<1x1xf32> to vector<1x128xf32>
      %76 = arith.addf %74, %75 : vector<1x128xf32>
      %77 = arith.mulf %45, %76 : vector<1x128xf32>
      %78 = tpu.iota {dimensions = array<i32: 0>} : vector<9x1xi32>
      %79 = vector.broadcast %arg9 : i32 to vector<9x1xi32>
      %80 = arith.cmpi eq, %78, %79 : vector<9x1xi32>
      %81 = vector.shape_cast %80 : vector<9x1xi1> to vector<9x1xi1>
      %82 = vector.broadcast %81 : vector<9x1xi1> to vector<9x128xi1>
      %83 = vector.shape_cast %77 : vector<1x128xf32> to vector<1x128xf32>
      %84 = vector.broadcast %83 : vector<1x128xf32> to vector<9x128xf32>
      %85 = arith.select %82, %84, %arg10 : vector<9x128xi1>, vector<9x128xf32>
      scf.yield %85 : vector<9x128xf32>
    }
    %c9_i32_38 = arith.constant 9 : i32
    %c0_39 = arith.constant 0 : index
    %52 = arith.index_cast %43 : i32 to index
    %53 = vector.load %arg8[%c0_39, %52] : memref<9x512xf32, #tpu.memory_space<vmem>>, vector<9x128xf32>
    tpu.vector_store %arg8[%c0_39, %52], %51 {strides = array<i32>} : memref<9x512xf32, #tpu.memory_space<vmem>>, vector<9x128xf32>,
    %c4_i32 = arith.constant 4 : i32
    return
  }
  func.func @transform_0(%arg0: i32) -> (i32, i32) {
    %c0_i32 = arith.constant 0 : i32
    %c0_i32_0 = arith.constant 0 : i32
    return %c0_i32, %arg0 : i32, i32
  }
  func.func @transform_1(%arg0: i32) -> (i32, i32) {
    %c0_i32 = arith.constant 0 : i32
    %c0_i32_0 = arith.constant 0 : i32
    %c0_i32_1 = arith.constant 0 : i32
    return %c0_i32, %c0_i32_0 : i32, i32
  }
  func.func @transform_2(%arg0: i32) -> (i32, i32) {
    %c0_i32 = arith.constant 0 : i32
    %c0_i32_0 = arith.constant 0 : i32
    %c0_i32_1 = arith.constant 0 : i32
    return %c0_i32, %c0_i32_0 : i32, i32
  }
  func.func @transform_3(%arg0: i32) -> (i32, i32) {
    %c0_i32 = arith.constant 0 : i32
    %c0_i32_0 = arith.constant 0 : i32
    %c0_i32_1 = arith.constant 0 : i32
    return %c0_i32, %c0_i32_0 : i32, i32
  }
  func.func @transform_4(%arg0: i32) -> (i32, i32) {
    %c0_i32 = arith.constant 0 : i32
    %c0_i32_0 = arith.constant 0 : i32
    %c0_i32_1 = arith.constant 0 : i32
    return %c0_i32, %c0_i32_0 : i32, i32
  }
  func.func @transform_5(%arg0: i32) -> (i32, i32) {
    %c0_i32 = arith.constant 0 : i32
    %c0_i32_0 = arith.constant 0 : i32
    %c0_i32_1 = arith.constant 0 : i32
    return %c0_i32, %c0_i32_0 : i32, i32
  }
  func.func @transform_6(%arg0: i32) -> (i32, i32) {
    %c0_i32 = arith.constant 0 : i32
    %c0_i32_0 = arith.constant 0 : i32
    %c0_i32_1 = arith.constant 0 : i32
    return %c0_i32, %c0_i32_0 : i32, i32
  }
  func.func @transform_7(%arg0: i32) -> (i32, i32) {
    %c0_i32 = arith.constant 0 : i32
    %c0_i32_0 = arith.constant 0 : i32
    return %c0_i32, %arg0 : i32, i32
  }
}

</mosaic_0001>

<bundles_post_ra>
// kernel: div.5
= control target key start
LH: loop header
LB: loop body
LE: loop exit
PB: predicated region body
PF: predicated region fallthrough
CT: control target
= control target key end

     0   :  { %s37_s0 = inlined_call_operand.vmem [shape: f32[600], index: 0, kind: input, shape index: {}]   ;;  %s38_s1 = inlined_call_operand.vmem [shape: f32[600], index: 1, kind: input, shape index: {}]   ;;  %s39_s2 = inlined_call_operand.vmem [shape: f32[600], index: 2, kind: output, shape index: {}]  }
   0x1   :  { %v4_v0 = vld [vmem:[%s38_s1] sm:$0x1f] }
   0x2   :  { %11 = vrcp.f32 %v4_v0  ;;  %v3_v1 = vld [vmem:[%s37_s0] sm:$0x1f] }
   0xf   :  { %v12_v2 = vpop.eup %11 }
  0x10   :  { %v8_v3 = vmul.f32 %v12_v2, %v3_v1 }
  0x12   :  { %10 = vst [vmem:[%s39_s2] sm:$0xff] %v8_v3 }

// kernel: quantization_layer_forward.3
= control target key start
LH: loop header
LB: loop body
LE: loop exit
PB: predicated region body
PF: predicated region fallthrough
CT: control target
= control target key end

     0   :  { %s2717_s9 = smov 0   ;;  %s2719_s10 = smov 0   ;;  %s3608_s0 = inlined_call_operand.vmem [shape: s32[1024,1], index: 0, kind: input, shape index: {}]   ;;  %s3609_s1 = inlined_call_operand.vmem [shape: f32[9,1024], index: 1, kind: input, shape index: {}]   ;;  %s3610_s2 = inlined_call_operand.vmem [shape: f32[9,1024], index: 2, kind: output, shape index: {}]  }
   0x1   :  { %s2721_s11 = smov 0   ;;  %s2723_s12 = smov 0  }
   0x2   :  { %s2725_s13 = smov 0   ;;  %s2727_s14 = smov 0  }
   0x3   :  { %s2729_s15 = smov 0   ;;  %s2731_s16 = smov 0  }
   0x4   :  { %s2733_s17 = smov 0  }
   0x5 LB: > { %s1963_s18 = sadd.s32 4294967295, %s2697_s17   ;;  %s21_s19 = sadd.s32 1, %s2689_s15  ;;  %s2697_s17 = sphi %s2733_s17, %s12_s17   ;;  %s2693_s16 = sphi %s2731_s16, %s3619_s16   ;;  %s2689_s15 = sphi %s2729_s15, %s3618_s15   ;;  %s2685_s14 = sphi %s2727_s14, %s3617_s14   ;;  %s2681_s13 = sphi %s2725_s13, %s3616_s13   ;;  %s2677_s12 = sphi %s2723_s12, %s3615_s12   ;;  %s2673_s11 = sphi %s2721_s11, %s3614_s11   ;;  %s2669_s10 = sphi %s2719_s10, %s3613_s10   ;;  %s2665_s9 = sphi %s2717_s9, %s3612_s9  }
   0x6   : > { %p22_p0 = scmp.ge.s32.totalorder %s21_s19, 2  ;;  %s24_s20 = sadd.s32 1, %s2693_s16 }
   0x7   : > { %s57_s21 = sadd.s32 1, %s2677_s12  ;;  %p64_p1 = scmp.ne.s32.totalorder %s2677_s12, %s2673_s11 }
   0x8   : > { %s3621_s19 = smov (%p22_p0, %s21_s19), 0  ;;  %s3623_s20 = smov (!%p22_p0, %s24_s20), %s2693_s16 }
   0x9   : > { %s54_s22 = ssub.s32 %s2689_s15, %s3621_s19  ;;  %p65_p2 = scmp.eq.s32.totalorder %s2697_s17, 0 }
   0xa   : > { %p26_p3 = scmp.ge.s32.totalorder %s3623_s20, 2  ;;  %p55_p4 = scmp.eq.s32.totalorder %s54_s22, 0 }
   0xb   : > { %p66_p5 = por %p65_p2, %p64_p1  ;;  %s83_s23 = sadd.s32 1, %s2669_s10 }
   0xc   : > { %s3625_s20 = smov (%p26_p3, %s3623_s20), 0  ;;  %p93_p6 = scmp.ne.s32.totalorder %s2669_s10, %s2665_s9 }
   0xd   : > { %s2778_s24 = scalar_select %p55_p4, %s2677_s12, %s57_s21  }
   0xe   : > { %s80_s25 = ssub.s32 %s2693_s16, %s3625_s20  ;;  %p94_p8 = scmp.eq.s32.totalorder %s1963_s18, 3 }
   0xf   : > { %p81_p7 = scmp.eq.s32.totalorder %s80_s25, 0  ;;  %p1966_p10 = scmp.ge.s32.totalorder %s2697_s17, 4 }
  0x10   : > { %p2787_p9 = por %p94_p8, %p93_p6 }
  0x11   : > { %s2785_s26 = scalar_select %p81_p7, %s2669_s10, %s83_s23  }
  0x12   : > { %116 = sbr.rel (%p1966_p10) target bundleno = 31 (0x1f), region = 16 }
  0x17   : > { %128 = sbr.rel (!%p66_p5) target bundleno = 31 (0x1f), region = 24  ;;  %s130_s28 = sand.u32 (%p66_p5), 1, %s2677_s12  }
  0x18   : > { %s2548_s29 = sshll.u32 (%p66_p5), %s2689_s15, 5  ;;  %s1967_s30 = sshll.u32 (%p66_p5), %s130_s28, 6 }
  0x19   : > { %s135_s5 = scalar_lea.vmem (%p66_p5), %s3609_s1, %s2548_s29  ;;  %s132_s6 = scalar_lea.vmem (%p66_p5), [#allocation2], %s1967_s30 }
  0x1a   : > { %v148_v0 = vld [vmem:[%s135_s5] sm:$0xff] (%p66_p5)  ;;  %v150_v1 = vld [vmem:[%s135_s5 + $0x8] sm:$0xff] (%p66_p5)  ;;  %v152_v2 = vld [vmem:[%s135_s5 + $0x10] sm:$0xff] (%p66_p5) }
  0x1b   : > { %149 = vst [vmem:[%s132_s6] sm:$0xff] (%p66_p5), %v148_v0  ;;  %151 = vst [vmem:[%s132_s6 + $0x8] sm:$0xff] (%p66_p5), %v150_v1  ;;  %v154_v3 = vld [vmem:[%s135_s5 + $0x18] sm:$0xff] (%p66_p5)  ;;  %v156_v4 = vld [vmem:[%s135_s5 + $0x40] sm:$0xff] (%p66_p5) }
  0x1c   : > { %153 = vst [vmem:[%s132_s6 + $0x10] sm:$0xff] %v152_v2  ;;  %v158_v5 = vld [vmem:[%s135_s5 + $0x48] sm:$0xff]  ;;  %155 = vst [vmem:[%s132_s6 + $0x18] sm:$0xff] %v154_v3  ;;  %v160_v6 = vld [vmem:[%s135_s5 + $0x50] sm:$0xff] }
  0x1d   : > { %157 = vst [vmem:[%s132_s6 + $0x20] sm:$0xff] %v156_v4  ;;  %159 = vst [vmem:[%s132_s6 + $0x28] sm:$0xff] %v158_v5  ;;  %v162_v7 = vld [vmem:[%s135_s5 + $0x58] sm:$0xff] }
  0x1e   : > { %161 = vst [vmem:[%s132_s6 + $0x30] sm:$0xff] %v160_v6  ;;  %163 = vst [vmem:[%s132_s6 + $0x38] sm:$0xff] %v162_v7 }
  0x1f PF: > { %p1970_p11 = scmp.ge.s32.totalorder %s2697_s17, 1  ;;  %p168_p12 = scmp.lt.s32.totalorder %s2697_s17, 5 }
  0x21   : > { %p169_p13 = pnand %p1970_p11, %p168_p12 }
  0x22   : > { %s175_s7 = sand.u32 (!%p169_p13), 1, %s2673_s11   ;;  %s197_s8 = sand.u32 (!%p169_p13), 1, %s2665_s9  }
  0x23   : > { %172 = sbr.rel (%p169_p13) target bundleno = 522 (0x20a), region = 47  ;;  %s1971_s18 = sshll.u32 (!%p169_p13), %s175_s7, 6 }
  0x24   : > { %s1972_s21 = sshll.u32 (!%p169_p13), %s197_s8, 6  ;;  %s1973_s22 = sshll.u32 (!%p169_p13), %s2681_s13, 6 }
  0x25   : > { %p201_p0 = scmp.lt.s32.totalorder (!%p169_p13), %s1973_s22, 127  ;;  %s2807_s30 = scalar_lea.vmem (!%p169_p13), [#allocation2], %s1971_s18 }
  0x26   : > { %s2809_s3 = scalar_lea.vmem (!%p169_p13), [#allocation3], %s1972_s21  ;;  %p1975_p1 = scmp.ne.s32.totalorder (!%p169_p13), %s2681_s13, 0 }
  0x28   : > { %s3627_s22 = smov (!%p201_p0, %s1973_s22), 127  ;;  %212 = sbr.rel (%p1975_p1) target bundleno = 50 (0x32), region = 55 }
  0x29   : > { %s1974_s23 = sshll.u32 %s3627_s22, 3 }
  0x2a   : > { %s2805_s29 = scalar_lea.vmem %s3608_s0, %s1974_s23 }
  0x2d   : > { %v2699_v8 = vmov 0.0  }
  0x2e   : > { %213 = vst [vmem:[%s2809_s3] sm:$0xff] %v2699_v8  ;;  %214 = vst [vmem:[%s2809_s3 + $0x8] sm:$0xff] %v2699_v8 }
  0x2f   : > { %215 = vst [vmem:[%s2809_s3 + $0x10] sm:$0xff] %v2699_v8  ;;  %216 = vst [vmem:[%s2809_s3 + $0x18] sm:$0xff] %v2699_v8 }
  0x30   : > { %217 = vst [vmem:[%s2809_s3 + $0x20] sm:$0x1] %v2699_v8  ;;  %218 = vst [vmem:[%s2809_s3 + $0x28] sm:$0x1] %v2699_v8 }
  0x31   : > { %219 = vst [vmem:[%s2809_s3 + $0x30] sm:$0x1] %v2699_v8  ;;  %220 = vst [vmem:[%s2809_s3 + $0x38] sm:$0x1] %v2699_v8 }
  0x32 PF: > { %v246_v9 = vld [vmem:[%s2805_s29 + $0x70] sm:$0xff]  ;;  %v244_v10 = vld [vmem:[%s2805_s29 + $0x60] sm:$0xff]  ;;  %v2700_v11 = vmov 0   ;;  %v247_v12 = vld [vmem:[%s2805_s29 + $0x78] sm:$0xff]  ;;  %v222_v4 = vlaneseq  ;;  %s1976_s9 = sshll.u32 %s2685_s14, 9  ;;  %s2549_s11 = sshll.u32 (%p2787_p9), %s2685_s14, 5 }
  0x33   : > { %2626 = vset.pattern.permute.xlu1 %v2700_v11  ;;  %2625 = vset.pattern.permute.xlu0 %v2700_v11  ;;  %v245_v13 = vld [vmem:[%s2805_s29 + $0x68] sm:$0xff]  ;;  %v243_v14 = vld [vmem:[%s2805_s29 + $0x58] sm:$0xff]  ;;  %v242_v15 = vld [vmem:[%s2805_s29 + $0x50] sm:$0xff]  ;;  %s1851_s5 = scalar_lea.vmem (%p2787_p9), %s3610_s2, %s2549_s11 }
  0x34   : > { %291 = vperm.xlu0 %2625, %v246_v9   ;;  %285 = vperm.xlu1 %2626, %v244_v10   ;;  %v241_v16 = vld [vmem:[%s2805_s29 + $0x48] sm:$0xff]  ;;  %v240_v17 = vld [vmem:[%s2805_s29 + $0x40] sm:$0xff]  ;;  %v239_v18 = vld [vmem:[%s2805_s29 + $0x38] sm:$0xff]  ;;  %v223_v7 = vand.u32 127, %v222_v4 }
  0x35   : > { %563 = vmatprep.mubr.bf16.mxu0 %v2700_v11  ;;  %606 = vmatprep.mubr.bf16.mxu1 %v2700_v11  ;;  %v238_v19 = vld [vmem:[%s2805_s29 + $0x30] sm:$0xff]  ;;  %v237_v20 = vld [vmem:[%s2805_s29 + $0x28] sm:$0xff]  ;;  %v236_v21 = vld [vmem:[%s2805_s29 + $0x20] sm:$0xff] }
  0x36   : > { %v235_v22 = vld [vmem:[%s2805_s29 + $0x18] sm:$0xff]  ;;  %v234_v23 = vld [vmem:[%s2805_s29 + $0x10] sm:$0xff]  ;;  %v233_v24 = vld [vmem:[%s2805_s29 + $0x8] sm:$0xff]  ;;  %v224_v10 = vadd.s32 128, %v223_v7 }
  0x37   : > { %v232_v25 = vld [vmem:[%s2805_s29] sm:$0xff]  ;;  %v2120_v26 = vld [vmem:[%s2805_s29 + $0xf8] sm:$0xff]  ;;  %v2119_v27 = vld [vmem:[%s2805_s29 + $0xf0] sm:$0xff] }
  0x38   : > { %294 = vperm.xlu0 %2625, %v247_v12   ;;  %288 = vperm.xlu1 %2626, %v245_v13   ;;  %v2118_v28 = vld [vmem:[%s2805_s29 + $0xe8] sm:$0xff]  ;;  %v2117_v29 = vld [vmem:[%s2805_s29 + $0xe0] sm:$0xff]  ;;  %v2116_v30 = vld [vmem:[%s2805_s29 + $0xd8] sm:$0xff] }
  0x39   : > { %v2115_v31 = vld [vmem:[%s2805_s29 + $0xd0] sm:$0xff]  ;;  %v2114_v32 = vld [vmem:[%s2805_s29 + $0xc8] sm:$0xff]  ;;  %v2113_v33 = vld [vmem:[%s2805_s29 + $0xc0] sm:$0xff] }
  0x3a   : > { %v2112_v34 = vld [vmem:[%s2805_s29 + $0xb8] sm:$0xff]  ;;  %v2111_v35 = vld [vmem:[%s2805_s29 + $0xb0] sm:$0xff]  ;;  %v2110_v36 = vld [vmem:[%s2805_s29 + $0xa8] sm:$0xff] }
  0x3b   : > { %v2109_v37 = vld [vmem:[%s2805_s29 + $0xa0] sm:$0xff]  ;;  %v2108_v38 = vld [vmem:[%s2805_s29 + $0x98] sm:$0xff]  ;;  %v2107_v39 = vld [vmem:[%s2805_s29 + $0x90] sm:$0xff] }
  0x3c   : > { %282 = vperm.xlu1 %2626, %v243_v14   ;;  %279 = vperm.xlu0 %2625, %v242_v15   ;;  %v2106_v40 = vld [vmem:[%s2805_s29 + $0x88] sm:$0xff]  ;;  %v2105_v41 = vld [vmem:[%s2805_s29 + $0x80] sm:$0xff]  ;;  %v2266_v42 = vld [vmem:[%s2805_s29 + $0x178] sm:$0xff]  ;;  %v227_v14 = vstv %s1976_s9  ;;  %v226_v15 = vadd.s32 384, %v223_v7 }
  0x3d   : > { %v2265_v43 = vld [vmem:[%s2805_s29 + $0x170] sm:$0xff]  ;;  %v2264_v44 = vld [vmem:[%s2805_s29 + $0x168] sm:$0xff]  ;;  %v2263_v45 = vld [vmem:[%s2805_s29 + $0x160] sm:$0xff] }
  0x3e   : > { %v2262_v46 = vld [vmem:[%s2805_s29 + $0x158] sm:$0xff]  ;;  %v2261_v47 = vld [vmem:[%s2805_s29 + $0x150] sm:$0xff]  ;;  %v2260_v48 = vld [vmem:[%s2805_s29 + $0x148] sm:$0xff] }
  0x3f   : > { %v2259_v49 = vld [vmem:[%s2805_s29 + $0x140] sm:$0xff]  ;;  %v2258_v50 = vld [vmem:[%s2805_s29 + $0x138] sm:$0xff]  ;;  %v2257_v51 = vld [vmem:[%s2805_s29 + $0x130] sm:$0xff] }
  0x40   : > { %276 = vperm.xlu1 %2626, %v241_v16   ;;  %273 = vperm.xlu0 %2625, %v240_v17   ;;  %v2256_v52 = vld [vmem:[%s2805_s29 + $0x128] sm:$0xff]  ;;  %v2255_v53 = vld [vmem:[%s2805_s29 + $0x120] sm:$0xff]  ;;  %v2254_v54 = vld [vmem:[%s2805_s29 + $0x118] sm:$0xff] }
  0x41   : > { %v2253_v55 = vld [vmem:[%s2805_s29 + $0x110] sm:$0xff]  ;;  %v2252_v56 = vld [vmem:[%s2805_s29 + $0x108] sm:$0xff]  ;;  %v2251_v57 = vld [vmem:[%s2805_s29 + $0x100] sm:$0xff] }
  0x42   : > { %v2412_v58 = vld [vmem:[%s2805_s29 + $0x1f8] sm:$0xff]  ;;  %v2411_v59 = vld [vmem:[%s2805_s29 + $0x1f0] sm:$0xff]  ;;  %v2410_v60 = vld [vmem:[%s2805_s29 + $0x1e8] sm:$0xff] }
  0x43   : > { %v2409_v61 = vld [vmem:[%s2805_s29 + $0x1e0] sm:$0xff]  ;;  %v2408_v62 = vld [vmem:[%s2805_s29 + $0x1d8] sm:$0xff]  ;;  %v2407_v63 = vld [vmem:[%s2805_s29 + $0x1d0] sm:$0xff] }
  0x44   : > { %270 = vperm.xlu1 %2626, %v239_v18   ;;  %267 = vperm.xlu0 %2625, %v238_v19   ;;  %v2406_v0 = vld [vmem:[%s2805_s29 + $0x1c8] sm:$0xff]  ;;  %v2405_v1 = vld [vmem:[%s2805_s29 + $0x1c0] sm:$0xff]  ;;  %v2404_v2 = vld [vmem:[%s2805_s29 + $0x1b8] sm:$0xff]  ;;  %v225_v18 = vadd.s32 256, %v223_v7  ;;  %v2889_v19 = vadd.s32 %v227_v14, %v224_v10 }
  0x45   : > { %v2403_v3 = vld [vmem:[%s2805_s29 + $0x1b0] sm:$0xff]  ;;  %v2402_v5 = vld [vmem:[%s2805_s29 + $0x1a8] sm:$0xff]  ;;  %v2401_v6 = vld [vmem:[%s2805_s29 + $0x1a0] sm:$0xff] }
  0x46   : > { %v2400_v8 = vld [vmem:[%s2805_s29 + $0x198] sm:$0xff]  ;;  %v2399_v9 = vld [vmem:[%s2805_s29 + $0x190] sm:$0xff]  ;;  %v2398_v12 = vld [vmem:[%s2805_s29 + $0x188] sm:$0xff] }
  0x47   : > { %v2397_v13 = vld [vmem:[%s2805_s29 + $0x180] sm:$0xff] }
  0x48   : > { %264 = vperm.xlu1 %2626, %v237_v20   ;;  %261 = vperm.xlu0 %2625, %v236_v21   ;;  %v2891_v20 = vadd.s32 %v227_v14, %v226_v15  ;;  %v2893_v21 = vadd.s32 %v227_v14, %v223_v7  ;;  %v2331_v15 = vld [vmem:[%s2807_s30 + $0x10] sm:$0xff] }
  0x4c   : > { %258 = vperm.xlu1 %2626, %v235_v22   ;;  %255 = vperm.xlu0 %2625, %v234_v23  }
  0x50   : > { %252 = vperm.xlu1 %2626, %v233_v24   ;;  %249 = vperm.xlu0 %2625, %v232_v25   ;;  %v2895_v24 = vadd.s32 %v227_v14, %v225_v18  ;;  %v2701_v25 = vmov 1.0|1.0  }
  0x54   : > { %696 = vperm.xlu1 %2626, %v2120_v26   ;;  %693 = vperm.xlu0 %2625, %v2119_v27  }
  0x58   : > { %690 = vperm.xlu1 %2626, %v2118_v28   ;;  %687 = vperm.xlu0 %2625, %v2117_v29  }
  0x5c   : > { %684 = vperm.xlu1 %2626, %v2116_v30   ;;  %681 = vperm.xlu0 %2625, %v2115_v31  }
  0x60   : > { %678 = vperm.xlu1 %2626, %v2114_v32   ;;  %675 = vperm.xlu0 %2625, %v2113_v33  }
  0x64   : > { %672 = vperm.xlu1 %2626, %v2112_v34   ;;  %669 = vperm.xlu0 %2625, %v2111_v35  }
  0x68   : > { %666 = vperm.xlu1 %2626, %v2110_v36   ;;  %663 = vperm.xlu0 %2625, %v2109_v37  }
  0x6c   : > { %660 = vperm.xlu1 %2626, %v2108_v38   ;;  %657 = vperm.xlu0 %2625, %v2107_v39  }
  0x70   : > { %654 = vperm.xlu1 %2626, %v2106_v40   ;;  %651 = vperm.xlu0 %2625, %v2105_v41   ;;  %v520_v40 = vld [vmem:[%s2807_s30] sm:$0xff] }
  0x71   : > { %v521_v41 = vld [vmem:[%s2807_s30 + $0x20] sm:$0x1] }
  0x74   : > { %1099 = vperm.xlu1 %2626, %v2266_v42   ;;  %1096 = vperm.xlu0 %2625, %v2265_v43  }
  0x78   : > { %1093 = vperm.xlu1 %2626, %v2264_v44   ;;  %1090 = vperm.xlu0 %2625, %v2263_v45   ;;  %v522_v44 = vpack.c.bf16 %v521_v41, %v520_v40  ;;  %v529_v40 = vld [vmem:[%s2809_s3 + $0x30] sm:$0x1] }
  0x7c   : > { %1087 = vperm.xlu1 %2626, %v2262_v46   ;;  %1084 = vperm.xlu0 %2625, %v2261_v47  }
  0x80   : > { %1081 = vperm.xlu1 %2626, %v2260_v48   ;;  %1078 = vperm.xlu0 %2625, %v2259_v49  }
  0x84   : > { %1075 = vperm.xlu1 %2626, %v2258_v50   ;;  %1072 = vperm.xlu0 %2625, %v2257_v51  }
  0x88   : > { %1069 = vperm.xlu1 %2626, %v2256_v52   ;;  %1066 = vperm.xlu0 %2625, %v2255_v53  }
  0x8c   : > { %1063 = vperm.xlu1 %2626, %v2254_v54   ;;  %1060 = vperm.xlu0 %2625, %v2253_v55  }
  0x90   : > { %1057 = vperm.xlu1 %2626, %v2252_v56   ;;  %1054 = vperm.xlu0 %2625, %v2251_v57  }
  0x94   : > { %1502 = vperm.xlu1 %2626, %v2412_v58   ;;  %1499 = vperm.xlu0 %2625, %v2411_v59   ;;  %v2185_v59 = vld [vmem:[%s2807_s30 + $0x8] sm:$0xff] }
  0x98   : > { %1496 = vperm.xlu1 %2626, %v2410_v60   ;;  %1493 = vperm.xlu0 %2625, %v2409_v61   ;;  %v2186_v60 = vld [vmem:[%s2807_s30 + $0x28] sm:$0x1] }
  0x9c   : > { %1490 = vperm.xlu1 %2626, %v2408_v62   ;;  %1487 = vperm.xlu0 %2625, %v2407_v63   ;;  %v925_v63 = vpack.c.bf16 %v2186_v60, %v2185_v59 }
  0xa0   : > { %1484 = vperm.xlu1 %2626, %v2406_v0   ;;  %1481 = vperm.xlu0 %2625, %v2405_v1  }
  0xa4   : > { %1478 = vperm.xlu1 %2626, %v2404_v2   ;;  %1475 = vperm.xlu0 %2625, %v2403_v3  }
  0xa8   : > { %1472 = vperm.xlu1 %2626, %v2402_v5   ;;  %1469 = vperm.xlu0 %2625, %v2401_v6  }
  0xac   : > { %1466 = vperm.xlu1 %2626, %v2400_v8   ;;  %1463 = vperm.xlu0 %2625, %v2399_v9  }
  0xaf   : > { %v292_v16 = vpop.permute.xlu0 %291  ;;  %v286_v17 = vpop.permute.xlu1 %285 }
  0xb0   : > { %1460 = vperm.xlu1 %2626, %v2398_v12   ;;  %1457 = vperm.xlu0 %2625, %v2397_v13   ;;  %vm353_vm0 = vcmp.eq.s32.totalorder %v292_v16, %v2889_v19  ;;  %vm355_vm5 = vcmp.eq.s32.totalorder %v292_v16, %v2891_v20  ;;  %vm352_vm8 = vcmp.eq.s32.totalorder %v292_v16, %v2893_v21 }
  0xb1   : > { %vm345_vm9 = vcmp.eq.s32.totalorder %v286_v17, %v2889_v19  ;;  %vm354_vm12 = vcmp.eq.s32.totalorder %v292_v16, %v2895_v24  ;;  %vm347_vm13 = vcmp.eq.s32.totalorder %v286_v17, %v2891_v20  ;;  %v2332_v16 = vld [vmem:[%s2807_s30 + $0x30] sm:$0x1] }
  0xb3   : > { %v295_v22 = vpop.permute.xlu0 %294  ;;  %v289_v23 = vpop.permute.xlu1 %288 }
  0xb4   : > { %vm357_vm1 = vcmp.eq.s32.totalorder %v295_v22, %v2889_v19  ;;  %vm359_vm2 = vcmp.eq.s32.totalorder %v295_v22, %v2891_v20  ;;  %vm356_vm3 = vcmp.eq.s32.totalorder %v295_v22, %v2893_v21  ;;  %vm358_vm6 = vcmp.eq.s32.totalorder %v295_v22, %v2895_v24 }
  0xb5   : > { %vm2041_vm4 = vmpackc.low %vm357_vm1, %vm353_vm0  ;;  %vm349_vm10 = vcmp.eq.s32.totalorder %v289_v23, %v2889_v19  ;;  %vm351_vm14 = vcmp.eq.s32.totalorder %v289_v23, %v2891_v20  ;;  %vm344_vm0 = vcmp.eq.s32.totalorder %v286_v17, %v2893_v21  ;;  %vm348_vm1 = vcmp.eq.s32.totalorder %v289_v23, %v2893_v21 }
  0xb6   : > { %2042 = vmatprep.subr.msk.bf16.mxu0 %vm2041_vm4, %v2701_v25  ;;  %vm2073_vm7 = vmpackc.low %vm359_vm2, %vm355_vm5  ;;  %vm350_vm4 = vcmp.eq.s32.totalorder %v289_v23, %v2895_v24  ;;  %v1328_v22 = vpack.c.bf16 %v2332_v16, %v2331_v15 }
  0xb7   : > { %2074 = vmatprep.subr.msk.bf16.mxu1 %vm2073_vm7, %v2701_v25  ;;  %v283_v26 = vpop.permute.xlu1 %282  ;;  %v280_v27 = vpop.permute.xlu0 %279  ;;  %vm2043_vm11 = vmpackc.low %vm356_vm3, %vm352_vm8  ;;  %vm346_vm3 = vcmp.eq.s32.totalorder %v286_v17, %v2895_v24 }
  0xb8   : > { %2044 = vmatpush1.bf16.msk.msra.mxu0 %vm2043_vm11, %v2701_v25  ;;  %vm2075_vm15 = vmpackc.low %vm358_vm6, %vm354_vm12  ;;  %vm337_vm7 = vcmp.eq.s32.totalorder %v280_v27, %v2889_v19  ;;  %vm341_vm8 = vcmp.eq.s32.totalorder %v283_v26, %v2889_v19  ;;  %vm339_vm11 = vcmp.eq.s32.totalorder %v280_v27, %v2891_v20  ;;  %vm336_vm12 = vcmp.eq.s32.totalorder %v280_v27, %v2893_v21 }
  0xb9   : > { %2076 = vmatpush1.bf16.msk.msra.mxu1 %vm2075_vm15, %v2701_v25  ;;  %vm2045_vm2 = vmpackc.low %vm349_vm10, %vm345_vm9  ;;  %vm343_vm9 = vcmp.eq.s32.totalorder %v283_v26, %v2891_v20  ;;  %vm338_vm15 = vcmp.eq.s32.totalorder %v280_v27, %v2895_v24 }
  0xba   : > { %2046 = vmatprep.subr.msk.bf16.mxu0 %vm2045_vm2, %v2701_v25  ;;  %vm2077_vm5 = vmpackc.low %vm351_vm14, %vm347_vm13  ;;  %vm340_vm13 = vcmp.eq.s32.totalorder %v283_v26, %v2893_v21  ;;  %vm342_vm2 = vcmp.eq.s32.totalorder %v283_v26, %v2895_v24 }
  0xbb   : > { %2078 = vmatprep.subr.msk.bf16.mxu1 %vm2077_vm5, %v2701_v25  ;;  %v277_v28 = vpop.permute.xlu1 %276  ;;  %v274_v29 = vpop.permute.xlu0 %273  ;;  %vm2047_vm6 = vmpackc.low %vm348_vm1, %vm344_vm0 }
  0xbc   : > { %2048 = vmatpush1.bf16.msk.msra.mxu0 %vm2047_vm6, %v2701_v25  ;;  %vm2079_vm10 = vmpackc.low %vm350_vm4, %vm346_vm3  ;;  %vm329_vm1 = vcmp.eq.s32.totalorder %v274_v29, %v2889_v19  ;;  %vm333_vm5 = vcmp.eq.s32.totalorder %v277_v28, %v2889_v19  ;;  %vm331_vm4 = vcmp.eq.s32.totalorder %v274_v29, %v2891_v20  ;;  %vm328_vm6 = vcmp.eq.s32.totalorder %v274_v29, %v2893_v21 }
  0xbd   : > { %2080 = vmatpush1.bf16.msk.msra.mxu1 %vm2079_vm10, %v2701_v25  ;;  %vm2049_vm14 = vmpackc.low %vm341_vm8, %vm337_vm7  ;;  %vm335_vm7 = vcmp.eq.s32.totalorder %v277_v28, %v2891_v20  ;;  %vm330_vm10 = vcmp.eq.s32.totalorder %v274_v29, %v2895_v24 }
  0xbe   : > { %2050 = vmatprep.subr.msk.bf16.mxu0 %vm2049_vm14, %v2701_v25  ;;  %vm2081_vm0 = vmpackc.low %vm343_vm9, %vm339_vm11  ;;  %vm332_vm11 = vcmp.eq.s32.totalorder %v277_v28, %v2893_v21  ;;  %vm334_vm14 = vcmp.eq.s32.totalorder %v277_v28, %v2895_v24 }
  0xbf   : > { %2082 = vmatprep.subr.msk.bf16.mxu1 %vm2081_vm0, %v2701_v25  ;;  %v271_v30 = vpop.permute.xlu1 %270  ;;  %v268_v31 = vpop.permute.xlu0 %267  ;;  %vm2051_vm3 = vmpackc.low %vm340_vm13, %vm336_vm12 }
  0xc0   : > { %2052 = vmatpush1.bf16.msk.msra.mxu0 %vm2051_vm3, %v2701_v25  ;;  %vm2083_vm8 = vmpackc.low %vm342_vm2, %vm338_vm15  ;;  %vm321_vm13 = vcmp.eq.s32.totalorder %v268_v31, %v2889_v19  ;;  %vm325_vm0 = vcmp.eq.s32.totalorder %v271_v30, %v2889_v19  ;;  %vm323_vm2 = vcmp.eq.s32.totalorder %v268_v31, %v2891_v20  ;;  %vm320_vm3 = vcmp.eq.s32.totalorder %v268_v31, %v2893_v21 }
  0xc1   : > { %2084 = vmatpush1.bf16.msk.msra.mxu1 %vm2083_vm8, %v2701_v25  ;;  %vm2053_vm9 = vmpackc.low %vm333_vm5, %vm329_vm1  ;;  %vm327_vm1 = vcmp.eq.s32.totalorder %v271_v30, %v2891_v20  ;;  %vm322_vm8 = vcmp.eq.s32.totalorder %v268_v31, %v2895_v24 }
  0xc2   : > { %2054 = vmatprep.subr.msk.bf16.mxu0 %vm2053_vm9, %v2701_v25  ;;  %vm2085_vm12 = vmpackc.low %vm335_vm7, %vm331_vm4  ;;  %vm324_vm4 = vcmp.eq.s32.totalorder %v271_v30, %v2893_v21  ;;  %vm326_vm9 = vcmp.eq.s32.totalorder %v271_v30, %v2895_v24 }
  0xc3   : > { %2086 = vmatprep.subr.msk.bf16.mxu1 %vm2085_vm12, %v2701_v25  ;;  %v265_v32 = vpop.permute.xlu1 %264  ;;  %v262_v33 = vpop.permute.xlu0 %261  ;;  %vm2055_vm15 = vmpackc.low %vm332_vm11, %vm328_vm6 }
  0xc4   : > { %2056 = vmatpush1.bf16.msk.msra.mxu0 %vm2055_vm15, %v2701_v25  ;;  %vm2087_vm5 = vmpackc.low %vm334_vm14, %vm330_vm10  ;;  %vm313_vm11 = vcmp.eq.s32.totalorder %v262_v33, %v2889_v19  ;;  %vm317_vm12 = vcmp.eq.s32.totalorder %v265_v32, %v2889_v19  ;;  %vm315_vm14 = vcmp.eq.s32.totalorder %v262_v33, %v2891_v20  ;;  %vm312_vm15 = vcmp.eq.s32.totalorder %v262_v33, %v2893_v21 }
  0xc5   : > { %2088 = vmatpush1.bf16.msk.msra.mxu1 %vm2087_vm5, %v2701_v25  ;;  %vm2057_vm7 = vmpackc.low %vm325_vm0, %vm321_vm13  ;;  %vm319_vm13 = vcmp.eq.s32.totalorder %v265_v32, %v2891_v20  ;;  %vm314_vm5 = vcmp.eq.s32.totalorder %v262_v33, %v2895_v24 }
  0xc6   : > { %2058 = vmatprep.subr.msk.bf16.mxu0 %vm2057_vm7, %v2701_v25  ;;  %vm2089_vm6 = vmpackc.low %vm327_vm1, %vm323_vm2  ;;  %vm316_vm2 = vcmp.eq.s32.totalorder %v265_v32, %v2893_v21  ;;  %vm318_vm7 = vcmp.eq.s32.totalorder %v265_v32, %v2895_v24 }
  0xc7   : > { %2090 = vmatprep.subr.msk.bf16.mxu1 %vm2089_vm6, %v2701_v25  ;;  %v259_v34 = vpop.permute.xlu1 %258  ;;  %v256_v35 = vpop.permute.xlu0 %255  ;;  %vm2059_vm10 = vmpackc.low %vm324_vm4, %vm320_vm3 }
  0xc8   : > { %2060 = vmatpush1.bf16.msk.msra.mxu0 %vm2059_vm10, %v2701_v25  ;;  %vm2091_vm0 = vmpackc.low %vm326_vm9, %vm322_vm8  ;;  %vm305_vm4 = vcmp.eq.s32.totalorder %v256_v35, %v2889_v19  ;;  %vm309_vm6 = vcmp.eq.s32.totalorder %v259_v34, %v2889_v19  ;;  %vm307_vm9 = vcmp.eq.s32.totalorder %v256_v35, %v2891_v20  ;;  %vm304_vm10 = vcmp.eq.s32.totalorder %v256_v35, %v2893_v21 }
  0xc9   : > { %2092 = vmatpush1.bf16.msk.msra.mxu1 %vm2091_vm0, %v2701_v25  ;;  %vm2061_vm1 = vmpackc.low %vm317_vm12, %vm313_vm11  ;;  %vm311_vm11 = vcmp.eq.s32.totalorder %v259_v34, %v2891_v20  ;;  %vm306_vm0 = vcmp.eq.s32.totalorder %v256_v35, %v2895_v24 }
  0xca   : > { %2062 = vmatprep.subr.msk.bf16.mxu0 %vm2061_vm1, %v2701_v25  ;;  %vm2093_vm3 = vmpackc.low %vm319_vm13, %vm315_vm14  ;;  %vm308_vm14 = vcmp.eq.s32.totalorder %v259_v34, %v2893_v21  ;;  %vm310_vm1 = vcmp.eq.s32.totalorder %v259_v34, %v2895_v24 }
  0xcb   : > { %2094 = vmatprep.subr.msk.bf16.mxu1 %vm2093_vm3, %v2701_v25  ;;  %v253_v36 = vpop.permute.xlu1 %252  ;;  %v250_v37 = vpop.permute.xlu0 %249  ;;  %vm2063_vm8 = vmpackc.low %vm316_vm2, %vm312_vm15 }
  0xcc   : > { %2064 = vmatpush1.bf16.msk.msra.mxu0 %vm2063_vm8, %v2701_v25  ;;  %vm2095_vm12 = vmpackc.low %vm318_vm7, %vm314_vm5  ;;  %vm297_vm2 = vcmp.eq.s32.totalorder %v250_v37, %v2889_v19  ;;  %vm301_vm5 = vcmp.eq.s32.totalorder %v253_v36, %v2889_v19  ;;  %vm299_vm3 = vcmp.eq.s32.totalorder %v250_v37, %v2891_v20  ;;  %vm296_vm8 = vcmp.eq.s32.totalorder %v250_v37, %v2893_v21 }
  0xcd   : > { %2096 = vmatpush1.bf16.msk.msra.mxu1 %vm2095_vm12, %v2701_v25  ;;  %vm2065_vm13 = vmpackc.low %vm309_vm6, %vm305_vm4  ;;  %vm303_vm4 = vcmp.eq.s32.totalorder %v253_v36, %v2891_v20  ;;  %vm298_vm12 = vcmp.eq.s32.totalorder %v250_v37, %v2895_v24  ;;  %v2478_v37 = vld [vmem:[%s2807_s30 + $0x38] sm:$0x1] }
  0xce   : > { %2066 = vmatprep.subr.msk.bf16.mxu0 %vm2065_vm13, %v2701_v25  ;;  %vm2097_vm15 = vmpackc.low %vm311_vm11, %vm307_vm9  ;;  %vm300_vm9 = vcmp.eq.s32.totalorder %v253_v36, %v2893_v21 }
  0xcf   : > { %2098 = vmatprep.subr.msk.bf16.mxu1 %vm2097_vm15, %v2701_v25  ;;  %v697_v38 = vpop.permute.xlu1 %696  ;;  %v694_v39 = vpop.permute.xlu0 %693  ;;  %vm2067_vm7 = vmpackc.low %vm308_vm14, %vm304_vm10  ;;  %vm302_vm10 = vcmp.eq.s32.totalorder %v253_v36, %v2895_v24  ;;  %v2477_v36 = vld [vmem:[%s2807_s30 + $0x18] sm:$0xff] }
  0xd0   : > { %2068 = vmatpush1.bf16.msk.msra.mxu0 %vm2067_vm7, %v2701_v25  ;;  %vm2099_vm6 = vmpackc.low %vm310_vm1, %vm306_vm0  ;;  %vm755_vm13 = vcmp.eq.s32.totalorder %v694_v39, %v2889_v19  ;;  %vm759_vm0 = vcmp.eq.s32.totalorder %v697_v38, %v2889_v19  ;;  %vm757_vm15 = vcmp.eq.s32.totalorder %v694_v39, %v2891_v20  ;;  %vm754_vm7 = vcmp.eq.s32.totalorder %v694_v39, %v2893_v21 }
  0xd1   : > { %2100 = vmatpush1.bf16.msk.msra.mxu1 %vm2099_vm6, %v2701_v25  ;;  %vm2069_vm11 = vmpackc.low %vm301_vm5, %vm297_vm2  ;;  %vm761_vm2 = vcmp.eq.s32.totalorder %v697_v38, %v2891_v20  ;;  %vm758_vm5 = vcmp.eq.s32.totalorder %v697_v38, %v2893_v21  ;;  %vm756_vm6 = vcmp.eq.s32.totalorder %v694_v39, %v2895_v24 }
  0xd2   : > { %2070 = vmatprep.subr.msk.bf16.mxu0 %vm2069_vm11, %v2701_v25  ;;  %vm2101_vm14 = vmpackc.low %vm303_vm4, %vm299_vm3  ;;  %vm760_vm4 = vcmp.eq.s32.totalorder %v697_v38, %v2895_v24  ;;  %v527_v38 = vld [vmem:[%s2809_s3 + $0x20] sm:$0x1] }
  0xd3   : > { %2102 = vmatprep.subr.msk.bf16.mxu1 %vm2101_vm14, %v2701_v25  ;;  %v691_v42 = vpop.permute.xlu1 %690  ;;  %v688_v43 = vpop.permute.xlu0 %687  ;;  %vm2071_vm1 = vmpackc.low %vm300_vm9, %vm296_vm8 }
  0xd4   : > { %2072 = vmatpush1.bf16.msk.msra.mxu0 %vm2071_vm1, %v2701_v25  ;;  %vm2103_vm3 = vmpackc.low %vm302_vm10, %vm298_vm12  ;;  %vm747_vm11 = vcmp.eq.s32.totalorder %v688_v43, %v2889_v19  ;;  %vm751_vm14 = vcmp.eq.s32.totalorder %v691_v42, %v2889_v19  ;;  %vm749_vm10 = vcmp.eq.s32.totalorder %v688_v43, %v2891_v20  ;;  %vm746_vm1 = vcmp.eq.s32.totalorder %v688_v43, %v2893_v21 }
  0xd5   : > { %2104 = vmatpush1.bf16.msk.msra.mxu1 %vm2103_vm3, %v2701_v25  ;;  %vm2187_vm8 = vmpackc.low %vm759_vm0, %vm755_vm13  ;;  %vm753_vm13 = vcmp.eq.s32.totalorder %v691_v42, %v2891_v20  ;;  %vm750_vm0 = vcmp.eq.s32.totalorder %v691_v42, %v2893_v21  ;;  %vm748_vm3 = vcmp.eq.s32.totalorder %v688_v43, %v2895_v24 }
  0xd6   : > { %2188 = vmatprep.subr.msk.bf16.mxu0 %vm2187_vm8, %v2701_v25  ;;  %vm2219_vm9 = vmpackc.low %vm761_vm2, %vm757_vm15  ;;  %vm752_vm2 = vcmp.eq.s32.totalorder %v691_v42, %v2895_v24  ;;  %v528_v42 = vld [vmem:[%s2809_s3 + $0x28] sm:$0x1] }
  0xd7   : > { %2220 = vmatprep.subr.msk.bf16.mxu1 %vm2219_vm9, %v2701_v25  ;;  %564 = vmatmul.mubr.bf16.vlgmr.msra.gmra.mxu0 %v522_v44  ;;  %v685_v45 = vpop.permute.xlu1 %684  ;;  %v682_v46 = vpop.permute.xlu0 %681  ;;  %vm2189_vm12 = vmpackc.low %vm758_vm5, %vm754_vm7 }
  0xd8   : > { %607 = vmatmul.mubr.bf16.vlgmr.msra.gmra.mxu1 %v522_v44  ;;  %vm2221_vm15 = vmpackc.low %vm760_vm4, %vm756_vm6  ;;  %2190 = vmatpush1.bf16.msk.msra.mxu0 %vm2189_vm12, %v2701_v25  ;;  %vm739_vm8 = vcmp.eq.s32.totalorder %v682_v46, %v2889_v19  ;;  %vm743_vm4 = vcmp.eq.s32.totalorder %v685_v45, %v2889_v19  ;;  %vm741_vm9 = vcmp.eq.s32.totalorder %v682_v46, %v2891_v20  ;;  %v530_v44 = vld [vmem:[%s2809_s3 + $0x38] sm:$0x1] }
  0xd9   : > { %2222 = vmatpush1.bf16.msk.msra.mxu1 %vm2221_vm15, %v2701_v25  ;;  %vm2191_vm5 = vmpackc.low %vm751_vm14, %vm747_vm11  ;;  %966 = vmatprep.mubr.bf16.mxu0 %v2700_v11  ;;  %vm745_vm11 = vcmp.eq.s32.totalorder %v685_v45, %v2891_v20  ;;  %vm742_vm14 = vcmp.eq.s32.totalorder %v685_v45, %v2893_v21  ;;  %vm738_vm12 = vcmp.eq.s32.totalorder %v682_v46, %v2893_v21 }
  0xda   : > { %2192 = vmatprep.subr.msk.bf16.mxu0 %vm2191_vm5, %v2701_v25  ;;  %vm2223_vm7 = vmpackc.low %vm753_vm13, %vm749_vm10  ;;  %1009 = vmatprep.mubr.bf16.mxu1 %v2700_v11  ;;  %vm744_vm13 = vcmp.eq.s32.totalorder %v685_v45, %v2895_v24  ;;  %vm740_vm15 = vcmp.eq.s32.totalorder %v682_v46, %v2895_v24 }
  0xdb   : > { %2224 = vmatprep.subr.msk.bf16.mxu1 %vm2223_vm7, %v2701_v25  ;;  %v679_v47 = vpop.permute.xlu1 %678  ;;  %v676_v48 = vpop.permute.xlu0 %675  ;;  %vm2193_vm6 = vmpackc.low %vm750_vm0, %vm746_vm1 }
  0xdc   : > { %vm2225_vm10 = vmpackc.low %vm752_vm2, %vm748_vm3  ;;  %2194 = vmatpush1.bf16.msk.msra.mxu0 %vm2193_vm6, %v2701_v25  ;;  %vm731_vm5 = vcmp.eq.s32.totalorder %v676_v48, %v2889_v19  ;;  %vm735_vm2 = vcmp.eq.s32.totalorder %v679_v47, %v2889_v19  ;;  %vm733_vm7 = vcmp.eq.s32.totalorder %v676_v48, %v2891_v20  ;;  %vm737_vm6 = vcmp.eq.s32.totalorder %v679_v47, %v2891_v20 }
  0xdd   : > { %2226 = vmatpush1.bf16.msk.msra.mxu1 %vm2225_vm10, %v2701_v25  ;;  %vm2195_vm0 = vmpackc.low %vm743_vm4, %vm739_vm8  ;;  %vm734_vm8 = vcmp.eq.s32.totalorder %v679_v47, %v2893_v21  ;;  %vm730_vm4 = vcmp.eq.s32.totalorder %v676_v48, %v2893_v21  ;;  %vm732_vm10 = vcmp.eq.s32.totalorder %v676_v48, %v2895_v24 }
  0xde   : > { %2196 = vmatprep.subr.msk.bf16.mxu0 %vm2195_vm0, %v2701_v25  ;;  %vm2227_vm1 = vmpackc.low %vm745_vm11, %vm741_vm9  ;;  %vm736_vm11 = vcmp.eq.s32.totalorder %v679_v47, %v2895_v24 }
  0xdf   : > { %2228 = vmatprep.subr.msk.bf16.mxu1 %vm2227_vm1, %v2701_v25  ;;  %v673_v49 = vpop.permute.xlu1 %672  ;;  %v670_v50 = vpop.permute.xlu0 %669  ;;  %vm2197_vm3 = vmpackc.low %vm742_vm14, %vm738_vm12 }
  0xe0   : > { %vm2229_vm9 = vmpackc.low %vm744_vm13, %vm740_vm15  ;;  %2198 = vmatpush1.bf16.msk.msra.mxu0 %vm2197_vm3, %v2701_v25  ;;  %vm723_vm0 = vcmp.eq.s32.totalorder %v670_v50, %v2889_v19  ;;  %vm727_vm1 = vcmp.eq.s32.totalorder %v673_v49, %v2889_v19  ;;  %vm725_vm15 = vcmp.eq.s32.totalorder %v670_v50, %v2891_v20  ;;  %vm729_vm3 = vcmp.eq.s32.totalorder %v673_v49, %v2891_v20 }
  0xe1   : > { %2230 = vmatpush1.bf16.msk.msra.mxu1 %vm2229_vm9, %v2701_v25  ;;  %vm2199_vm14 = vmpackc.low %vm735_vm2, %vm731_vm5  ;;  %vm726_vm5 = vcmp.eq.s32.totalorder %v673_v49, %v2893_v21  ;;  %vm722_vm2 = vcmp.eq.s32.totalorder %v670_v50, %v2893_v21  ;;  %vm724_vm9 = vcmp.eq.s32.totalorder %v670_v50, %v2895_v24 }
  0xe2   : > { %2200 = vmatprep.subr.msk.bf16.mxu0 %vm2199_vm14, %v2701_v25  ;;  %vm2231_vm12 = vmpackc.low %vm737_vm6, %vm733_vm7  ;;  %vm728_vm6 = vcmp.eq.s32.totalorder %v673_v49, %v2895_v24 }
  0xe3   : > { %2232 = vmatprep.subr.msk.bf16.mxu1 %vm2231_vm12, %v2701_v25  ;;  %v667_v51 = vpop.permute.xlu1 %666  ;;  %v664_v52 = vpop.permute.xlu0 %663  ;;  %vm2201_vm13 = vmpackc.low %vm734_vm8, %vm730_vm4 }
  0xe4   : > { %vm2233_vm7 = vmpackc.low %vm736_vm11, %vm732_vm10  ;;  %2202 = vmatpush1.bf16.msk.msra.mxu0 %vm2201_vm13, %v2701_v25  ;;  %vm715_vm14 = vcmp.eq.s32.totalorder %v664_v52, %v2889_v19  ;;  %vm719_vm12 = vcmp.eq.s32.totalorder %v667_v51, %v2889_v19  ;;  %vm717_vm10 = vcmp.eq.s32.totalorder %v664_v52, %v2891_v20  ;;  %vm721_vm13 = vcmp.eq.s32.totalorder %v667_v51, %v2891_v20 }
  0xe5   : > { %2234 = vmatpush1.bf16.msk.msra.mxu1 %vm2233_vm7, %v2701_v25  ;;  %vm2203_vm8 = vmpackc.low %vm727_vm1, %vm723_vm0  ;;  %vm718_vm0 = vcmp.eq.s32.totalorder %v667_v51, %v2893_v21  ;;  %vm714_vm1 = vcmp.eq.s32.totalorder %v664_v52, %v2893_v21  ;;  %vm716_vm7 = vcmp.eq.s32.totalorder %v664_v52, %v2895_v24 }
  0xe6   : > { %2204 = vmatprep.subr.msk.bf16.mxu0 %vm2203_vm8, %v2701_v25  ;;  %vm2235_vm4 = vmpackc.low %vm729_vm3, %vm725_vm15  ;;  %vm720_vm3 = vcmp.eq.s32.totalorder %v667_v51, %v2895_v24 }
  0xe7   : > { %2236 = vmatprep.subr.msk.bf16.mxu1 %vm2235_vm4, %v2701_v25  ;;  %v661_v53 = vpop.permute.xlu1 %660  ;;  %v658_v54 = vpop.permute.xlu0 %657  ;;  %vm2205_vm11 = vmpackc.low %vm726_vm5, %vm722_vm2 }
  0xe8   : > { %vm2237_vm15 = vmpackc.low %vm728_vm6, %vm724_vm9  ;;  %2206 = vmatpush1.bf16.msk.msra.mxu0 %vm2205_vm11, %v2701_v25  ;;  %vm707_vm8 = vcmp.eq.s32.totalorder %v658_v54, %v2889_v19  ;;  %vm711_vm4 = vcmp.eq.s32.totalorder %v661_v53, %v2889_v19  ;;  %vm709_vm9 = vcmp.eq.s32.totalorder %v658_v54, %v2891_v20  ;;  %vm713_vm11 = vcmp.eq.s32.totalorder %v661_v53, %v2891_v20 }
  0xe9   : > { %2238 = vmatpush1.bf16.msk.msra.mxu1 %vm2237_vm15, %v2701_v25  ;;  %vm2207_vm5 = vmpackc.low %vm719_vm12, %vm715_vm14  ;;  %vm710_vm14 = vcmp.eq.s32.totalorder %v661_v53, %v2893_v21  ;;  %vm706_vm12 = vcmp.eq.s32.totalorder %v658_v54, %v2893_v21  ;;  %vm708_vm15 = vcmp.eq.s32.totalorder %v658_v54, %v2895_v24 }
  0xea   : > { %2208 = vmatprep.subr.msk.bf16.mxu0 %vm2207_vm5, %v2701_v25  ;;  %vm2239_vm2 = vmpackc.low %vm721_vm13, %vm717_vm10  ;;  %vm712_vm13 = vcmp.eq.s32.totalorder %v661_v53, %v2895_v24 }
  0xeb   : > { %2240 = vmatprep.subr.msk.bf16.mxu1 %vm2239_vm2, %v2701_v25  ;;  %v655_v55 = vpop.permute.xlu1 %654  ;;  %v652_v56 = vpop.permute.xlu0 %651  ;;  %vm2209_vm6 = vmpackc.low %vm718_vm0, %vm714_vm1 }
  0xec   : > { %vm2241_vm10 = vmpackc.low %vm720_vm3, %vm716_vm7  ;;  %2210 = vmatpush1.bf16.msk.msra.mxu0 %vm2209_vm6, %v2701_v25  ;;  %vm699_vm5 = vcmp.eq.s32.totalorder %v652_v56, %v2889_v19  ;;  %vm703_vm2 = vcmp.eq.s32.totalorder %v655_v55, %v2889_v19  ;;  %vm701_vm7 = vcmp.eq.s32.totalorder %v652_v56, %v2891_v20  ;;  %vm698_vm6 = vcmp.eq.s32.totalorder %v652_v56, %v2893_v21 }
  0xed   : > { %2242 = vmatpush1.bf16.msk.msra.mxu1 %vm2241_vm10, %v2701_v25  ;;  %vm2211_vm0 = vmpackc.low %vm711_vm4, %vm707_vm8  ;;  %vm705_vm8 = vcmp.eq.s32.totalorder %v655_v55, %v2891_v20  ;;  %vm702_vm4 = vcmp.eq.s32.totalorder %v655_v55, %v2893_v21  ;;  %vm700_vm10 = vcmp.eq.s32.totalorder %v652_v56, %v2895_v24 }
  0xee   : > { %2212 = vmatprep.subr.msk.bf16.mxu0 %vm2211_vm0, %v2701_v25  ;;  %vm2243_vm1 = vmpackc.low %vm713_vm11, %vm709_vm9  ;;  %vm704_vm11 = vcmp.eq.s32.totalorder %v655_v55, %v2895_v24 }
  0xef   : > { %2244 = vmatprep.subr.msk.bf16.mxu1 %vm2243_vm1, %v2701_v25  ;;  %v1100_v57 = vpop.permute.xlu1 %1099  ;;  %v1097_v58 = vpop.permute.xlu0 %1096  ;;  %vm2213_vm3 = vmpackc.low %vm710_vm14, %vm706_vm12 }
  0xf0   : > { %vm2245_vm9 = vmpackc.low %vm712_vm13, %vm708_vm15  ;;  %2214 = vmatpush1.bf16.msk.msra.mxu0 %vm2213_vm3, %v2701_v25  ;;  %vm1158_vm0 = vcmp.eq.s32.totalorder %v1097_v58, %v2889_v19  ;;  %vm1162_vm13 = vcmp.eq.s32.totalorder %v1100_v57, %v2889_v19  ;;  %vm1160_vm1 = vcmp.eq.s32.totalorder %v1097_v58, %v2891_v20  ;;  %vm1157_vm3 = vcmp.eq.s32.totalorder %v1097_v58, %v2893_v21 }
  0xf1   : > { %2246 = vmatpush1.bf16.msk.msra.mxu1 %vm2245_vm9, %v2701_v25  ;;  %vm2215_vm14 = vmpackc.low %vm703_vm2, %vm699_vm5  ;;  %vm1164_vm5 = vcmp.eq.s32.totalorder %v1100_v57, %v2891_v20  ;;  %vm1161_vm2 = vcmp.eq.s32.totalorder %v1100_v57, %v2893_v21  ;;  %vm1159_vm9 = vcmp.eq.s32.totalorder %v1097_v58, %v2895_v24 }
  0xf2   : > { %2216 = vmatprep.subr.msk.bf16.mxu0 %vm2215_vm14, %v2701_v25  ;;  %vm2247_vm12 = vmpackc.low %vm705_vm8, %vm701_vm7  ;;  %vm1163_vm8 = vcmp.eq.s32.totalorder %v1100_v57, %v2895_v24 }
  0xf3   : > { %2248 = vmatprep.subr.msk.bf16.mxu1 %vm2247_vm12, %v2701_v25  ;;  %v1094_v61 = vpop.permute.xlu1 %1093  ;;  %v1091_v62 = vpop.permute.xlu0 %1090  ;;  %vm2217_vm15 = vmpackc.low %vm702_vm4, %vm698_vm6 }
  0xf4   : > { %vm2249_vm7 = vmpackc.low %vm704_vm11, %vm700_vm10  ;;  %2218 = vmatpush1.bf16.msk.msra.mxu0 %vm2217_vm15, %v2701_v25  ;;  %vm1150_vm14 = vcmp.eq.s32.totalorder %v1091_v62, %v2889_v19  ;;  %vm1154_vm11 = vcmp.eq.s32.totalorder %v1094_v61, %v2889_v19  ;;  %vm1152_vm12 = vcmp.eq.s32.totalorder %v1091_v62, %v2891_v20  ;;  %vm1149_vm15 = vcmp.eq.s32.totalorder %v1091_v62, %v2893_v21 }
  0xf5   : > { %2250 = vmatpush1.bf16.msk.msra.mxu1 %vm2249_vm7, %v2701_v25  ;;  %vm2333_vm4 = vmpackc.low %vm1162_vm13, %vm1158_vm0  ;;  %vm1156_vm0 = vcmp.eq.s32.totalorder %v1094_v61, %v2891_v20  ;;  %vm1153_vm13 = vcmp.eq.s32.totalorder %v1094_v61, %v2893_v21  ;;  %vm1151_vm7 = vcmp.eq.s32.totalorder %v1091_v62, %v2895_v24 }
  0xf6   : > { %2334 = vmatprep.subr.msk.bf16.mxu0 %vm2333_vm4, %v2701_v25  ;;  %vm2365_vm6 = vmpackc.low %vm1164_vm5, %vm1160_vm1  ;;  %vm1155_vm5 = vcmp.eq.s32.totalorder %v1094_v61, %v2895_v24 }
  0xf7   : > { %2366 = vmatprep.subr.msk.bf16.mxu1 %vm2365_vm6, %v2701_v25  ;;  %v1088_v0 = vpop.permute.xlu1 %1087  ;;  %v1085_v1 = vpop.permute.xlu0 %1084  ;;  %vm2335_vm10 = vmpackc.low %vm1161_vm2, %vm1157_vm3  ;;  %967 = vmatmul.mubr.bf16.vlgmr.msra.gmra.mxu0 %v925_v63 }
  0xf8   : > { %1010 = vmatmul.mubr.bf16.vlgmr.msra.gmra.mxu1 %v925_v63  ;;  %vm2367_vm1 = vmpackc.low %vm1163_vm8, %vm1159_vm9  ;;  %2336 = vmatpush1.bf16.msk.msra.mxu0 %vm2335_vm10, %v2701_v25  ;;  %vm1142_vm4 = vcmp.eq.s32.totalorder %v1085_v1, %v2889_v19  ;;  %vm1146_vm8 = vcmp.eq.s32.totalorder %v1088_v0, %v2889_v19  ;;  %vm1144_vm6 = vcmp.eq.s32.totalorder %v1085_v1, %v2891_v20 }
  0xf9   : > { %2368 = vmatpush1.bf16.msk.msra.mxu1 %vm2367_vm1, %v2701_v25  ;;  %vm2337_vm2 = vmpackc.low %vm1154_vm11, %vm1150_vm14  ;;  %1369 = vmatprep.mubr.bf16.mxu0 %v2700_v11  ;;  %vm1148_vm14 = vcmp.eq.s32.totalorder %v1088_v0, %v2891_v20  ;;  %vm1145_vm11 = vcmp.eq.s32.totalorder %v1088_v0, %v2893_v21  ;;  %vm1141_vm10 = vcmp.eq.s32.totalorder %v1085_v1, %v2893_v21 }
  0xfa   : > { %2338 = vmatprep.subr.msk.bf16.mxu0 %vm2337_vm2, %v2701_v25  ;;  %vm2369_vm3 = vmpackc.low %vm1156_vm0, %vm1152_vm12  ;;  %1412 = vmatprep.mubr.bf16.mxu1 %v2700_v11  ;;  %vm1147_vm0 = vcmp.eq.s32.totalorder %v1088_v0, %v2895_v24  ;;  %vm1143_vm1 = vcmp.eq.s32.totalorder %v1085_v1, %v2895_v24 }
  0xfb   : > { %2370 = vmatprep.subr.msk.bf16.mxu1 %vm2369_vm3, %v2701_v25  ;;  %v1082_v2 = vpop.permute.xlu1 %1081  ;;  %v1079_v3 = vpop.permute.xlu0 %1078  ;;  %vm2339_vm9 = vmpackc.low %vm1153_vm13, %vm1149_vm15 }
  0xfc   : > { %vm2371_vm12 = vmpackc.low %vm1155_vm5, %vm1151_vm7  ;;  %2340 = vmatpush1.bf16.msk.msra.mxu0 %vm2339_vm9, %v2701_v25  ;;  %vm1134_vm2 = vcmp.eq.s32.totalorder %v1079_v3, %v2889_v19  ;;  %vm1138_vm5 = vcmp.eq.s32.totalorder %v1082_v2, %v2889_v19  ;;  %vm1136_vm3 = vcmp.eq.s32.totalorder %v1079_v3, %v2891_v20  ;;  %vm1140_vm9 = vcmp.eq.s32.totalorder %v1082_v2, %v2891_v20 }
  0xfd   : > { %2372 = vmatpush1.bf16.msk.msra.mxu1 %vm2371_vm12, %v2701_v25  ;;  %vm2341_vm13 = vmpackc.low %vm1146_vm8, %vm1142_vm4  ;;  %vm1137_vm4 = vcmp.eq.s32.totalorder %v1082_v2, %v2893_v21  ;;  %vm1133_vm8 = vcmp.eq.s32.totalorder %v1079_v3, %v2893_v21  ;;  %vm1135_vm12 = vcmp.eq.s32.totalorder %v1079_v3, %v2895_v24 }
  0xfe   : > { %2342 = vmatprep.subr.msk.bf16.mxu0 %vm2341_vm13, %v2701_v25  ;;  %vm2373_vm15 = vmpackc.low %vm1148_vm14, %vm1144_vm6  ;;  %vm1139_vm14 = vcmp.eq.s32.totalorder %v1082_v2, %v2895_v24 }
  0xff   : > { %2374 = vmatprep.subr.msk.bf16.mxu1 %vm2373_vm15, %v2701_v25  ;;  %v1076_v4 = vpop.permute.xlu1 %1075  ;;  %v1073_v5 = vpop.permute.xlu0 %1072  ;;  %vm2343_vm7 = vmpackc.low %vm1145_vm11, %vm1141_vm10 }
 0x100   : > { %vm2375_vm6 = vmpackc.low %vm1147_vm0, %vm1143_vm1  ;;  %2344 = vmatpush1.bf16.msk.msra.mxu0 %vm2343_vm7, %v2701_v25  ;;  %vm1126_vm13 = vcmp.eq.s32.totalorder %v1073_v5, %v2889_v19  ;;  %vm1130_vm15 = vcmp.eq.s32.totalorder %v1076_v4, %v2889_v19  ;;  %vm1128_vm1 = vcmp.eq.s32.totalorder %v1073_v5, %v2891_v20  ;;  %vm1132_vm7 = vcmp.eq.s32.totalorder %v1076_v4, %v2891_v20 }
 0x101   : > { %2376 = vmatpush1.bf16.msk.msra.mxu1 %vm2375_vm6, %v2701_v25  ;;  %vm2345_vm11 = vmpackc.low %vm1138_vm5, %vm1134_vm2  ;;  %vm1129_vm2 = vcmp.eq.s32.totalorder %v1076_v4, %v2893_v21  ;;  %vm1125_vm5 = vcmp.eq.s32.totalorder %v1073_v5, %v2893_v21  ;;  %vm1127_vm6 = vcmp.eq.s32.totalorder %v1073_v5, %v2895_v24 }
 0x102   : > { %2346 = vmatprep.subr.msk.bf16.mxu0 %vm2345_vm11, %v2701_v25  ;;  %vm2377_vm10 = vmpackc.low %vm1140_vm9, %vm1136_vm3  ;;  %vm1131_vm9 = vcmp.eq.s32.totalorder %v1076_v4, %v2895_v24 }
 0x103   : > { %2378 = vmatprep.subr.msk.bf16.mxu1 %vm2377_vm10, %v2701_v25  ;;  %v1070_v6 = vpop.permute.xlu1 %1069  ;;  %v1067_v7 = vpop.permute.xlu0 %1066  ;;  %vm2347_vm0 = vmpackc.low %vm1137_vm4, %vm1133_vm8 }
 0x104   : > { %vm2379_vm3 = vmpackc.low %vm1139_vm14, %vm1135_vm12  ;;  %2348 = vmatpush1.bf16.msk.msra.mxu0 %vm2347_vm0, %v2701_v25  ;;  %vm1118_vm11 = vcmp.eq.s32.totalorder %v1067_v7, %v2889_v19  ;;  %vm1122_vm10 = vcmp.eq.s32.totalorder %v1070_v6, %v2889_v19  ;;  %vm1120_vm12 = vcmp.eq.s32.totalorder %v1067_v7, %v2891_v20  ;;  %vm1124_vm0 = vcmp.eq.s32.totalorder %v1070_v6, %v2891_v20 }
 0x105   : > { %2380 = vmatpush1.bf16.msk.msra.mxu1 %vm2379_vm3, %v2701_v25  ;;  %vm2349_vm4 = vmpackc.low %vm1130_vm15, %vm1126_vm13  ;;  %vm1121_vm13 = vcmp.eq.s32.totalorder %v1070_v6, %v2893_v21  ;;  %vm1117_vm15 = vcmp.eq.s32.totalorder %v1067_v7, %v2893_v21  ;;  %vm1119_vm3 = vcmp.eq.s32.totalorder %v1067_v7, %v2895_v24 }
 0x106   : > { %2350 = vmatprep.subr.msk.bf16.mxu0 %vm2349_vm4, %v2701_v25  ;;  %vm2381_vm8 = vmpackc.low %vm1132_vm7, %vm1128_vm1  ;;  %vm1123_vm7 = vcmp.eq.s32.totalorder %v1070_v6, %v2895_v24 }
 0x107   : > { %2382 = vmatprep.subr.msk.bf16.mxu1 %vm2381_vm8, %v2701_v25  ;;  %v1064_v8 = vpop.permute.xlu1 %1063  ;;  %v1061_v9 = vpop.permute.xlu0 %1060  ;;  %vm2351_vm14 = vmpackc.low %vm1129_vm2, %vm1125_vm5 }
 0x108   : > { %vm2383_vm1 = vmpackc.low %vm1131_vm9, %vm1127_vm6  ;;  %2352 = vmatpush1.bf16.msk.msra.mxu0 %vm2351_vm14, %v2701_v25  ;;  %vm1110_vm4 = vcmp.eq.s32.totalorder %v1061_v9, %v2889_v19  ;;  %vm1114_vm8 = vcmp.eq.s32.totalorder %v1064_v8, %v2889_v19  ;;  %vm1112_vm6 = vcmp.eq.s32.totalorder %v1061_v9, %v2891_v20  ;;  %vm1116_vm14 = vcmp.eq.s32.totalorder %v1064_v8, %v2891_v20 }
 0x109   : > { %2384 = vmatpush1.bf16.msk.msra.mxu1 %vm2383_vm1, %v2701_v25  ;;  %vm2353_vm2 = vmpackc.low %vm1122_vm10, %vm1118_vm11  ;;  %vm1113_vm11 = vcmp.eq.s32.totalorder %v1064_v8, %v2893_v21  ;;  %vm1109_vm10 = vcmp.eq.s32.totalorder %v1061_v9, %v2893_v21  ;;  %vm1111_vm1 = vcmp.eq.s32.totalorder %v1061_v9, %v2895_v24 }
 0x10a   : > { %2354 = vmatprep.subr.msk.bf16.mxu0 %vm2353_vm2, %v2701_v25  ;;  %vm2385_vm5 = vmpackc.low %vm1124_vm0, %vm1120_vm12  ;;  %vm1115_vm0 = vcmp.eq.s32.totalorder %v1064_v8, %v2895_v24 }
 0x10b   : > { %2386 = vmatprep.subr.msk.bf16.mxu1 %vm2385_vm5, %v2701_v25  ;;  %v1058_v10 = vpop.permute.xlu1 %1057  ;;  %v1055_v12 = vpop.permute.xlu0 %1054  ;;  %vm2355_vm9 = vmpackc.low %vm1121_vm13, %vm1117_vm15 }
 0x10c   : > { %vm2387_vm12 = vmpackc.low %vm1123_vm7, %vm1119_vm3  ;;  %2356 = vmatpush1.bf16.msk.msra.mxu0 %vm2355_vm9, %v2701_v25  ;;  %vm1102_vm2 = vcmp.eq.s32.totalorder %v1055_v12, %v2889_v19  ;;  %vm1106_vm5 = vcmp.eq.s32.totalorder %v1058_v10, %v2889_v19  ;;  %vm1104_vm3 = vcmp.eq.s32.totalorder %v1055_v12, %v2891_v20  ;;  %vm1101_vm9 = vcmp.eq.s32.totalorder %v1055_v12, %v2893_v21 }
 0x10d   : > { %2388 = vmatpush1.bf16.msk.msra.mxu1 %vm2387_vm12, %v2701_v25  ;;  %vm2357_vm13 = vmpackc.low %vm1114_vm8, %vm1110_vm4  ;;  %vm1108_vm4 = vcmp.eq.s32.totalorder %v1058_v10, %v2891_v20  ;;  %vm1105_vm8 = vcmp.eq.s32.totalorder %v1058_v10, %v2893_v21  ;;  %vm1103_vm12 = vcmp.eq.s32.totalorder %v1055_v12, %v2895_v24 }
 0x10e   : > { %2358 = vmatprep.subr.msk.bf16.mxu0 %vm2357_vm13, %v2701_v25  ;;  %vm2389_vm15 = vmpackc.low %vm1116_vm14, %vm1112_vm6  ;;  %vm1107_vm14 = vcmp.eq.s32.totalorder %v1058_v10, %v2895_v24 }
 0x10f   : > { %2390 = vmatprep.subr.msk.bf16.mxu1 %vm2389_vm15, %v2701_v25  ;;  %v1503_v13 = vpop.permute.xlu1 %1502  ;;  %v1500_v14 = vpop.permute.xlu0 %1499  ;;  %vm2359_vm7 = vmpackc.low %vm1113_vm11, %vm1109_vm10 }
 0x110   : > { %vm2391_vm6 = vmpackc.low %vm1115_vm0, %vm1111_vm1  ;;  %2360 = vmatpush1.bf16.msk.msra.mxu0 %vm2359_vm7, %v2701_v25  ;;  %vm1561_vm13 = vcmp.eq.s32.totalorder %v1500_v14, %v2889_v19  ;;  %vm1565_vm0 = vcmp.eq.s32.totalorder %v1503_v13, %v2889_v19  ;;  %vm1563_vm15 = vcmp.eq.s32.totalorder %v1500_v14, %v2891_v20  ;;  %vm1560_vm7 = vcmp.eq.s32.totalorder %v1500_v14, %v2893_v21 }
 0x111   : > { %2392 = vmatpush1.bf16.msk.msra.mxu1 %vm2391_vm6, %v2701_v25  ;;  %vm2361_vm11 = vmpackc.low %vm1106_vm5, %vm1102_vm2  ;;  %vm1567_vm2 = vcmp.eq.s32.totalorder %v1503_v13, %v2891_v20  ;;  %vm1564_vm5 = vcmp.eq.s32.totalorder %v1503_v13, %v2893_v21  ;;  %vm1562_vm6 = vcmp.eq.s32.totalorder %v1500_v14, %v2895_v24 }
 0x112   : > { %2362 = vmatprep.subr.msk.bf16.mxu0 %vm2361_vm11, %v2701_v25  ;;  %vm2393_vm10 = vmpackc.low %vm1108_vm4, %vm1104_vm3  ;;  %vm1566_vm4 = vcmp.eq.s32.totalorder %v1503_v13, %v2895_v24 }
 0x113   : > { %2394 = vmatprep.subr.msk.bf16.mxu1 %vm2393_vm10, %v2701_v25  ;;  %v1497_v17 = vpop.permute.xlu1 %1496  ;;  %v1494_v18 = vpop.permute.xlu0 %1493  ;;  %vm2363_vm1 = vmpackc.low %vm1105_vm8, %vm1101_vm9 }
 0x114   : > { %vm2395_vm3 = vmpackc.low %vm1107_vm14, %vm1103_vm12  ;;  %2364 = vmatpush1.bf16.msk.msra.mxu0 %vm2363_vm1, %v2701_v25  ;;  %vm1553_vm11 = vcmp.eq.s32.totalorder %v1494_v18, %v2889_v19  ;;  %vm1557_vm14 = vcmp.eq.s32.totalorder %v1497_v17, %v2889_v19  ;;  %vm1555_vm10 = vcmp.eq.s32.totalorder %v1494_v18, %v2891_v20  ;;  %vm1552_vm1 = vcmp.eq.s32.totalorder %v1494_v18, %v2893_v21 }
 0x115   : > { %2396 = vmatpush1.bf16.msk.msra.mxu1 %vm2395_vm3, %v2701_v25  ;;  %vm2479_vm8 = vmpackc.low %vm1565_vm0, %vm1561_vm13  ;;  %vm1559_vm13 = vcmp.eq.s32.totalorder %v1497_v17, %v2891_v20  ;;  %vm1556_vm0 = vcmp.eq.s32.totalorder %v1497_v17, %v2893_v21  ;;  %vm1554_vm3 = vcmp.eq.s32.totalorder %v1494_v18, %v2895_v24 }
 0x116   : > { %2480 = vmatprep.subr.msk.bf16.mxu0 %vm2479_vm8, %v2701_v25  ;;  %vm2511_vm9 = vmpackc.low %vm1567_vm2, %vm1563_vm15  ;;  %vm1558_vm2 = vcmp.eq.s32.totalorder %v1497_v17, %v2895_v24 }
 0x117   : > { %2512 = vmatprep.subr.msk.bf16.mxu1 %vm2511_vm9, %v2701_v25  ;;  %v1491_v23 = vpop.permute.xlu1 %1490  ;;  %v1488_v26 = vpop.permute.xlu0 %1487  ;;  %vm2481_vm12 = vmpackc.low %vm1564_vm5, %vm1560_vm7  ;;  %1370 = vmatmul.mubr.bf16.vlgmr.msra.gmra.mxu0 %v1328_v22 }
 0x118   : > { %1413 = vmatmul.mubr.bf16.vlgmr.msra.gmra.mxu1 %v1328_v22  ;;  %vm2513_vm15 = vmpackc.low %vm1566_vm4, %vm1562_vm6  ;;  %2482 = vmatpush1.bf16.msk.msra.mxu0 %vm2481_vm12, %v2701_v25  ;;  %vm1545_vm8 = vcmp.eq.s32.totalorder %v1488_v26, %v2889_v19  ;;  %vm1549_vm4 = vcmp.eq.s32.totalorder %v1491_v23, %v2889_v19  ;;  %vm1547_vm9 = vcmp.eq.s32.totalorder %v1488_v26, %v2891_v20  ;;  %v523_v22 = vld [vmem:[%s2809_s3] sm:$0xff] }
 0x119   : > { %2514 = vmatpush1.bf16.msk.msra.mxu1 %vm2513_vm15, %v2701_v25  ;;  %vm2483_vm5 = vmpackc.low %vm1557_vm14, %vm1553_vm11  ;;  %1772 = vmatprep.mubr.bf16.mxu0 %v2700_v11  ;;  %vm1551_vm11 = vcmp.eq.s32.totalorder %v1491_v23, %v2891_v20  ;;  %vm1548_vm14 = vcmp.eq.s32.totalorder %v1491_v23, %v2893_v21  ;;  %vm1544_vm12 = vcmp.eq.s32.totalorder %v1488_v26, %v2893_v21 }
 0x11a   : > { %2484 = vmatprep.subr.msk.bf16.mxu0 %vm2483_vm5, %v2701_v25  ;;  %vm2515_vm7 = vmpackc.low %vm1559_vm13, %vm1555_vm10  ;;  %1815 = vmatprep.mubr.bf16.mxu1 %v2700_v11  ;;  %vm1550_vm13 = vcmp.eq.s32.totalorder %v1491_v23, %v2895_v24  ;;  %vm1546_vm15 = vcmp.eq.s32.totalorder %v1488_v26, %v2895_v24  ;;  %v525_v23 = vld [vmem:[%s2809_s3 + $0x10] sm:$0xff]  ;;  %v524_v26 = vld [vmem:[%s2809_s3 + $0x8] sm:$0xff] }
 0x11b   : > { %2516 = vmatprep.subr.msk.bf16.mxu1 %vm2515_vm7, %v2701_v25  ;;  %v1485_v27 = vpop.permute.xlu1 %1484  ;;  %v1482_v28 = vpop.permute.xlu0 %1481  ;;  %vm2485_vm6 = vmpackc.low %vm1556_vm0, %vm1552_vm1 }
 0x11c   : > { %vm2517_vm10 = vmpackc.low %vm1558_vm2, %vm1554_vm3  ;;  %2486 = vmatpush1.bf16.msk.msra.mxu0 %vm2485_vm6, %v2701_v25  ;;  %vm1537_vm5 = vcmp.eq.s32.totalorder %v1482_v28, %v2889_v19  ;;  %vm1541_vm2 = vcmp.eq.s32.totalorder %v1485_v27, %v2889_v19  ;;  %vm1539_vm7 = vcmp.eq.s32.totalorder %v1482_v28, %v2891_v20  ;;  %vm1543_vm6 = vcmp.eq.s32.totalorder %v1485_v27, %v2891_v20 }
 0x11d   : > { %2518 = vmatpush1.bf16.msk.msra.mxu1 %vm2517_vm10, %v2701_v25  ;;  %vm2487_vm0 = vmpackc.low %vm1549_vm4, %vm1545_vm8  ;;  %vm1540_vm8 = vcmp.eq.s32.totalorder %v1485_v27, %v2893_v21  ;;  %vm1536_vm4 = vcmp.eq.s32.totalorder %v1482_v28, %v2893_v21  ;;  %vm1538_vm10 = vcmp.eq.s32.totalorder %v1482_v28, %v2895_v24  ;;  %v526_v28 = vld [vmem:[%s2809_s3 + $0x18] sm:$0xff] }
 0x11e   : > { %2488 = vmatprep.subr.msk.bf16.mxu0 %vm2487_vm0, %v2701_v25  ;;  %vm2519_vm1 = vmpackc.low %vm1551_vm11, %vm1547_vm9  ;;  %vm1542_vm11 = vcmp.eq.s32.totalorder %v1485_v27, %v2895_v24 }
 0x11f   : > { %2520 = vmatprep.subr.msk.bf16.mxu1 %vm2519_vm1, %v2701_v25  ;;  %v1479_v11 = vpop.permute.xlu1 %1478  ;;  %v1476_v29 = vpop.permute.xlu0 %1475  ;;  %vm2489_vm3 = vmpackc.low %vm1548_vm14, %vm1544_vm12 }
 0x120   : > { %vm2521_vm9 = vmpackc.low %vm1550_vm13, %vm1546_vm15  ;;  %2490 = vmatpush1.bf16.msk.msra.mxu0 %vm2489_vm3, %v2701_v25  ;;  %vm1529_vm0 = vcmp.eq.s32.totalorder %v1476_v29, %v2889_v19  ;;  %vm1533_vm1 = vcmp.eq.s32.totalorder %v1479_v11, %v2889_v19  ;;  %vm1531_vm15 = vcmp.eq.s32.totalorder %v1476_v29, %v2891_v20  ;;  %vm1535_vm3 = vcmp.eq.s32.totalorder %v1479_v11, %v2891_v20 }
 0x121   : > { %2522 = vmatpush1.bf16.msk.msra.mxu1 %vm2521_vm9, %v2701_v25  ;;  %vm2491_vm14 = vmpackc.low %vm1541_vm2, %vm1537_vm5  ;;  %vm1532_vm5 = vcmp.eq.s32.totalorder %v1479_v11, %v2893_v21  ;;  %vm1528_vm2 = vcmp.eq.s32.totalorder %v1476_v29, %v2893_v21  ;;  %vm1530_vm9 = vcmp.eq.s32.totalorder %v1476_v29, %v2895_v24 }
 0x122   : > { %2492 = vmatprep.subr.msk.bf16.mxu0 %vm2491_vm14, %v2701_v25  ;;  %vm2523_vm12 = vmpackc.low %vm1543_vm6, %vm1539_vm7  ;;  %vm1534_vm6 = vcmp.eq.s32.totalorder %v1479_v11, %v2895_v24 }
 0x123   : > { %2524 = vmatprep.subr.msk.bf16.mxu1 %vm2523_vm12, %v2701_v25  ;;  %v1473_v30 = vpop.permute.xlu1 %1472  ;;  %v1470_v31 = vpop.permute.xlu0 %1469  ;;  %vm2493_vm13 = vmpackc.low %vm1540_vm8, %vm1536_vm4 }
 0x124   : > { %vm2525_vm7 = vmpackc.low %vm1542_vm11, %vm1538_vm10  ;;  %2494 = vmatpush1.bf16.msk.msra.mxu0 %vm2493_vm13, %v2701_v25  ;;  %vm1521_vm14 = vcmp.eq.s32.totalorder %v1470_v31, %v2889_v19  ;;  %vm1525_vm12 = vcmp.eq.s32.totalorder %v1473_v30, %v2889_v19  ;;  %vm1523_vm10 = vcmp.eq.s32.totalorder %v1470_v31, %v2891_v20  ;;  %vm1527_vm13 = vcmp.eq.s32.totalorder %v1473_v30, %v2891_v20 }
 0x125   : > { %2526 = vmatpush1.bf16.msk.msra.mxu1 %vm2525_vm7, %v2701_v25  ;;  %vm2495_vm8 = vmpackc.low %vm1533_vm1, %vm1529_vm0  ;;  %vm1524_vm0 = vcmp.eq.s32.totalorder %v1473_v30, %v2893_v21  ;;  %vm1520_vm1 = vcmp.eq.s32.totalorder %v1470_v31, %v2893_v21  ;;  %vm1522_vm7 = vcmp.eq.s32.totalorder %v1470_v31, %v2895_v24 }
 0x126   : > { %2496 = vmatprep.subr.msk.bf16.mxu0 %vm2495_vm8, %v2701_v25  ;;  %vm2527_vm4 = vmpackc.low %vm1535_vm3, %vm1531_vm15  ;;  %vm1526_vm3 = vcmp.eq.s32.totalorder %v1473_v30, %v2895_v24 }
 0x127   : > { %2528 = vmatprep.subr.msk.bf16.mxu1 %vm2527_vm4, %v2701_v25  ;;  %v1467_v32 = vpop.permute.xlu1 %1466  ;;  %v1464_v33 = vpop.permute.xlu0 %1463  ;;  %vm2497_vm11 = vmpackc.low %vm1532_vm5, %vm1528_vm2 }
 0x128   : > { %vm2529_vm15 = vmpackc.low %vm1534_vm6, %vm1530_vm9  ;;  %2498 = vmatpush1.bf16.msk.msra.mxu0 %vm2497_vm11, %v2701_v25  ;;  %vm1513_vm8 = vcmp.eq.s32.totalorder %v1464_v33, %v2889_v19  ;;  %vm1517_vm4 = vcmp.eq.s32.totalorder %v1467_v32, %v2889_v19 }
 0x129   : > { %2530 = vmatpush1.bf16.msk.msra.mxu1 %vm2529_vm15, %v2701_v25  ;;  %vm2499_vm5 = vmpackc.low %vm1525_vm12, %vm1521_vm14  ;;  %vm1515_vm15 = vcmp.eq.s32.totalorder %v1464_v33, %v2891_v20  ;;  %vm1519_vm14 = vcmp.eq.s32.totalorder %v1467_v32, %v2891_v20  ;;  %vm1516_vm12 = vcmp.eq.s32.totalorder %v1467_v32, %v2893_v21 }
 0x12a   : > { %2500 = vmatprep.subr.msk.bf16.mxu0 %vm2499_vm5, %v2701_v25  ;;  %vm2531_vm2 = vmpackc.low %vm1527_vm13, %vm1523_vm10  ;;  %vm1512_vm10 = vcmp.eq.s32.totalorder %v1464_v33, %v2893_v21  ;;  %vm1518_vm13 = vcmp.eq.s32.totalorder %v1467_v32, %v2895_v24 }
 0x12b   : > { %2532 = vmatprep.subr.msk.bf16.mxu1 %vm2531_vm2, %v2701_v25  ;;  %vm2501_vm6 = vmpackc.low %vm1524_vm0, %vm1520_vm1  ;;  %v1461_v34 = vpop.permute.xlu1 %1460  ;;  %v1458_v35 = vpop.permute.xlu0 %1457  ;;  %vm1514_vm0 = vcmp.eq.s32.totalorder %v1464_v33, %v2895_v24 }
 0x12c   : > { %vm2533_vm9 = vmpackc.low %vm1526_vm3, %vm1522_vm7  ;;  %2502 = vmatpush1.bf16.msk.msra.mxu0 %vm2501_vm6, %v2701_v25  ;;  %vm1509_vm1 = vcmp.eq.s32.totalorder %v1461_v34, %v2889_v19  ;;  %vm1505_vm3 = vcmp.eq.s32.totalorder %v1458_v35, %v2889_v19  ;;  %vm1511_vm5 = vcmp.eq.s32.totalorder %v1461_v34, %v2891_v20  ;;  %vm1507_vm2 = vcmp.eq.s32.totalorder %v1458_v35, %v2891_v20 }
 0x12d   : > { %vm2503_vm11 = vmpackc.low %vm1517_vm4, %vm1513_vm8  ;;  %2534 = vmatpush1.bf16.msk.msra.mxu1 %vm2533_vm9, %v2701_v25  ;;  %vm1508_vm4 = vcmp.eq.s32.totalorder %v1461_v34, %v2893_v21  ;;  %vm1504_vm6 = vcmp.eq.s32.totalorder %v1458_v35, %v2893_v21  ;;  %v1731_v21 = vpack.c.bf16 %v2478_v37, %v2477_v36 }
 0x12e   : > { %2504 = vmatprep.subr.msk.bf16.mxu0 %vm2503_vm11, %v2701_v25  ;;  %vm2535_vm7 = vmpackc.low %vm1519_vm14, %vm1515_vm15  ;;  %vm1510_vm11 = vcmp.eq.s32.totalorder %v1461_v34, %v2895_v24  ;;  %vm1506_vm15 = vcmp.eq.s32.totalorder %v1458_v35, %v2895_v24 }
 0x12f   : > { %2536 = vmatprep.subr.msk.bf16.mxu1 %vm2535_vm7, %v2701_v25  ;;  %vm2505_vm8 = vmpackc.low %vm1516_vm12, %vm1512_vm10 }
 0x130   : > { %2506 = vmatpush1.bf16.msk.msra.mxu0 %vm2505_vm8, %v2701_v25  ;;  %vm2537_vm9 = vmpackc.low %vm1518_vm13, %vm1514_vm0 }
 0x131   : > { %2538 = vmatpush1.bf16.msk.msra.mxu1 %vm2537_vm9, %v2701_v25  ;;  %vm2507_vm14 = vmpackc.low %vm1509_vm1, %vm1505_vm3 }
 0x132   : > { %2508 = vmatprep.subr.msk.bf16.mxu0 %vm2507_vm14, %v2701_v25  ;;  %vm2539_vm12 = vmpackc.low %vm1511_vm5, %vm1507_vm2 }
 0x133   : > { %vm2509_vm10 = vmpackc.low %vm1508_vm4, %vm1504_vm6  ;;  %2540 = vmatprep.subr.msk.bf16.mxu1 %vm2539_vm12, %v2701_v25 }
 0x134   : > { %vm2541_vm13 = vmpackc.low %vm1510_vm11, %vm1506_vm15  ;;  %2510 = vmatpush1.bf16.msk.msra.mxu0 %vm2509_vm10, %v2701_v25 }
 0x135   : > { %2542 = vmatpush1.bf16.msk.msra.mxu1 %vm2541_vm13, %v2701_v25 }
 0x137   : > { %1773 = vmatmul.mubr.bf16.vlgmr.msra.gmra.mxu0 %v1731_v21 }
 0x138   : > { %1816 = vmatmul.mubr.bf16.vlgmr.msra.gmra.mxu1 %v1731_v21 }
 0x197   : > { %v3515_v19 = vpop.f32.mrf.mxu0 }
 0x198   : > { %v3517_v24 = vpop.f32.mrf.mxu1  ;;  %v617_v27 = vadd.f32 %v3515_v19, %v523_v22 }
 0x199   : > { %v3519_v20 = vpop.f32.mrf.mxu0  ;;  %v619_v11 = vadd.f32 %v3517_v24, %v525_v23 }
 0x19a   : > { %v3522_v39 = vpop.f32.mrf.mxu1  ;;  %v618_v29 = vadd.f32 %v3519_v20, %v524_v26 }
 0x19b   : > { %v569_v41 = vpop.f32.mrf.mxu0  ;;  %v620_v31 = vadd.f32 %v3522_v39, %v526_v28 }
 0x19c   : > { %v621_v43 = vadd.f32 %v569_v41, %v527_v38  ;;  %v612_v25 = vpop.f32.mrf.mxu1 }
 0x19d   : > { %v623_v45 = vadd.f32 %v612_v25, %v529_v40  ;;  %v571_v46 = vpop.f32.mrf.mxu0 }
 0x19e   : > { %629 = vst [vmem:[%s2809_s3 + $0x20] sm:$0x1] %v621_v43  ;;  %v622_v47 = vadd.f32 %v571_v46, %v528_v42  ;;  %v614_v48 = vpop.f32.mrf.mxu1 }
 0x19f   : > { %631 = vst [vmem:[%s2809_s3 + $0x30] sm:$0x1] %v623_v45  ;;  %v624_v49 = vadd.f32 %v614_v48, %v530_v44 }
 0x1a0   : > { %630 = vst [vmem:[%s2809_s3 + $0x28] sm:$0x1] %v622_v47 }
 0x1a1   : > { %632 = vst [vmem:[%s2809_s3 + $0x38] sm:$0x1] %v624_v49 }
 0x1a5   : > { %v930_v54 = vld [vmem:[%s2809_s3 + $0x20] sm:$0x1] }
 0x1a6   : > { %v932_v56 = vld [vmem:[%s2809_s3 + $0x30] sm:$0x1] }
 0x1a7   : > { %v931_v60 = vld [vmem:[%s2809_s3 + $0x28] sm:$0x1] }
 0x1a8   : > { %v933_v62 = vld [vmem:[%s2809_s3 + $0x38] sm:$0x1] }
 0x1b7   : > { %v968_v50 = vpop.f32.mrf.mxu0 }
 0x1b8   : > { %v1011_v51 = vpop.f32.mrf.mxu1  ;;  %v1020_v30 = vadd.f32 %v968_v50, %v617_v27 }
 0x1b9   : > { %v970_v52 = vpop.f32.mrf.mxu0  ;;  %v1022_v32 = vadd.f32 %v1011_v51, %v619_v11 }
 0x1ba   : > { %v1013_v53 = vpop.f32.mrf.mxu1  ;;  %v1021_v33 = vadd.f32 %v970_v52, %v618_v29 }
 0x1bb   : > { %v972_v55 = vpop.f32.mrf.mxu0  ;;  %v1023_v35 = vadd.f32 %v1013_v53, %v620_v31 }
 0x1bc   : > { %v1015_v57 = vpop.f32.mrf.mxu1  ;;  %v1024_v58 = vadd.f32 %v972_v55, %v930_v54 }
 0x1bd   : > { %v1026_v59 = vadd.f32 %v1015_v57, %v932_v56  ;;  %v974_v61 = vpop.f32.mrf.mxu0 }
 0x1be   : > { %v1017_v63 = vpop.f32.mrf.mxu1  ;;  %1032 = vst [vmem:[%s2809_s3 + $0x20] sm:$0x1] %v1024_v58  ;;  %v1025_v0 = vadd.f32 %v974_v61, %v931_v60 }
 0x1bf   : > { %1034 = vst [vmem:[%s2809_s3 + $0x30] sm:$0x1] %v1026_v59  ;;  %v1027_v1 = vadd.f32 %v1017_v63, %v933_v62 }
 0x1c0   : > { %1033 = vst [vmem:[%s2809_s3 + $0x28] sm:$0x1] %v1025_v0 }
 0x1c1   : > { %1035 = vst [vmem:[%s2809_s3 + $0x38] sm:$0x1] %v1027_v1 }
 0x1c5   : > { %v1333_v6 = vld [vmem:[%s2809_s3 + $0x20] sm:$0x1] }
 0x1c6   : > { %v1335_v8 = vld [vmem:[%s2809_s3 + $0x30] sm:$0x1] }
 0x1c7   : > { %v1334_v13 = vld [vmem:[%s2809_s3 + $0x28] sm:$0x1] }
 0x1c8   : > { %v1336_v15 = vld [vmem:[%s2809_s3 + $0x38] sm:$0x1] }
 0x1d7   : > { %v1371_v2 = vpop.f32.mrf.mxu0 }
 0x1d8   : > { %v1414_v3 = vpop.f32.mrf.mxu1  ;;  %v1423_v34 = vadd.f32 %v1371_v2, %v1020_v30 }
 0x1d9   : > { %v1373_v4 = vpop.f32.mrf.mxu0  ;;  %v1425_v36 = vadd.f32 %v1414_v3, %v1022_v32 }
 0x1da   : > { %v1416_v5 = vpop.f32.mrf.mxu1  ;;  %v1424_v21 = vadd.f32 %v1373_v4, %v1021_v33 }
 0x1db   : > { %v1375_v7 = vpop.f32.mrf.mxu0  ;;  %v1426_v38 = vadd.f32 %v1416_v5, %v1023_v35 }
 0x1dc   : > { %v1418_v9 = vpop.f32.mrf.mxu1  ;;  %v1427_v10 = vadd.f32 %v1375_v7, %v1333_v6 }
 0x1dd   : > { %v1429_v12 = vadd.f32 %v1418_v9, %v1335_v8  ;;  %v1377_v14 = vpop.f32.mrf.mxu0 }
 0x1de   : > { %v1420_v16 = vpop.f32.mrf.mxu1  ;;  %1435 = vst [vmem:[%s2809_s3 + $0x20] sm:$0x1] %v1427_v10  ;;  %v1428_v17 = vadd.f32 %v1377_v14, %v1334_v13 }
 0x1df   : > { %1437 = vst [vmem:[%s2809_s3 + $0x30] sm:$0x1] %v1429_v12  ;;  %v1430_v18 = vadd.f32 %v1420_v16, %v1336_v15 }
 0x1e0   : > { %1436 = vst [vmem:[%s2809_s3 + $0x28] sm:$0x1] %v1428_v17 }
 0x1e1   : > { %1438 = vst [vmem:[%s2809_s3 + $0x38] sm:$0x1] %v1430_v18 }
 0x1e5   : > { %v1736_v43 = vld [vmem:[%s2809_s3 + $0x20] sm:$0x1] }
 0x1e6   : > { %v1738_v45 = vld [vmem:[%s2809_s3 + $0x30] sm:$0x1] }
 0x1e7   : > { %v1737_v48 = vld [vmem:[%s2809_s3 + $0x28] sm:$0x1] }
 0x1e8   : > { %v1739_v51 = vld [vmem:[%s2809_s3 + $0x38] sm:$0x1] }
 0x1f7   : > { %v1774_v37 = vpop.f32.mrf.mxu0 }
 0x1f8   : > { %v1826_v19 = vadd.f32 %v1774_v37, %v1423_v34  ;;  %v1817_v24 = vpop.f32.mrf.mxu1 }
 0x1f9   : > { %v1828_v20 = vadd.f32 %v1817_v24, %v1425_v36  ;;  %v1776_v40 = vpop.f32.mrf.mxu0 }
 0x1fa   : > { %1834 = vst [vmem:[%s2809_s3] sm:$0xff] %v1826_v19  ;;  %v1827_v39 = vadd.f32 %v1776_v40, %v1424_v21  ;;  %v1819_v41 = vpop.f32.mrf.mxu1 }
 0x1fb   : > { %1836 = vst [vmem:[%s2809_s3 + $0x10] sm:$0xff] %v1828_v20  ;;  %v1829_v42 = vadd.f32 %v1819_v41, %v1426_v38  ;;  %v1778_v25 = vpop.f32.mrf.mxu0 }
 0x1fc   : > { %1835 = vst [vmem:[%s2809_s3 + $0x8] sm:$0xff] %v1827_v39  ;;  %v1830_v44 = vadd.f32 %v1778_v25, %v1736_v43  ;;  %v1821_v46 = vpop.f32.mrf.mxu1 }
 0x1fd   : > { %1837 = vst [vmem:[%s2809_s3 + $0x18] sm:$0xff] %v1829_v42  ;;  %v1832_v47 = vadd.f32 %v1821_v46, %v1738_v45  ;;  %v1780_v49 = vpop.f32.mrf.mxu0  ;;  %1848 = sbr.rel (!%p2787_p9) target bundleno = 522 (0x20a), region = 59 }
 0x1fe   : > { %1838 = vst [vmem:[%s2809_s3 + $0x20] sm:$0x1] %v1830_v44  ;;  %v1831_v50 = vadd.f32 %v1780_v49, %v1737_v48  ;;  %v1823_v52 = vpop.f32.mrf.mxu1 }
 0x1ff   : > { %1840 = vst [vmem:[%s2809_s3 + $0x30] sm:$0x1] %v1832_v47  ;;  %v1833_v53 = vadd.f32 %v1823_v52, %v1739_v51 }
 0x200   : > { %1839 = vst [vmem:[%s2809_s3 + $0x28] sm:$0x1] %v1831_v50 }
 0x201   : > { %1841 = vst [vmem:[%s2809_s3 + $0x38] sm:$0x1] %v1833_v53  ;;  %v1864_v54 = vld [vmem:[%s2809_s3] sm:$0xff] (%p2787_p9) }
 0x202   : > { %v1868_v56 = vld [vmem:[%s2809_s3 + $0x10] sm:$0xff]  ;;  %1865 = vst [vmem:[%s1851_s5] sm:$0xff] %v1864_v54 }
 0x203   : > { %v1866_v55 = vld [vmem:[%s2809_s3 + $0x8] sm:$0xff]  ;;  %1869 = vst [vmem:[%s1851_s5 + $0x10] sm:$0xff] %v1868_v56 }
 0x204   : > { %v1870_v57 = vld [vmem:[%s2809_s3 + $0x18] sm:$0xff]  ;;  %1867 = vst [vmem:[%s1851_s5 + $0x8] sm:$0xff] %v1866_v55 }
 0x205   : > { %v1872_v58 = vld [vmem:[%s2809_s3 + $0x20] sm:$0xff]  ;;  %1871 = vst [vmem:[%s1851_s5 + $0x18] sm:$0xff] %v1870_v57 }
 0x206   : > { %1873 = vst [vmem:[%s1851_s5 + $0x40] sm:$0xff] %v1872_v58  ;;  %v1876_v60 = vld [vmem:[%s2809_s3 + $0x30] sm:$0xff] }
 0x207   : > { %v1874_v59 = vld [vmem:[%s2809_s3 + $0x28] sm:$0xff]  ;;  %1877 = vst [vmem:[%s1851_s5 + $0x50] sm:$0xff] %v1876_v60 }
 0x208   : > { %1875 = vst [vmem:[%s1851_s5 + $0x48] sm:$0xff] %v1874_v59  ;;  %v1878_v61 = vld [vmem:[%s2809_s3 + $0x38] sm:$0xff] }
 0x209   : > { %1879 = vst [vmem:[%s1851_s5 + $0x58] sm:$0xff] %v1878_v61 }
 0x20a PF: > { %s12_s17 = sadd.s32 1, %s2697_s17   ;;  %s3612_s9 = smov %s2669_s10 }
 0x20b   : > { %p9_p2 = scmp.ge.s32.totalorder %s12_s17, 6   ;;  %s3613_s10 = smov %s2785_s26 }
 0x20c   : > { %s3614_s11 = smov %s2677_s12  ;;  %s3615_s12 = smov %s2778_s24 }
 0x20d   : > { %s3616_s13 = smov %s2689_s15  ;;  %s3617_s14 = smov %s2693_s16 }
 0x20e   : > { %s3618_s15 = smov %s3621_s19  ;;  %s3619_s16 = smov %s3625_s20 }
 0x20f   :  { %11 = sbr.rel (!%p9_p2) target bundleno = 5 (0x5), region = 122 }

// kernel: quantization_layer_forward.2
= control target key start
LH: loop header
LB: loop body
LE: loop exit
PB: predicated region body
PF: predicated region fallthrough
CT: control target
= control target key end

     0   :  { %s4952_s0 = inlined_call_operand.vmem [shape: f32[1,1024], index: 0, kind: input, shape index: {}]   ;;  %s4953_s1 = inlined_call_operand.vmem [shape: f32[128,1], index: 1, kind: input, shape index: {}]   ;;  %s4954_s2 = inlined_call_operand.vmem [shape: f32[128,1], index: 2, kind: input, shape index: {}]   ;;  %s4955_s3 = inlined_call_operand.hbm [shape: bf16[128,128], index: 3, kind: input, shape index: {}]   ;;  %s4956_s4 = inlined_call_operand.vmem [shape: f32[128,1], index: 4, kind: input, shape index: {}]   ;;  %s4957_s5 = inlined_call_operand.vmem [shape: f32[128,1], index: 5, kind: input, shape index: {}]   ;;  %s4958_s6 = inlined_call_operand.<no memory space> [shape: f32[1,1], index: 6, kind: input, shape index: {}]   ;;  %s4959_s7 = inlined_call_operand.vmem [shape: f32[9,1024], index: 7, kind: output, shape index: {}]  }
   0x1   :  { %v12_v0 = vstv %s4958_s6 }
   0x2   :  { %13 = vst [vmem:[#allocation2] sm:$0x1] %v12_v0 }
   0x3   :  { %14 = vsyncpa [#allocation4], 0  ;;  %s3691_s26 = smov 0   ;;  %s3693_s27 = smov 0  }
   0x4   :  { %s3695_s28 = smov 0  }
   0x5 LB: > { %s3704_s6 = sadd.s32 4294967295, %s3590_s28   ;;  %s3706_s29 = sadd.s32 1, %s3590_s28   ;;  %s3590_s28 = sphi %s3695_s28, %s5578_s28   ;;  %s3586_s27 = sphi %s3693_s27, %s5577_s27   ;;  %s3582_s26 = sphi %s3691_s26, %s5576_s26  }
   0x6   : > { %s176_s30 = ssub.s32 %s3590_s28, %s3706_s29  ;;  %s179_s8 = sadd.s32 1, %s3586_s27 }
   0x7   : > { %p177_p0 = scmp.eq.s32.totalorder %s176_s30, 0  ;;  %p189_p1 = scmp.ne.s32.totalorder %s3586_s27, %s3582_s26 }
   0x8   : > { %p190_p2 = scmp.eq.s32.totalorder %s3704_s6, 1  ;;  %p3032_p3 = scmp.ge.s32.totalorder %s3590_s28, 1 }
   0x9   : > { %s3714_s9 = scalar_select %p177_p0, %s3586_s27, %s179_s8  }
   0xa   : > { %p3716_p4 = por %p190_p2, %p189_p1  ;;  %p203_p5 = scmp.lt.s32.totalorder %s3590_s28, 3 }
   0xb   : > { %p3350_p6 = scmp.eq.s32.totalorder %s3704_s6, 0  ;;  %s3640_s12 = smov [#allocation3]  }
   0xc   : > { %p3721_p7 = pnand %p3032_p3, %p203_p5  ;;  %s221_s13 = sshll.u32 %s3640_s12, 4  ;;  %s222_s13 = int_to_ptr.vmem [resolvable:$true] %s221_s13 }
   0xd   : > { %s3501_s14 = scalar_lea.vmem %s222_s13, 1024  ;;  %p3509_p0 = scmp.lt.s32.totalorder %s222_s13, %s222_s13 }
   0xe   : > { %p3346_p8 = pneg %p3721_p7  ;;  %p3502_p11 = scmp.ne.s32.totalorder %s222_s13, %s3501_s14 }
   0xf   : > { %p3510_p1 = scmp.lt.s32.totalorder %s3501_s14, %s3501_s14 }
  0x10   : > { %p3347_p9 = pnand %p3350_p6, %p3346_p8 }
  0x11   : > { %p3511_p2 = por %p3510_p1, %p3509_p0 }
  0x12   : > { %p3492_p10 = pneg %p3347_p9 }
  0x14   : > { %p3504_p12 = pnand %p3502_p11, %p3492_p10 }
  0x16   : > { %p3505_p13 = pneg %p3504_p12 }
  0x18   : > { %p3512_p3 = pnand %p3511_p2, %p3505_p13 }
  0x1a   : > { %3515 = shalt.err (!%p3512_p3)
}
  0x1b   : > { %s3641_s15 = smov 64   ;;  %s3642_s16 = smov 4  }
  0x1c   : > { %3349 = dma.hbm_to_vmem [thread:$0]  (!%p3347_p9), %s4955_s3, 1024, %s222_s13, [#allocation4], %s3641_s15, %s3641_s15, %s3642_s16  }
  0x1d   : > { %254 = sbr.rel (%p3721_p7) target bundleno = 2005 (0x7d5), region = 48 }
  0x22   : > { %3577 = dma.done.wait (%p3350_p6), [#allocation4], 1024  }
  0x23   : > { %3579 = vsyncadd (%p3350_p6), [#allocation4], 4294966272  ;;  %v3643_v1 = vmov 0   ;;  %v3741_v2 = vld [vmem:[%s4954_s2] sm:$0xff]  ;;  %v3746_v3 = vld [vmem:[%s4954_s2 + $0x8] sm:$0xff]  ;;  %s281_s17 = sand.u32 1, %s3582_s26  }
  0x24   : > { %3481 = vset.pattern.permute.xlu1 %v3643_v1  ;;  %3480 = vset.pattern.permute.xlu0 %v3643_v1  ;;  %5014 = vst [vmem:[#allocation7_spill] sm:$0xff] %v3741_v2  ;;  %5015 = vst [vmem:[#allocation8_spill] sm:$0xff] %v3746_v3  ;;  %v3751_v4 = vld [vmem:[%s4954_s2 + $0x10] sm:$0xff]  ;;  %v3756_v5 = vld [vmem:[%s4954_s2 + $0x18] sm:$0xff]  ;;  %s4096_s18 = sshll.u32 %s281_s17, 6  ;;  %s3038_s26 = sshll.u32 %s3704_s6, 2 }
  0x25   : > { %5016 = vst [vmem:[#allocation9_spill] sm:$0xff] %v3751_v4  ;;  %5017 = vst [vmem:[#allocation10_spill] sm:$0xff] %v3756_v5  ;;  %v3761_v6 = vld [vmem:[%s4954_s2 + $0x20] sm:$0xff]  ;;  %v3766_v7 = vld [vmem:[%s4954_s2 + $0x28] sm:$0xff]  ;;  %p285_p5 = scmp.lt.s32.totalorder %s3038_s26, 7  ;;  %s4208_s28 = scalar_lea.vmem [#allocation5], %s4096_s18 }
  0x26   : > { %5018 = vst [vmem:[#allocation11_spill] sm:$0xff] %v3761_v6  ;;  %5019 = vst [vmem:[#allocation12_spill] sm:$0xff] %v3766_v7  ;;  %v3771_v8 = vld [vmem:[%s4954_s2 + $0x30] sm:$0xff]  ;;  %v3776_v9 = vld [vmem:[%s4954_s2 + $0x38] sm:$0xff]  ;;  %s4214_s30 = smov 0  }
  0x27   : > { %5020 = vst [vmem:[#allocation13_spill] sm:$0xff] %v3771_v8  ;;  %5021 = vst [vmem:[#allocation14_spill] sm:$0xff] %v3776_v9  ;;  %v3781_v10 = vld [vmem:[%s4954_s2 + $0x40] sm:$0xff]  ;;  %v3786_v11 = vld [vmem:[%s4954_s2 + $0x48] sm:$0xff]  ;;  %s5580_s26 = smov (!%p285_p5, %s3038_s26), 7 }
  0x28   : > { %5022 = vst [vmem:[#allocation15_spill] sm:$0xff] %v3781_v10  ;;  %5023 = vst [vmem:[#allocation16_spill] sm:$0xff] %v3786_v11  ;;  %v3791_v12 = vld [vmem:[%s4954_s2 + $0x50] sm:$0xff]  ;;  %v3796_v13 = vld [vmem:[%s4954_s2 + $0x58] sm:$0xff]  ;;  %s4117_s25 = scalar_lea.vmem %s4952_s0, %s5580_s26 }
  0x29   : > { %5024 = vst [vmem:[#allocation17_spill] sm:$0xff] %v3791_v12  ;;  %5025 = vst [vmem:[#allocation18_spill] sm:$0xff] %v3796_v13  ;;  %v3801_v14 = vld [vmem:[%s4954_s2 + $0x60] sm:$0xff]  ;;  %v3806_v15 = vld [vmem:[%s4954_s2 + $0x68] sm:$0xff] }
  0x2a   : > { %5026 = vst [vmem:[#allocation19_spill] sm:$0xff] %v3801_v14  ;;  %5027 = vst [vmem:[#allocation20_spill] sm:$0xff] %v3806_v15  ;;  %v3811_v16 = vld [vmem:[%s4954_s2 + $0x70] sm:$0xff]  ;;  %v3816_v17 = vld [vmem:[%s4954_s2 + $0x78] sm:$0xff] }
  0x2b   : > { %5028 = vst [vmem:[#allocation21_spill] sm:$0xff] %v3811_v16  ;;  %5029 = vst [vmem:[#allocation22_spill] sm:$0xff] %v3816_v17  ;;  %v3818_v18 = vld [vmem:[#allocation3] sm:$0xf]  ;;  %v3820_v19 = vld [vmem:[#allocation3 + $0x4] sm:$0xf] }
  0x2c   : > { %5030 = vst [vmem:[#allocation23_spill] sm:$0xff] %v3818_v18  ;;  %5031 = vst [vmem:[#allocation24_spill] sm:$0xff] %v3820_v19  ;;  %v3822_v20 = vld [vmem:[#allocation3 + $0x8] sm:$0xf]  ;;  %v3824_v21 = vld [vmem:[#allocation3 + $0xc] sm:$0xf] }
  0x2d   : > { %5032 = vst [vmem:[#allocation25_spill] sm:$0xff] %v3822_v20  ;;  %5033 = vst [vmem:[#allocation26_spill] sm:$0xff] %v3824_v21  ;;  %v3826_v22 = vld [vmem:[#allocation3 + $0x10] sm:$0xf]  ;;  %v3828_v23 = vld [vmem:[#allocation3 + $0x14] sm:$0xf] }
  0x2e   : > { %5034 = vst [vmem:[#allocation27_spill] sm:$0xff] %v3826_v22  ;;  %5035 = vst [vmem:[#allocation28_spill] sm:$0xff] %v3828_v23  ;;  %v3830_v24 = vld [vmem:[#allocation3 + $0x18] sm:$0xf]  ;;  %v3832_v25 = vld [vmem:[#allocation3 + $0x1c] sm:$0xf] }
  0x2f   : > { %5036 = vst [vmem:[#allocation29_spill] sm:$0xff] %v3830_v24  ;;  %5037 = vst [vmem:[#allocation30_spill] sm:$0xff] %v3832_v25  ;;  %v3834_v26 = vld [vmem:[#allocation3 + $0x20] sm:$0xf]  ;;  %v3836_v27 = vld [vmem:[#allocation3 + $0x24] sm:$0xf] }
  0x30   : > { %5038 = vst [vmem:[#allocation31_spill] sm:$0xff] %v3834_v26  ;;  %5039 = vst [vmem:[#allocation32_spill] sm:$0xff] %v3836_v27  ;;  %v3838_v28 = vld [vmem:[#allocation3 + $0x28] sm:$0xf]  ;;  %v3840_v29 = vld [vmem:[#allocation3 + $0x2c] sm:$0xf] }
  0x31   : > { %5040 = vst [vmem:[#allocation33_spill] sm:$0xff] %v3838_v28  ;;  %5041 = vst [vmem:[#allocation34_spill] sm:$0xff] %v3840_v29  ;;  %v3842_v30 = vld [vmem:[#allocation3 + $0x30] sm:$0xf]  ;;  %v3844_v31 = vld [vmem:[#allocation3 + $0x34] sm:$0xf] }
  0x32   : > { %5042 = vst [vmem:[#allocation35_spill] sm:$0xff] %v3842_v30  ;;  %5043 = vst [vmem:[#allocation36_spill] sm:$0xff] %v3844_v31  ;;  %v3846_v32 = vld [vmem:[#allocation3 + $0x38] sm:$0xf]  ;;  %v3848_v33 = vld [vmem:[#allocation3 + $0x3c] sm:$0xf] }
  0x33   : > { %5044 = vst [vmem:[#allocation37_spill] sm:$0xff] %v3846_v32  ;;  %5045 = vst [vmem:[#allocation38_spill] sm:$0xff] %v3848_v33  ;;  %v3853_v34 = vld [vmem:[%s4956_s4] sm:$0xff]  ;;  %v3858_v35 = vld [vmem:[%s4956_s4 + $0x8] sm:$0xff] }
  0x34   : > { %5046 = vst [vmem:[#allocation39_spill] sm:$0xff] %v3853_v34  ;;  %5047 = vst [vmem:[#allocation40_spill] sm:$0xff] %v3858_v35  ;;  %v3863_v36 = vld [vmem:[%s4956_s4 + $0x10] sm:$0xff]  ;;  %v3868_v37 = vld [vmem:[%s4956_s4 + $0x18] sm:$0xff] }
  0x35   : > { %5048 = vst [vmem:[#allocation41_spill] sm:$0xff] %v3863_v36  ;;  %5049 = vst [vmem:[#allocation42_spill] sm:$0xff] %v3868_v37  ;;  %v3873_v38 = vld [vmem:[%s4956_s4 + $0x20] sm:$0xff]  ;;  %v3878_v39 = vld [vmem:[%s4956_s4 + $0x28] sm:$0xff] }
  0x36   : > { %5050 = vst [vmem:[#allocation43_spill] sm:$0xff] %v3873_v38  ;;  %5051 = vst [vmem:[#allocation44_spill] sm:$0xff] %v3878_v39  ;;  %v3883_v40 = vld [vmem:[%s4956_s4 + $0x30] sm:$0xff]  ;;  %v3888_v41 = vld [vmem:[%s4956_s4 + $0x38] sm:$0xff] }
  0x37   : > { %5052 = vst [vmem:[#allocation45_spill] sm:$0xff] %v3883_v40  ;;  %5053 = vst [vmem:[#allocation46_spill] sm:$0xff] %v3888_v41  ;;  %v3893_v42 = vld [vmem:[%s4956_s4 + $0x40] sm:$0xff]  ;;  %v3898_v43 = vld [vmem:[%s4956_s4 + $0x48] sm:$0xff] }
  0x38   : > { %5054 = vst [vmem:[#allocation47_spill] sm:$0xff] %v3893_v42  ;;  %5055 = vst [vmem:[#allocation48_spill] sm:$0xff] %v3898_v43  ;;  %v3903_v44 = vld [vmem:[%s4956_s4 + $0x50] sm:$0xff]  ;;  %v3908_v45 = vld [vmem:[%s4956_s4 + $0x58] sm:$0xff] }
  0x39   : > { %5056 = vst [vmem:[#allocation49_spill] sm:$0xff] %v3903_v44  ;;  %5057 = vst [vmem:[#allocation50_spill] sm:$0xff] %v3908_v45  ;;  %v3913_v46 = vld [vmem:[%s4956_s4 + $0x60] sm:$0xff]  ;;  %v3918_v47 = vld [vmem:[%s4956_s4 + $0x68] sm:$0xff] }
  0x3a   : > { %5058 = vst [vmem:[#allocation51_spill] sm:$0xff] %v3913_v46  ;;  %5059 = vst [vmem:[#allocation52_spill] sm:$0xff] %v3918_v47  ;;  %v3923_v48 = vld [vmem:[%s4956_s4 + $0x70] sm:$0xff]  ;;  %v3928_v49 = vld [vmem:[%s4956_s4 + $0x78] sm:$0xff] }
  0x3b   : > { %5060 = vst [vmem:[#allocation53_spill] sm:$0xff] %v3923_v48  ;;  %5061 = vst [vmem:[#allocation54_spill] sm:$0xff] %v3928_v49  ;;  %v3933_v50 = vld [vmem:[%s4957_s5] sm:$0xff]  ;;  %v3938_v51 = vld [vmem:[%s4957_s5 + $0x8] sm:$0xff] }
  0x3c   : > { %5062 = vst [vmem:[#allocation55_spill] sm:$0xff] %v3933_v50  ;;  %5063 = vst [vmem:[#allocation56_spill] sm:$0xff] %v3938_v51  ;;  %v3943_v52 = vld [vmem:[%s4957_s5 + $0x10] sm:$0xff]  ;;  %v3948_v53 = vld [vmem:[%s4957_s5 + $0x18] sm:$0xff] }
  0x3d   : > { %5064 = vst [vmem:[#allocation57_spill] sm:$0xff] %v3943_v52  ;;  %5065 = vst [vmem:[#allocation58_spill] sm:$0xff] %v3948_v53  ;;  %v3953_v54 = vld [vmem:[%s4957_s5 + $0x20] sm:$0xff]  ;;  %v3958_v55 = vld [vmem:[%s4957_s5 + $0x28] sm:$0xff] }
  0x3e   : > { %5066 = vst [vmem:[#allocation59_spill] sm:$0xff] %v3953_v54  ;;  %5067 = vst [vmem:[#allocation60_spill] sm:$0xff] %v3958_v55  ;;  %v3963_v56 = vld [vmem:[%s4957_s5 + $0x30] sm:$0xff]  ;;  %v3968_v57 = vld [vmem:[%s4957_s5 + $0x38] sm:$0xff] }
  0x3f   : > { %5068 = vst [vmem:[#allocation61_spill] sm:$0xff] %v3963_v56  ;;  %5069 = vst [vmem:[#allocation62_spill] sm:$0xff] %v3968_v57  ;;  %v3973_v58 = vld [vmem:[%s4957_s5 + $0x40] sm:$0xff]  ;;  %v3978_v59 = vld [vmem:[%s4957_s5 + $0x48] sm:$0xff] }
  0x40   : > { %5070 = vst [vmem:[#allocation63_spill] sm:$0xff] %v3973_v58  ;;  %5071 = vst [vmem:[#allocation64_spill] sm:$0xff] %v3978_v59  ;;  %v3983_v60 = vld [vmem:[%s4957_s5 + $0x50] sm:$0xff]  ;;  %v3988_v61 = vld [vmem:[%s4957_s5 + $0x58] sm:$0xff] }
  0x41   : > { %5072 = vst [vmem:[#allocation65_spill] sm:$0xff] %v3983_v60  ;;  %5073 = vst [vmem:[#allocation66_spill] sm:$0xff] %v3988_v61  ;;  %v3993_v62 = vld [vmem:[%s4957_s5 + $0x60] sm:$0xff]  ;;  %v3998_v63 = vld [vmem:[%s4957_s5 + $0x68] sm:$0xff]  ;;  %v454_v61 = vlaneseq }
  0x42   : > { %5074 = vst [vmem:[#allocation67_spill] sm:$0xff] %v3993_v62  ;;  %5075 = vst [vmem:[#allocation68_spill] sm:$0xff] %v3998_v63  ;;  %v4003_v0 = vld [vmem:[%s4957_s5 + $0x70] sm:$0xff]  ;;  %v4008_v1 = vld [vmem:[%s4957_s5 + $0x78] sm:$0xff] }
  0x43   : > { %5076 = vst [vmem:[#allocation69_spill] sm:$0xff] %v4003_v0  ;;  %5077 = vst [vmem:[#allocation70_spill] sm:$0xff] %v4008_v1  ;;  %v4010_v32 = vld [vmem:[#allocation2] sm:$0x1]  ;;  %v4015_v33 = vld [vmem:[%s4953_s1 + $0x10] sm:$0xff]  ;;  %v4112_v49 = vshrl.u32 %v454_v61, 7 }
  0x44   : > { %5078 = vst [vmem:[#allocation71_spill] sm:$0xff] %v4010_v32  ;;  %5079 = vst [vmem:[#allocation72_spill] sm:$0xff] %v4015_v33  ;;  %385 = vperm.xlu1 %3481, %v4015_v33   ;;  %v4021_v24 = vld [vmem:[%s4953_s1] sm:$0xff]  ;;  %v4027_v25 = vld [vmem:[%s4953_s1 + $0x18] sm:$0xff] }
  0x45   : > { %5080 = vst [vmem:[#allocation73_spill] sm:$0xff] %v4021_v24  ;;  %375 = vperm.xlu0 %3480, %v4021_v24   ;;  %5081 = vst [vmem:[#allocation74_spill] sm:$0xff] %v4027_v25  ;;  %v4032_v30 = vld [vmem:[%s4953_s1 + $0x8] sm:$0xff]  ;;  %v4044_v22 = vld [vmem:[%s4953_s1 + $0x20] sm:$0xff]  ;;  %v4120_v60 = vsub.s32 0, %v4112_v49 }
  0x46   : > { %5082 = vst [vmem:[#allocation75_spill] sm:$0xff] %v4032_v30  ;;  %v4039_v31 = vld [vmem:[%s4953_s1 + $0x28] sm:$0xff]  ;;  %5084 = vst [vmem:[#allocation77_spill] sm:$0xff] %v4044_v22  ;;  %v4051_v23 = vld [vmem:[%s4953_s1 + $0x38] sm:$0xff] }
  0x47   : > { %5083 = vst [vmem:[#allocation76_spill] sm:$0xff] %v4039_v31  ;;  %5085 = vst [vmem:[#allocation78_spill] sm:$0xff] %v4051_v23  ;;  %v4056_v28 = vld [vmem:[%s4953_s1 + $0x30] sm:$0xff]  ;;  %v4063_v29 = vld [vmem:[%s4953_s1 + $0x48] sm:$0xff] }
  0x48   : > { %390 = vperm.xlu1 %3481, %v4027_v25   ;;  %5086 = vst [vmem:[#allocation79_spill] sm:$0xff] %v4056_v28  ;;  %5087 = vst [vmem:[#allocation80_spill] sm:$0xff] %v4063_v29  ;;  %v4068_v20 = vld [vmem:[%s4953_s1 + $0x40] sm:$0xff]  ;;  %v4075_v21 = vld [vmem:[%s4953_s1 + $0x58] sm:$0xff] }
  0x49   : > { %380 = vperm.xlu0 %3480, %v4032_v30   ;;  %5088 = vst [vmem:[#allocation81_spill] sm:$0xff] %v4068_v20  ;;  %5089 = vst [vmem:[#allocation82_spill] sm:$0xff] %v4075_v21  ;;  %v4080_v32 = vld [vmem:[%s4953_s1 + $0x50] sm:$0xff]  ;;  %v4087_v0 = vld [vmem:[%s4953_s1 + $0x68] sm:$0xff] }
  0x4a   : > { %5090 = vst [vmem:[#allocation83_spill] sm:$0xff] %v4080_v32  ;;  %5091 = vst [vmem:[#allocation84_spill] sm:$0xff] %v4087_v0  ;;  %v4092_v1 = vld [vmem:[%s4953_s1 + $0x60] sm:$0xff]  ;;  %v4102_v62 = vld [vmem:[%s4953_s1 + $0x78] sm:$0xff] }
  0x4b   : > { %5092 = vst [vmem:[#allocation85_spill] sm:$0xff] %v4092_v1  ;;  %v4107_v63 = vld [vmem:[%s4953_s1 + $0x70] sm:$0xff]  ;;  %5094 = vst [vmem:[#allocation87_spill] sm:$0xff] %v4112_v49  ;;  %v4123_v48 = vld [vmem:[%s4117_s25] sm:$0x1] }
  0x4c   : > { %400 = vperm.xlu1 %3481, %v4039_v31   ;;  %5093 = vst [vmem:[#allocation86_spill] sm:$0xff] %v4107_v63  ;;  %5095 = vst [vmem:[#allocation88_spill] sm:$0xff] %v4120_v60  ;;  %v457_v59 = vrot.slane %v4123_v48, %v4120_v60 }
  0x4d   : > { %395 = vperm.xlu0 %3480, %v4044_v22   ;;  %5096 = vst [vmem:[#allocation89_spill] sm:$0xff] %v4123_v48 }
  0x50   : > { %410 = vperm.xlu1 %3481, %v4051_v23  }
  0x51   : > { %405 = vperm.xlu0 %3480, %v4056_v28  }
  0x54   : > { %420 = vperm.xlu1 %3481, %v4063_v29  }
  0x55   : > { %415 = vperm.xlu0 %3480, %v4068_v20  }
  0x58   : > { %430 = vperm.xlu1 %3481, %v4075_v21  }
  0x59   : > { %425 = vperm.xlu0 %3480, %v4080_v32  }
  0x5c   : > { %440 = vperm.xlu1 %3481, %v4087_v0  }
  0x5d   : > { %435 = vperm.xlu0 %3480, %v4092_v1  }
  0x60   : > { %450 = vperm.xlu1 %3481, %v4102_v62  }
  0x61   : > { %445 = vperm.xlu0 %3480, %v4107_v63  }
  0xbf   : > { %v4127_v47 = vpop.permute.xlu1 %385 }
  0xc0   : > { %5097 = vst [vmem:[#allocation90_spill] sm:$0xff] %v4127_v47  ;;  %v4130_v58 = vmul.f32 %v457_v59, %v4127_v47  ;;  %v4132_v61 = vpop.permute.xlu0 %375 }
  0xc1   : > { %5099 = vst [vmem:[#allocation92_spill] sm:$0xff] %v4132_v61  ;;  %v4135_v46 = vmul.f32 %v457_v59, %v4132_v61 }
  0xc2   : > { %5098 = vst [vmem:[#allocation91_spill] sm:$0xff] %v4130_v58 }
  0xc3   : > { %5100 = vst [vmem:[#allocation93_spill] sm:$0xff] %v4135_v46  ;;  %v4137_v57 = vpop.permute.xlu1 %390 }
  0xc4   : > { %5101 = vst [vmem:[#allocation94_spill] sm:$0xff] %v4137_v57  ;;  %v4140_v49 = vmul.f32 %v457_v59, %v4137_v57  ;;  %v4142_v45 = vpop.permute.xlu0 %380 }
  0xc5   : > { %5103 = vst [vmem:[#allocation96_spill] sm:$0xff] %v4142_v45  ;;  %v4145_v56 = vmul.f32 %v457_v59, %v4142_v45 }
  0xc6   : > { %5102 = vst [vmem:[#allocation95_spill] sm:$0xff] %v4140_v49 }
  0xc7   : > { %5104 = vst [vmem:[#allocation97_spill] sm:$0xff] %v4145_v56  ;;  %v4147_v48 = vpop.permute.xlu1 %400 }
  0xc8   : > { %5105 = vst [vmem:[#allocation98_spill] sm:$0xff] %v4147_v48  ;;  %v4150_v47 = vmul.f32 %v457_v59, %v4147_v48  ;;  %v4152_v60 = vpop.permute.xlu0 %395 }
  0xc9   : > { %5107 = vst [vmem:[#allocation100_spill] sm:$0xff] %v4152_v60  ;;  %v4155_v61 = vmul.f32 %v457_v59, %v4152_v60 }
  0xca   : > { %5106 = vst [vmem:[#allocation99_spill] sm:$0xff] %v4150_v47 }
  0xcb   : > { %5108 = vst [vmem:[#allocation101_spill] sm:$0xff] %v4155_v61  ;;  %v4157_v46 = vpop.permute.xlu1 %410 }
  0xcc   : > { %5109 = vst [vmem:[#allocation102_spill] sm:$0xff] %v4157_v46  ;;  %v4160_v57 = vmul.f32 %v457_v59, %v4157_v46  ;;  %v4162_v58 = vpop.permute.xlu0 %405 }
  0xcd   : > { %5111 = vst [vmem:[#allocation104_spill] sm:$0xff] %v4162_v58  ;;  %v4165_v45 = vmul.f32 %v457_v59, %v4162_v58 }
  0xce   : > { %5110 = vst [vmem:[#allocation103_spill] sm:$0xff] %v4160_v57 }
  0xcf   : > { %5112 = vst [vmem:[#allocation105_spill] sm:$0xff] %v4165_v45  ;;  %v4167_v56 = vpop.permute.xlu1 %420 }
  0xd0   : > { %5113 = vst [vmem:[#allocation106_spill] sm:$0xff] %v4167_v56  ;;  %v4170_v48 = vmul.f32 %v457_v59, %v4167_v56  ;;  %v4172_v49 = vpop.permute.xlu0 %415 }
  0xd1   : > { %5115 = vst [vmem:[#allocation108_spill] sm:$0xff] %v4172_v49  ;;  %v4175_v60 = vmul.f32 %v457_v59, %v4172_v49 }
  0xd2   : > { %5114 = vst [vmem:[#allocation107_spill] sm:$0xff] %v4170_v48 }
  0xd3   : > { %5116 = vst [vmem:[#allocation109_spill] sm:$0xff] %v4175_v60  ;;  %v4177_v61 = vpop.permute.xlu1 %430 }
  0xd4   : > { %5117 = vst [vmem:[#allocation110_spill] sm:$0xff] %v4177_v61  ;;  %v4180_v46 = vmul.f32 %v457_v59, %v4177_v61  ;;  %v4182_v47 = vpop.permute.xlu0 %425 }
  0xd5   : > { %5119 = vst [vmem:[#allocation112_spill] sm:$0xff] %v4182_v47  ;;  %v4185_v58 = vmul.f32 %v457_v59, %v4182_v47 }
  0xd6   : > { %5118 = vst [vmem:[#allocation111_spill] sm:$0xff] %v4180_v46 }
  0xd7   : > { %5120 = vst [vmem:[#allocation113_spill] sm:$0xff] %v4185_v58  ;;  %v4187_v45 = vpop.permute.xlu1 %440  ;;  %v4210_v58 = vmov 0.0  }
  0xd8   : > { %5121 = vst [vmem:[#allocation114_spill] sm:$0xff] %v4187_v45  ;;  %v4190_v56 = vmul.f32 %v457_v59, %v4187_v45  ;;  %v4192_v57 = vpop.permute.xlu0 %435  ;;  %v4212_v45 = vmov 0.0  }
  0xd9   : > { %5123 = vst [vmem:[#allocation116_spill] sm:$0xff] %v4192_v57  ;;  %v4195_v49 = vmul.f32 %v457_v59, %v4192_v57 }
  0xda   : > { %5122 = vst [vmem:[#allocation115_spill] sm:$0xff] %v4190_v56 }
  0xdb   : > { %5124 = vst [vmem:[#allocation117_spill] sm:$0xff] %v4195_v49  ;;  %v4197_v60 = vpop.permute.xlu1 %450 }
  0xdc   : > { %5125 = vst [vmem:[#allocation118_spill] sm:$0xff] %v4197_v60  ;;  %v4200_v61 = vmul.f32 %v457_v59, %v4197_v60  ;;  %v4202_v48 = vpop.permute.xlu0 %445 }
  0xdd   : > { %5127 = vst [vmem:[#allocation120_spill] sm:$0xff] %v4202_v48  ;;  %v4205_v47 = vmul.f32 %v457_v59, %v4202_v48 }
  0xde   : > { %5126 = vst [vmem:[#allocation119_spill] sm:$0xff] %v4200_v61 }
  0xdf   : > { %5128 = vst [vmem:[#allocation121_spill] sm:$0xff] %v4205_v47 }
  0xe0 LB: >> { %5129 = vst [vmem:[#allocation122_spill] sm:$0xff] %v3594_v58  ;;  %5130 = vst [vmem:[#allocation123_spill] sm:$0xff] %v3598_v45  ;;  %v3644_v59 = vmov 0   ;;  %s483_s8 = scvt.s32.f32 %s3602_s30  ;;  %v5131_v63 = vld [vmem:[#allocation86_spill] sm:$0xff]  ;;  %v5132_v1 = vld [vmem:[#allocation85_spill] sm:$0xff]  ;;  %s3602_s30 = sphi %s4214_s30, %s480_s30   ;;  %v3598_v45 = vphi %v4212_v45, %v5230_v45   ;;  %v3594_v58 = vphi %v4210_v58, %v5229_v58  }
  0xe1   : >> { %3483 = vset.pattern.permute.xlu1 %v3644_v59  ;;  %3482 = vset.pattern.permute.xlu0 %v3644_v59  ;;  %v5133_v0 = vld [vmem:[#allocation84_spill] sm:$0xff]  ;;  %v5134_v21 = vld [vmem:[#allocation82_spill] sm:$0xff]  ;;  %v5135_v10 = vld [vmem:[#allocation15_spill] sm:$0xff] }
  0xe2   : >> { %s484_s11 = smul.f32 0.125, %s483_s8  ;;  %v5136_v23 = vld [vmem:[#allocation78_spill] sm:$0xff]  ;;  %v5137_v28 = vld [vmem:[#allocation79_spill] sm:$0xff]  ;;  %v5138_v31 = vld [vmem:[#allocation76_spill] sm:$0xff] }
  0xe3   : >> { %v5139_v9 = vld [vmem:[#allocation14_spill] sm:$0xff]  ;;  %v5140_v8 = vld [vmem:[#allocation13_spill] sm:$0xff]  ;;  %v5143_v7 = vld [vmem:[#allocation12_spill] sm:$0xff] }
  0xe4   : >> { %v485_v60 = vstv %s484_s11  ;;  %v5141_v22 = vld [vmem:[#allocation77_spill] sm:$0xff]  ;;  %v5142_v25 = vld [vmem:[#allocation74_spill] sm:$0xff]  ;;  %v5144_v6 = vld [vmem:[#allocation11_spill] sm:$0xff] }
  0xe5   : >> { %v500_v48 = vmul.f32 %v485_v60, %v5131_v63  ;;  %v498_v57 = vmul.f32 %v485_v60, %v5132_v1  ;;  %v501_v46 = vmul.f32 %v485_v60, %v4102_v62  ;;  %v499_v58 = vmul.f32 %v485_v60, %v5133_v0  ;;  %v5145_v33 = vld [vmem:[#allocation72_spill] sm:$0xff]  ;;  %v5146_v30 = vld [vmem:[#allocation75_spill] sm:$0xff]  ;;  %v5147_v5 = vld [vmem:[#allocation10_spill] sm:$0xff] }
  0xe6   : >> { %v497_v61 = vmul.f32 %v485_v60, %v5134_v21  ;;  %v496_v63 = vmul.f32 %v485_v60, %v4080_v32  ;;  %v495_v1 = vmul.f32 %v485_v60, %v4063_v29  ;;  %v5148_v4 = vld [vmem:[#allocation9_spill] sm:$0xff]  ;;  %v5150_v3 = vld [vmem:[#allocation8_spill] sm:$0xff]  ;;  %v5151_v2 = vld [vmem:[#allocation7_spill] sm:$0xff] }
  0xe7   : >> { %v516_v56 = vsub.f32 %v3811_v16, %v500_v48  ;;  %v514_v45 = vsub.f32 %v3801_v14, %v498_v57  ;;  %v517_v59 = vsub.f32 %v3816_v17, %v501_v46  ;;  %v515_v49 = vsub.f32 %v3806_v15, %v499_v58  ;;  %v5149_v24 = vld [vmem:[#allocation73_spill] sm:$0xff]  ;;  %v5152_v35 = vld [vmem:[#allocation40_spill] sm:$0xff]  ;;  %v5153_v34 = vld [vmem:[#allocation39_spill] sm:$0xff] }
  0xe8   : >> { %v513_v0 = vsub.f32 %v3796_v13, %v497_v61  ;;  %v512_v48 = vsub.f32 %v3791_v12, %v496_v63  ;;  %v494_v57 = vmul.f32 %v485_v60, %v4068_v20  ;;  %v511_v21 = vsub.f32 %v3786_v11, %v495_v1  ;;  %v5154_v37 = vld [vmem:[#allocation42_spill] sm:$0xff]  ;;  %v5155_v36 = vld [vmem:[#allocation41_spill] sm:$0xff]  ;;  %v5156_v19 = vld [vmem:[#allocation24_spill] sm:$0xff] }
  0xe9   : >> { %590 = vperm.xlu0 %3482, %v516_v56   ;;  %580 = vperm.xlu1 %3483, %v514_v45   ;;  %v493_v46 = vmul.f32 %v485_v60, %v5136_v23  ;;  %v492_v56 = vmul.f32 %v485_v60, %v5137_v28  ;;  %v491_v58 = vmul.f32 %v485_v60, %v5138_v31  ;;  %v5157_v18 = vld [vmem:[#allocation23_spill] sm:$0xff]  ;;  %v5158_v27 = vld [vmem:[#allocation32_spill] sm:$0xff]  ;;  %v5164_v40 = vld [vmem:[#allocation45_spill] sm:$0xff] }
  0xea   : >> { %v510_v45 = vsub.f32 %v5135_v10, %v494_v57  ;;  %v490_v61 = vmul.f32 %v485_v60, %v5141_v22  ;;  %v489_v1 = vmul.f32 %v485_v60, %v5142_v25  ;;  %v487_v57 = vmul.f32 %v485_v60, %v5146_v30  ;;  %v5159_v26 = vld [vmem:[#allocation31_spill] sm:$0xff]  ;;  %v5162_v39 = vld [vmem:[#allocation44_spill] sm:$0xff]  ;;  %v5165_v52 = vld [vmem:[#allocation57_spill] sm:$0xff] }
  0xeb   : >> { %v508_v63 = vsub.f32 %v5140_v8, %v492_v56  ;;  %v5160_v50 = vld [vmem:[#allocation55_spill] sm:$0xff]  ;;  %v5163_v51 = vld [vmem:[#allocation56_spill] sm:$0xff]  ;;  %v5166_v41 = vld [vmem:[#allocation46_spill] sm:$0xff] }
  0xec   : >> { %v503_v56 = vsub.f32 %v5150_v3, %v487_v57  ;;  %v5161_v38 = vld [vmem:[#allocation43_spill] sm:$0xff]  ;;  %v5167_v53 = vld [vmem:[#allocation58_spill] sm:$0xff]  ;;  %v5170_v43 = vld [vmem:[#allocation48_spill] sm:$0xff] }
  0xed   : >> { %595 = vperm.xlu0 %3482, %v517_v59   ;;  %585 = vperm.xlu1 %3483, %v515_v49   ;;  %v509_v49 = vsub.f32 %v5139_v9, %v493_v46  ;;  %v506_v59 = vsub.f32 %v5144_v6, %v490_v61  ;;  %v486_v46 = vmul.f32 %v485_v60, %v5149_v24  ;;  %v5168_v42 = vld [vmem:[#allocation47_spill] sm:$0xff]  ;;  %v5171_v55 = vld [vmem:[#allocation60_spill] sm:$0xff]  ;;  %v5172_v44 = vld [vmem:[#allocation49_spill] sm:$0xff] }
  0xee   : >> { %v5169_v54 = vld [vmem:[#allocation59_spill] sm:$0xff]  ;;  %v5174_v61 = vld [vmem:[#allocation50_spill] sm:$0xff]  ;;  %v5179_v57 = vld [vmem:[#allocation64_spill] sm:$0xff] }
  0xef   : >> { %v5189_v47 = vld [vmem:[#allocation121_spill] sm:$0xff] }
  0xf1   : >> { %575 = vperm.xlu1 %3483, %v513_v0   ;;  %570 = vperm.xlu0 %3482, %v512_v48   ;;  %v507_v0 = vsub.f32 %v5143_v7, %v491_v58  ;;  %v488_v48 = vmul.f32 %v485_v60, %v5145_v33  ;;  %v502_v58 = vsub.f32 %v5151_v2, %v486_v46  ;;  %v5182_v46 = vld [vmem:[#allocation54_spill] sm:$0xff] }
  0xf2   : >> { %v4268_v60 = vcombine.low %v5159_v26, %v5158_v27 }
  0xf4   : >> { %3174 = vmatprep.mubr.bf16.mxu1 %v4268_v60 }
  0xf5   : >> { %565 = vperm.xlu1 %3483, %v511_v21   ;;  %560 = vperm.xlu0 %3482, %v510_v45   ;;  %v505_v21 = vsub.f32 %v5147_v5, %v489_v1  ;;  %v504_v45 = vsub.f32 %v5148_v4, %v488_v48  ;;  %v5175_v1 = vld [vmem:[#allocation62_spill] sm:$0xff]  ;;  %v5178_v48 = vld [vmem:[#allocation52_spill] sm:$0xff] }
  0xf9   : >> { %555 = vperm.xlu1 %3483, %v509_v49   ;;  %550 = vperm.xlu0 %3482, %v508_v63   ;;  %v4264_v49 = vcombine.low %v5157_v18, %v5156_v19  ;;  %v5173_v63 = vld [vmem:[#allocation61_spill] sm:$0xff] }
  0xfb   : >> { %3166 = vmatprep.mubr.bf16.mxu0 %v4264_v49 }
  0xfd   : >> { %545 = vperm.xlu1 %3483, %v507_v0   ;;  %540 = vperm.xlu0 %3482, %v506_v59   ;;  %v5176_v0 = vld [vmem:[#allocation51_spill] sm:$0xff] }
  0xfe   : >> { %v5177_v59 = vld [vmem:[#allocation63_spill] sm:$0xff] }
 0x101   : >> { %535 = vperm.xlu1 %3483, %v505_v21   ;;  %530 = vperm.xlu0 %3482, %v504_v45   ;;  %v5180_v21 = vld [vmem:[#allocation53_spill] sm:$0xff] }
 0x102   : >> { %v5181_v45 = vld [vmem:[#allocation65_spill] sm:$0xff] }
 0x105   : >> { %525 = vperm.xlu1 %3483, %v503_v56   ;;  %520 = vperm.xlu0 %3482, %v502_v58   ;;  %v5183_v56 = vld [vmem:[#allocation66_spill] sm:$0xff]  ;;  %v5184_v58 = vld [vmem:[#allocation68_spill] sm:$0xff] }
 0x109   : >> { %661 = vperm.xlu1 %3483, %v5152_v35   ;;  %656 = vperm.xlu0 %3482, %v5153_v34  }
 0x10d   : >> { %671 = vperm.xlu1 %3483, %v5154_v37   ;;  %666 = vperm.xlu0 %3482, %v5155_v36  }
 0x111   : >> { %913 = vperm.xlu1 %3483, %v5160_v50   ;;  %676 = vperm.xlu0 %3482, %v5161_v38  }
 0x115   : >> { %681 = vperm.xlu1 %3483, %v5162_v39   ;;  %918 = vperm.xlu0 %3482, %v5163_v51   ;;  %v5195_v51 = vld [vmem:[#allocation107_spill] sm:$0xff] }
 0x119   : >> { %686 = vperm.xlu1 %3483, %v5164_v40   ;;  %923 = vperm.xlu0 %3482, %v5165_v52  }
 0x11d   : >> { %691 = vperm.xlu1 %3483, %v5166_v41   ;;  %928 = vperm.xlu0 %3482, %v5167_v53  }
 0x121   : >> { %696 = vperm.xlu1 %3483, %v5168_v42   ;;  %933 = vperm.xlu0 %3482, %v5169_v54   ;;  %v5193_v42 = vld [vmem:[#allocation111_spill] sm:$0xff] }
 0x125   : >> { %701 = vperm.xlu1 %3483, %v5170_v43   ;;  %938 = vperm.xlu0 %3482, %v5171_v55  }
 0x129   : >> { %706 = vperm.xlu1 %3483, %v5172_v44   ;;  %943 = vperm.xlu0 %3482, %v5173_v63   ;;  %v5185_v63 = vld [vmem:[#allocation67_spill] sm:$0xff] }
 0x12d   : >> { %711 = vperm.xlu1 %3483, %v5174_v61   ;;  %948 = vperm.xlu0 %3482, %v5175_v1   ;;  %v5186_v61 = vld [vmem:[#allocation70_spill] sm:$0xff]  ;;  %v5187_v1 = vld [vmem:[#allocation69_spill] sm:$0xff] }
 0x131   : >> { %716 = vperm.xlu1 %3483, %v5176_v0   ;;  %953 = vperm.xlu0 %3482, %v5177_v59   ;;  %v5188_v0 = vld [vmem:[#allocation71_spill] sm:$0xff] }
 0x135   : >> { %721 = vperm.xlu1 %3483, %v5178_v48   ;;  %958 = vperm.xlu0 %3482, %v5179_v57  }
 0x139   : >> { %726 = vperm.xlu1 %3483, %v5180_v21   ;;  %963 = vperm.xlu0 %3482, %v5181_v45   ;;  %v5190_v21 = vld [vmem:[#allocation117_spill] sm:$0xff] }
 0x13d   : >> { %731 = vperm.xlu1 %3483, %v5182_v46   ;;  %968 = vperm.xlu0 %3482, %v5183_v56   ;;  %v5191_v56 = vld [vmem:[#allocation119_spill] sm:$0xff] }
 0x141   : >> { %978 = vperm.xlu1 %3483, %v5184_v58   ;;  %973 = vperm.xlu0 %3482, %v5185_v63   ;;  %v5192_v58 = vld [vmem:[#allocation115_spill] sm:$0xff] }
 0x145   : >> { %988 = vperm.xlu1 %3483, %v5186_v61   ;;  %983 = vperm.xlu0 %3482, %v5187_v1  }
 0x149   : >> { %1030 = vperm.xlu0 %3482, %v5188_v0  }
 0x164   : >> { %v591_v59 = vpop.permute.xlu0 %590  ;;  %v581_v48 = vpop.permute.xlu1 %580 }
 0x165   : >> { %v612_v57 = vadd.f32 %v591_v59, %v5189_v47  ;;  %v610_v45 = vadd.f32 %v581_v48, %v5190_v21  ;;  %v5194_v59 = vld [vmem:[#allocation113_spill] sm:$0xff] }
 0x167   : >> { %v628_v18 = vmul.f32 0.1, %v612_v57  ;;  %v626_v63 = vmul.f32 0.1, %v610_v45 }
 0x168   : >> { %v596_v46 = vpop.permute.xlu0 %595  ;;  %v586_v19 = vpop.permute.xlu1 %585 }
 0x169   : >> { %v613_v26 = vadd.f32 %v596_v46, %v5191_v56  ;;  %v611_v27 = vadd.f32 %v586_v19, %v5192_v58  ;;  %v644_v55 = vmax.f32 %v612_v57, %v628_v18  ;;  %v642_v48 = vmax.f32 %v610_v45, %v626_v63  ;;  %v5196_v18 = vld [vmem:[#allocation109_spill] sm:$0xff]  ;;  %v5197_v45 = vld [vmem:[#allocation103_spill] sm:$0xff] }
 0x16b   : >> { %v629_v44 = vmul.f32 0.1, %v613_v26  ;;  %v627_v61 = vmul.f32 0.1, %v611_v27 }
 0x16c   : >> { %v576_v1 = vpop.permute.xlu1 %575  ;;  %v571_v43 = vpop.permute.xlu0 %570 }
 0x16d   : >> { %v645_v0 = vmax.f32 %v613_v26, %v629_v44  ;;  %v643_v54 = vmax.f32 %v611_v27, %v627_v61  ;;  %v609_v53 = vadd.f32 %v576_v1, %v5193_v42  ;;  %v608_v47 = vadd.f32 %v571_v43, %v5194_v59 }
 0x16f   : >> { %v653_v21 = vpack.c.bf16 %v645_v0, %v644_v55  ;;  %v625_v41 = vmul.f32 0.1, %v609_v53  ;;  %v624_v52 = vmul.f32 0.1, %v608_v47  ;;  %v652_v40 = vpack.c.bf16 %v643_v54, %v642_v48  ;;  %v5199_v48 = vld [vmem:[#allocation99_spill] sm:$0xff] }
 0x170   : >> { %v566_v46 = vpop.permute.xlu1 %565  ;;  %v561_v56 = vpop.permute.xlu0 %560 }
 0x171   : >> { %v641_v19 = vmax.f32 %v609_v53, %v625_v41  ;;  %v640_v58 = vmax.f32 %v608_v47, %v624_v52  ;;  %v607_v39 = vadd.f32 %v566_v46, %v5195_v51  ;;  %v606_v57 = vadd.f32 %v561_v56, %v5196_v18  ;;  %3150 = vmatprep.subr.bf16.mxu0 %v653_v21  ;;  %v5198_v47 = vld [vmem:[#allocation105_spill] sm:$0xff] }
 0x172   : >> { %3278 = vmatprep.subr.bf16.mxu1 %v653_v21  ;;  %3151 = vmatpush3.bf16.msra.mxu0 %v653_v21  ;;  %v5200_v46 = vld [vmem:[#allocation101_spill] sm:$0xff] }
 0x173   : >> { %v623_v26 = vmul.f32 0.1, %v607_v39  ;;  %v622_v27 = vmul.f32 0.1, %v606_v57  ;;  %3286 = vmatpush3.bf16.msra.mxu1 %v653_v21  ;;  %3152 = vmatprep.subr.bf16.mxu0 %v652_v40  ;;  %v651_v42 = vpack.c.bf16 %v641_v19, %v640_v58 }
 0x174   : >> { %3279 = vmatprep.subr.bf16.mxu1 %v652_v40  ;;  %v556_v43 = vpop.permute.xlu1 %555  ;;  %v551_v44 = vpop.permute.xlu0 %550 }
 0x175   : >> { %v639_v54 = vmax.f32 %v607_v39, %v623_v26  ;;  %v638_v55 = vmax.f32 %v606_v57, %v622_v27  ;;  %v605_v41 = vadd.f32 %v556_v43, %v5197_v45  ;;  %v604_v52 = vadd.f32 %v551_v44, %v5198_v47  ;;  %v5201_v27 = vld [vmem:[#allocation95_spill] sm:$0xff] }
 0x176   : >> { %3153 = vmatpush3.bf16.msra.mxu0 %v652_v40  ;;  %v5202_v44 = vld [vmem:[#allocation91_spill] sm:$0xff] }
 0x177   : >> { %v621_v51 = vmul.f32 0.1, %v605_v41  ;;  %v620_v53 = vmul.f32 0.1, %v604_v52  ;;  %3287 = vmatpush3.bf16.msra.mxu1 %v652_v40  ;;  %3154 = vmatprep.subr.bf16.mxu0 %v651_v42  ;;  %v650_v63 = vpack.c.bf16 %v639_v54, %v638_v55 }
 0x178   : >> { %3280 = vmatprep.subr.bf16.mxu1 %v651_v42  ;;  %v546_v61 = vpop.permute.xlu1 %545  ;;  %v541_v1 = vpop.permute.xlu0 %540 }
 0x179   : >> { %v637_v0 = vmax.f32 %v605_v41, %v621_v51  ;;  %v636_v59 = vmax.f32 %v604_v52, %v620_v53  ;;  %v603_v21 = vadd.f32 %v546_v61, %v5199_v48  ;;  %v602_v39 = vadd.f32 %v541_v1, %v5200_v46  ;;  %v5203_v53 = vld [vmem:[#allocation97_spill] sm:$0xff] }
 0x17a   : >> { %3155 = vmatpush3.bf16.msra.mxu0 %v651_v42  ;;  %v5204_v1 = vld [vmem:[#allocation93_spill] sm:$0xff] }
 0x17b   : >> { %v619_v56 = vmul.f32 0.1, %v603_v21  ;;  %v618_v19 = vmul.f32 0.1, %v602_v39  ;;  %3288 = vmatpush3.bf16.msra.mxu1 %v651_v42  ;;  %3156 = vmatprep.subr.bf16.mxu0 %v650_v63  ;;  %v649_v58 = vpack.c.bf16 %v637_v0, %v636_v59 }
 0x17c   : >> { %3281 = vmatprep.subr.bf16.mxu1 %v650_v63  ;;  %v536_v18 = vpop.permute.xlu1 %535  ;;  %v531_v40 = vpop.permute.xlu0 %530 }
 0x17d   : >> { %v635_v57 = vmax.f32 %v603_v21, %v619_v56  ;;  %v634_v26 = vmax.f32 %v602_v39, %v618_v19  ;;  %v601_v43 = vadd.f32 %v536_v18, %v5201_v27  ;;  %v600_v54 = vadd.f32 %v531_v40, %v5202_v44  ;;  %v5205_v56 = vld [vmem:[#allocation26_spill] sm:$0xff]  ;;  %v5206_v19 = vld [vmem:[#allocation25_spill] sm:$0xff]  ;;  %v5212_v27 = vld [vmem:[#allocation27_spill] sm:$0xff] }
 0x17e   : >> { %3157 = vmatpush3.bf16.msra.mxu0 %v650_v63  ;;  %v4319_v18 = vcombine.low %v5206_v19, %v5205_v56  ;;  %v5209_v40 = vld [vmem:[#allocation33_spill] sm:$0xff]  ;;  %v5214_v44 = vld [vmem:[#allocation36_spill] sm:$0xff] }
 0x17f   : >> { %v617_v55 = vmul.f32 0.1, %v601_v43  ;;  %v616_v45 = vmul.f32 0.1, %v600_v54  ;;  %3289 = vmatpush3.bf16.msra.mxu1 %v650_v63  ;;  %3158 = vmatprep.subr.bf16.mxu0 %v649_v58  ;;  %v648_v41 = vpack.c.bf16 %v635_v57, %v634_v26  ;;  %v5211_v26 = vld [vmem:[#allocation28_spill] sm:$0xff] }
 0x180   : >> { %3282 = vmatprep.subr.bf16.mxu1 %v649_v58  ;;  %v526_v47 = vpop.permute.xlu1 %525  ;;  %v521_v42 = vpop.permute.xlu0 %520  ;;  %5207 = vst [vmem:[#allocation124_spill] sm:$0xff] %v4319_v18 }
 0x181   : >> { %v633_v52 = vmax.f32 %v601_v43, %v617_v55  ;;  %v632_v51 = vmax.f32 %v600_v54, %v616_v45  ;;  %v599_v61 = vadd.f32 %v526_v47, %v5203_v53  ;;  %v598_v0 = vadd.f32 %v521_v42, %v5204_v1  ;;  %v5215_v54 = vld [vmem:[#allocation35_spill] sm:$0xff]  ;;  %v5217_v45 = vld [vmem:[#allocation30_spill] sm:$0xff] }
 0x182   : >> { %3159 = vmatpush3.bf16.msra.mxu0 %v649_v58  ;;  %v4327_v43 = vcombine.low %v5212_v27, %v5211_v26  ;;  %v4331_v55 = vcombine.low %v5215_v54, %v5214_v44  ;;  %v5220_v42 = vld [vmem:[#allocation38_spill] sm:$0xff] }
 0x183   : >> { %v615_v59 = vmul.f32 0.1, %v599_v61  ;;  %v614_v48 = vmul.f32 0.1, %v598_v0  ;;  %3290 = vmatpush3.bf16.msra.mxu1 %v649_v58  ;;  %3160 = vmatprep.subr.bf16.mxu0 %v648_v41  ;;  %v647_v21 = vpack.c.bf16 %v633_v52, %v632_v51  ;;  %v5208_v58 = vld [vmem:[#allocation34_spill] sm:$0xff]  ;;  %v5221_v52 = vld [vmem:[#allocation37_spill] sm:$0xff] }
 0x184   : >> { %3283 = vmatprep.subr.bf16.mxu1 %v648_v41  ;;  %v4323_v57 = vcombine.low %v5209_v40, %v5208_v58  ;;  %5213 = vst [vmem:[#allocation126_spill] sm:$0xff] %v4327_v43  ;;  %5216 = vst [vmem:[#allocation127_spill] sm:$0xff] %v4331_v55  ;;  %v4343_v51 = vcombine.low %v5221_v52, %v5220_v42  ;;  %v657_v53 = vpop.permute.xlu0 %656 }
 0x185   : >> { %v631_v46 = vmax.f32 %v599_v61, %v615_v59  ;;  %v630_v63 = vmax.f32 %v598_v0, %v614_v48  ;;  %v662_v61 = vpop.permute.xlu1 %661 }
 0x186   : >> { %3161 = vmatpush3.bf16.msra.mxu0 %v648_v41  ;;  %5210 = vst [vmem:[#allocation125_spill] sm:$0xff] %v4323_v57  ;;  %5222 = vst [vmem:[#allocation129_spill] sm:$0xff] %v4343_v51 }
 0x187   : >> { %3291 = vmatpush3.bf16.msra.mxu1 %v648_v41  ;;  %3162 = vmatprep.subr.bf16.mxu0 %v647_v21  ;;  %v646_v39 = vpack.c.bf16 %v631_v46, %v630_v63  ;;  %v5218_v41 = vld [vmem:[#allocation29_spill] sm:$0xff] }
 0x188   : >> { %3284 = vmatprep.subr.bf16.mxu1 %v647_v21  ;;  %v4339_v47 = vcombine.low %v5218_v41, %v5217_v45  ;;  %v667_v1 = vpop.permute.xlu0 %666 }
 0x189   : >> { %v672_v0 = vpop.permute.xlu1 %671 }
 0x18a   : >> { %3163 = vmatpush3.bf16.msra.mxu0 %v647_v21  ;;  %5219 = vst [vmem:[#allocation128_spill] sm:$0xff] %v4339_v47 }
 0x18b   : >> { %3292 = vmatpush3.bf16.msra.mxu1 %v647_v21  ;;  %3164 = vmatprep.subr.bf16.mxu0 %v646_v39 }
 0x18c   : >> { %3285 = vmatprep.subr.bf16.mxu1 %v646_v39  ;;  %v677_v59 = vpop.permute.xlu0 %676 }
 0x18d   : >> { %v914_v48 = vpop.permute.xlu1 %913 }
 0x18e   : >> { %3165 = vmatpush3.bf16.msra.mxu0 %v646_v39 }
 0x18f   : >> { %3293 = vmatpush3.bf16.msra.mxu1 %v646_v39 }
 0x190   : >> { %v919_v21 = vpop.permute.xlu0 %918 }
 0x191   : >> { %3167 = vmatmul.mubr.bf16.vlgmr.msra.gmra.mxu0 %v4319_v18  ;;  %v682_v46 = vpop.permute.xlu1 %681 }
 0x192   : >> { %3175 = vmatmul.mubr.bf16.vlgmr.msra.gmra.mxu1 %v4323_v57  ;;  %3170 = vmatprep.mubr.bf16.mxu0 %v4327_v43 }
 0x193   : >> { %3178 = vmatprep.mubr.bf16.mxu1 %v4331_v55 }
 0x194   : >> { %v924_v63 = vpop.permute.xlu0 %923 }
 0x195   : >> { %v687_v39 = vpop.permute.xlu1 %686 }
 0x198   : >> { %v929_v56 = vpop.permute.xlu0 %928 }
 0x199   : >> { %3171 = vmatmul.mubr.bf16.gmra.mxu0 %v4339_v47  ;;  %v692_v19 = vpop.permute.xlu1 %691 }
 0x19a   : >> { %3179 = vmatmul.mubr.bf16.gmra.mxu1 %v4343_v51 }
 0x19c   : >> { %v934_v58 = vpop.permute.xlu0 %933 }
 0x19d   : >> { %v697_v40 = vpop.permute.xlu1 %696 }
 0x1a0   : >> { %v4347_v26 = vpop.permute.xlu0 %938 }
 0x1a1   : >> { %v702_v27 = vpop.permute.xlu1 %701 }
 0x1a4   : >> { %v4349_v44 = vpop.permute.xlu0 %943 }
 0x1a5   : >> { %v707_v54 = vpop.permute.xlu1 %706 }
 0x1a8   : >> { %v4351_v52 = vpop.permute.xlu0 %948 }
 0x1a9   : >> { %v712_v57 = vpop.permute.xlu1 %711 }
 0x1ac   : >> { %v954_v3 = vpop.permute.xlu0 %953 }
 0x1ad   : >> { %v717_v33 = vpop.permute.xlu1 %716 }
 0x251   : >> { %v3168_v45 = vpop.f32.mrf.mxu0 }
 0x252   : >> { %v3176_v41 = vpop.f32.mrf.mxu1  ;;  %v825_v51 = vadd.f32 %v3168_v45, %v667_v1 }
 0x253   : >> { %v816_v42 = vpop.f32.mrf.mxu0 }
 0x254   : >> { %v817_v47 = vadd.f32 %v816_v42, %v657_v53  ;;  %v848_v55 = vpop.f32.mrf.mxu1  ;;  %v881_v37 = vmul.f32 0.1, %v825_v51 }
 0x255   : >> { %v3169_v43 = vpop.f32.mrf.mxu0  ;;  %v849_v28 = vadd.f32 %v848_v55, %v697_v40 }
 0x256   : >> { %v879_v18 = vmul.f32 0.1, %v817_v47  ;;  %v828_v38 = vadd.f32 %v3169_v43, %v672_v0  ;;  %v3177_v50 = vpop.f32.mrf.mxu1  ;;  %v897_v6 = vmax.f32 %v825_v51, %v881_v37  ;;  %v722_v37 = vpop.permute.xlu1 %721 }
 0x257   : >> { %v819_v36 = vpop.f32.mrf.mxu0 }
 0x258   : >> { %v820_v34 = vadd.f32 %v819_v36, %v662_v61  ;;  %v851_v35 = vpop.f32.mrf.mxu1  ;;  %v895_v24 = vmax.f32 %v817_v47, %v879_v18  ;;  %v882_v4 = vmul.f32 0.1, %v828_v38  ;;  %v959_v61 = vpop.permute.xlu0 %958  ;;  %v993_v9 = vmul.f32 %v924_v63, %v897_v6 }
 0x259   : >> { %v3172_v2 = vpop.f32.mrf.mxu0 }
 0x25a   : >> { %v880_v5 = vmul.f32 0.1, %v820_v34  ;;  %v3180_v53 = vpop.f32.mrf.mxu1  ;;  %v841_v42 = vadd.f32 %v3172_v2, %v687_v39  ;;  %v991_v25 = vmul.f32 %v914_v48, %v895_v24  ;;  %v898_v43 = vmax.f32 %v828_v38, %v882_v4  ;;  %v727_v39 = vpop.permute.xlu1 %726 }
 0x25b   : >> { %v832_v30 = vpop.f32.mrf.mxu0  ;;  %v857_v24 = vadd.f32 %v3176_v41, %v707_v54 }
 0x25c   : >> { %v896_v1 = vmax.f32 %v820_v34, %v880_v5  ;;  %v833_v45 = vadd.f32 %v832_v30, %v677_v59  ;;  %v864_v47 = vpop.f32.mrf.mxu1  ;;  %v885_v23 = vmul.f32 0.1, %v841_v42  ;;  %v994_v5 = vmul.f32 %v929_v56, %v898_v43  ;;  %v964_v6 = vpop.permute.xlu0 %963 }
 0x25d   : >> { %v3173_v7 = vpop.f32.mrf.mxu0  ;;  %v852_v30 = vadd.f32 %v851_v35, %v702_v27  ;;  %v889_v56 = vmul.f32 0.1, %v857_v24 }
 0x25e   : >> { %v992_v0 = vmul.f32 %v919_v21, %v896_v1  ;;  %v883_v22 = vmul.f32 0.1, %v833_v45  ;;  %v844_v8 = vadd.f32 %v3173_v7, %v692_v19  ;;  %v3181_v59 = vpop.f32.mrf.mxu1  ;;  %v887_v7 = vmul.f32 0.1, %v849_v28 }
 0x25f   : >> { %v835_v36 = vpop.f32.mrf.mxu0  ;;  %v901_v48 = vmax.f32 %v841_v42, %v885_v23  ;;  %v888_v63 = vmul.f32 0.1, %v852_v30  ;;  %v865_v19 = vadd.f32 %v864_v47, %v717_v33 }
 0x260   : >> { %v1007_v31 = vadd.f32 %v992_v0, %v991_v25  ;;  %v899_v18 = vmax.f32 %v833_v45, %v883_v22  ;;  %v836_v10 = vadd.f32 %v835_v36, %v682_v46  ;;  %v886_v2 = vmul.f32 0.1, %v844_v8  ;;  %v732_v45 = vpop.permute.xlu1 %731 }
 0x261   : >> { %v860_v25 = vadd.f32 %v3177_v50, %v712_v57  ;;  %v997_v35 = vmul.f32 %v4349_v44, %v901_v48  ;;  %v904_v27 = vmax.f32 %v852_v30, %v888_v63  ;;  %v969_v50 = vpop.permute.xlu0 %968  ;;  %v905_v57 = vmax.f32 %v857_v24, %v889_v56 }
 0x262   : >> { %v1008_v34 = vadd.f32 %v1007_v31, %v993_v9  ;;  %v884_v51 = vmul.f32 0.1, %v836_v10  ;;  %v995_v4 = vmul.f32 %v934_v58, %v899_v18  ;;  %v902_v55 = vmax.f32 %v844_v8, %v886_v2  ;;  %v867_v9 = vpop.f32.mrf.mxu1 }
 0x263   : >> { %v903_v31 = vmax.f32 %v849_v28, %v887_v7  ;;  %v890_v40 = vmul.f32 0.1, %v860_v25  ;;  %v868_v54 = vadd.f32 %v867_v9, %v722_v37  ;;  %v873_v8 = vadd.f32 %v3180_v53, %v727_v39  ;;  %v5223_v9 = vld [vmem:[#allocation88_spill] sm:$0xff] }
 0x264   : >> { %v1009_v38 = vadd.f32 %v1008_v34, %v994_v5  ;;  %v900_v21 = vmax.f32 %v836_v10, %v884_v51  ;;  %v998_v23 = vmul.f32 %v4351_v52, %v902_v55  ;;  %v891_v1 = vmul.f32 0.1, %v865_v19  ;;  %v979_v2 = vpop.permute.xlu1 %978 }
 0x265   : >> { %v999_v41 = vmul.f32 %v954_v3, %v903_v31  ;;  %v906_v42 = vmax.f32 %v860_v25, %v890_v40  ;;  %v1000_v43 = vmul.f32 %v959_v61, %v904_v27  ;;  %v876_v28 = vadd.f32 %v3181_v59, %v732_v45  ;;  %v974_v5 = vpop.permute.xlu0 %973 }
 0x266   : >> { %v1010_v22 = vadd.f32 %v1009_v38, %v995_v4  ;;  %v996_v46 = vmul.f32 %v4347_v26, %v900_v21  ;;  %v892_v44 = vmul.f32 0.1, %v868_v54  ;;  %v1001_v33 = vmul.f32 %v964_v6, %v905_v57  ;;  %v5227_v57 = vld [vmem:[#allocation123_spill] sm:$0xff] }
 0x267   : >> { %v893_v36 = vmul.f32 0.1, %v873_v8  ;;  %v907_v18 = vmax.f32 %v865_v19, %v891_v1  ;;  %v1002_v52 = vmul.f32 %v969_v50, %v906_v42  ;;  %v894_v34 = vmul.f32 0.1, %v876_v28  ;;  %v5224_v19 = vld [vmem:[#allocation87_spill] sm:$0xff] }
 0x268   : >> { %v1011_v58 = vadd.f32 %v1010_v22, %v996_v46  ;;  %v908_v37 = vmax.f32 %v868_v54, %v892_v44  ;;  %v989_v48 = vpop.permute.xlu1 %988 }
 0x269   : >> { %v909_v3 = vmax.f32 %v873_v8, %v893_v36  ;;  %v1003_v53 = vmul.f32 %v974_v5, %v907_v18  ;;  %v910_v24 = vmax.f32 %v876_v28, %v894_v34  ;;  %v984_v61 = vpop.permute.xlu0 %983  ;;  %v5228_v8 = vld [vmem:[#allocation122_spill] sm:$0xff] }
 0x26a   : >> { %v1012_v10 = vadd.f32 %v1011_v58, %v997_v35  ;;  %v1004_v4 = vmul.f32 %v979_v2, %v908_v37  ;;  %v4358_v58 = vadd.s32 8, %v5224_v19 }
 0x26b   : >> { %v1005_v59 = vmul.f32 %v984_v61, %v909_v3  ;;  %v1006_v21 = vmul.f32 %v989_v48, %v910_v24 }
 0x26c   : >> { %v1013_v26 = vadd.f32 %v1012_v10, %v998_v23  ;;  %v5225_v40 = vmov %v4358_v58  ;;  %v1042_v23 = vstv %s3602_s30  ;;  %v5226_v10 = vld [vmem:[#allocation89_spill] sm:$0xff]  ;;  %s480_s30 = sadd.s32 1, %s3602_s30  }
 0x26d   : >> { %v1031_v39 = vpop.permute.xlu0 %1030  ;;  %vm1043_vm0 = vcmp.eq.s32.totalorder %v5224_v19, %v1042_v23  ;;  %vm1044_vm1 = vcmp.eq.s32.totalorder %v5225_v40, %v1042_v23  ;;  %p477_p6 = scmp.ge.s32.totalorder %s480_s30, 9  }
 0x26e   : >> { %v1014_v0 = vadd.f32 %v1013_v26, %v999_v41  ;;  %v1036_v31 = vrot.slane %v1031_v39, %v5223_v9  ;;  %v4377_v26 = vld [vmem:[%s4117_s25 + $0x1] sm:$0x1] (%p477_p6)  ;;  %v5238_v18 = vld [vmem:[#allocation94_spill] sm:$0xff] (%p477_p6)  ;;  %v5240_v5 = vld [vmem:[#allocation100_spill] sm:$0xff] (%p477_p6)  ;;  %s4433_s12 = smov (%p477_p6), 0  }
 0x26f   : > { %v5242_v34 = vld [vmem:[#allocation98_spill] sm:$0xff] (%p477_p6)  ;;  %v5252_v61 = vld [vmem:[#allocation112_spill] sm:$0xff] (%p477_p6) }
 0x270   : >> { %v1015_v47 = vadd.f32 %v1014_v0, %v1000_v43  ;;  %v5232_v43 = vld [vmem:[#allocation92_spill] sm:$0xff] (%p477_p6)  ;;  %v5246_v3 = vld [vmem:[#allocation102_spill] sm:$0xff] (%p477_p6) }
 0x271   : > { %v5234_v0 = vld [vmem:[#allocation96_spill] sm:$0xff] (%p477_p6) }
 0x272   : >> { %v1016_v30 = vadd.f32 %v1015_v47, %v1001_v33  ;;  %v5236_v33 = vld [vmem:[#allocation90_spill] sm:$0xff] (%p477_p6) }
 0x274   : >> { %v1017_v51 = vadd.f32 %v1016_v30, %v1002_v52  ;;  %v5244_v30 = vld [vmem:[#allocation104_spill] sm:$0xff] (%p477_p6) }
 0x276   : >> { %v1018_v38 = vadd.f32 %v1017_v51, %v1003_v53  ;;  %v5248_v51 = vld [vmem:[#allocation108_spill] sm:$0xff] (%p477_p6) }
 0x278   : >> { %v1019_v7 = vadd.f32 %v1018_v38, %v1004_v4  ;;  %v5250_v4 = vld [vmem:[#allocation106_spill] sm:$0xff] (%p477_p6) }
 0x27a   : >> { %v1020_v6 = vadd.f32 %v1019_v7, %v1005_v59  ;;  %v5254_v7 = vld [vmem:[#allocation110_spill] sm:$0xff] (%p477_p6) }
 0x27c   : >> { %v1021_v25 = vadd.f32 %v1020_v6, %v1006_v21  ;;  %v5256_v21 = vld [vmem:[#allocation116_spill] sm:$0xff] (%p477_p6) }
 0x27e   : >> { %v1022_v22 = vrot.slane %v1021_v25, 4 }
 0x280   : >> { %v1023_v63 = vadd.f32 %v1022_v22, %v1021_v25  ;;  %v5258_v25 = vld [vmem:[#allocation114_spill] sm:$0xff] (%p477_p6) }
 0x282   : >> { %v1024_v55 = vrot.slane %v1023_v63, 2 }
 0x284   : >> { %v1025_v46 = vadd.f32 %v1024_v55, %v1023_v63  ;;  %v5260_v63 = vld [vmem:[#allocation120_spill] sm:$0xff] (%p477_p6) }
 0x286   : >> { %v1026_v56 = vrot.slane %v1025_v46, 1 }
 0x288   : >> { %v1027_v35 = vadd.f32 %v1026_v56, %v1025_v46  ;;  %v5262_v46 = vld [vmem:[#allocation118_spill] sm:$0xff] (%p477_p6)  ;;  %v4429_v56 = vmov (%p477_p6), 0.0  }
 0x28a   : >> { %v1037_v27 = vadd.f32 %v1036_v31, %v1027_v35 }
 0x28c   : >> { %v1038_v54 = vmul.f32 %v1037_v27, %v5226_v10 }
 0x28d   : > { %479 = sbr.rel (!%p477_p6) target bundleno = 224 (0xe0), region = 140 }
 0x28e   : >> { %v1053_v50 = vrot.slane %v1038_v54, %v5223_v9  ;;  %v4431_v9 = vmov (%p477_p6), 0.0  }
 0x290   : >> { %v1055_v41 = vsel %vm1043_vm0, %v1053_v50, %v5227_v57   ;;  %v1056_v1 = vsel %vm1044_vm1, %v1053_v50, %v5228_v8  }
 0x291   : >> { %v5229_v58 = vmov %v1056_v1  ;;  %v5230_v45 = vmov %v1055_v41  ;;  %1057 = vst [vmem:[%s4208_s28] sm:$0xff] (%p477_p6), %v1055_v41  ;;  %1058 = vst [vmem:[%s4208_s28 + $0x20] sm:$0x1] (%p477_p6), %v1056_v1 }
 0x292   : > { %v5231_v45 = vld [vmem:[#allocation88_spill] sm:$0xff] }
 0x293   : > { %v1065_v42 = vrot.slane %v4377_v26, %v5231_v45 }
 0x295   : > { %v4382_v28 = vmul.f32 %v1065_v42, %v5232_v43  ;;  %v4385_v44 = vmul.f32 %v1065_v42, %v5234_v0  ;;  %v4388_v36 = vmul.f32 %v1065_v42, %v5236_v33  ;;  %v4391_v47 = vmul.f32 %v1065_v42, %v5238_v18 }
 0x296   : > { %v4394_v52 = vmul.f32 %v1065_v42, %v5240_v5  ;;  %v4397_v37 = vmul.f32 %v1065_v42, %v5242_v34  ;;  %v4400_v2 = vmul.f32 %v1065_v42, %v5244_v30  ;;  %v4403_v53 = vmul.f32 %v1065_v42, %v5246_v3 }
 0x297   : > { %5233 = vst [vmem:[#allocation23_spill] sm:$0xff] %v4382_v28  ;;  %5235 = vst [vmem:[#allocation24_spill] sm:$0xff] %v4385_v44  ;;  %v4406_v24 = vmul.f32 %v1065_v42, %v5248_v51  ;;  %v4409_v38 = vmul.f32 %v1065_v42, %v5250_v4  ;;  %v4412_v59 = vmul.f32 %v1065_v42, %v5252_v61 }
 0x298   : > { %5237 = vst [vmem:[#allocation25_spill] sm:$0xff] %v4388_v36  ;;  %5239 = vst [vmem:[#allocation26_spill] sm:$0xff] %v4391_v47  ;;  %v4415_v48 = vmul.f32 %v1065_v42, %v5254_v7  ;;  %v4418_v6 = vmul.f32 %v1065_v42, %v5256_v21  ;;  %v4421_v22 = vmul.f32 %v1065_v42, %v5258_v25 }
 0x299   : > { %5241 = vst [vmem:[#allocation27_spill] sm:$0xff] %v4394_v52  ;;  %5243 = vst [vmem:[#allocation28_spill] sm:$0xff] %v4397_v37  ;;  %v4424_v55 = vmul.f32 %v1065_v42, %v5260_v63  ;;  %v4427_v39 = vmul.f32 %v1065_v42, %v5262_v46 }
 0x29a   : > { %5245 = vst [vmem:[#allocation29_spill] sm:$0xff] %v4400_v2  ;;  %5247 = vst [vmem:[#allocation30_spill] sm:$0xff] %v4403_v53 }
 0x29b   : > { %5249 = vst [vmem:[#allocation31_spill] sm:$0xff] %v4406_v24  ;;  %5251 = vst [vmem:[#allocation32_spill] sm:$0xff] %v4409_v38 }
 0x29c   : > { %5253 = vst [vmem:[#allocation33_spill] sm:$0xff] %v4412_v59  ;;  %5255 = vst [vmem:[#allocation34_spill] sm:$0xff] %v4415_v48 }
 0x29d   : > { %5257 = vst [vmem:[#allocation35_spill] sm:$0xff] %v4418_v6  ;;  %5259 = vst [vmem:[#allocation36_spill] sm:$0xff] %v4421_v22 }
 0x29e   : > { %5261 = vst [vmem:[#allocation37_spill] sm:$0xff] %v4424_v55  ;;  %5263 = vst [vmem:[#allocation38_spill] sm:$0xff] %v4427_v39 }
 0x29f LB: >> { %3198 = vmatprep.mubr.bf16.mxu0 %v4264_v49  ;;  %3206 = vmatprep.mubr.bf16.mxu1 %v4268_v60  ;;  %v3645_v31 = vmov 0   ;;  %s1091_s13 = scvt.s32.f32 %s3614_s12  ;;  %v5264_v19 = vld [vmem:[#allocation86_spill] sm:$0xff]  ;;  %v5265_v27 = vld [vmem:[#allocation85_spill] sm:$0xff]  ;;  %v5266_v54 = vld [vmem:[#allocation84_spill] sm:$0xff]  ;;  %s3614_s12 = sphi %s4433_s12, %s1088_s12   ;;  %v3610_v9 = vphi %v4431_v9, %v5347_v9   ;;  %v3606_v56 = vphi %v4429_v56, %v5346_v56  }
 0x2a0   : >> { %3485 = vset.pattern.permute.xlu1 %v3645_v31  ;;  %3484 = vset.pattern.permute.xlu0 %v3645_v31  ;;  %v5267_v8 = vld [vmem:[#allocation82_spill] sm:$0xff]  ;;  %v5269_v12 = vld [vmem:[#allocation17_spill] sm:$0xff]  ;;  %v5271_v11 = vld [vmem:[#allocation16_spill] sm:$0xff] }
 0x2a1   : >> { %s1092_s14 = smul.f32 0.125, %s1091_s13  ;;  %v5268_v13 = vld [vmem:[#allocation18_spill] sm:$0xff]  ;;  %v5270_v20 = vld [vmem:[#allocation81_spill] sm:$0xff]  ;;  %v5272_v30 = vld [vmem:[#allocation15_spill] sm:$0xff] }
 0x2a2   : >> { %v5273_v51 = vld [vmem:[#allocation78_spill] sm:$0xff]  ;;  %v5274_v61 = vld [vmem:[#allocation79_spill] sm:$0xff]  ;;  %v5275_v21 = vld [vmem:[#allocation76_spill] sm:$0xff] }
 0x2a3   : >> { %v1093_v35 = vstv %s1092_s14  ;;  %v5276_v63 = vld [vmem:[#allocation14_spill] sm:$0xff]  ;;  %v5277_v31 = vld [vmem:[#allocation13_spill] sm:$0xff]  ;;  %v5328_v38 = vld [vmem:[#allocation32_spill] sm:$0xff] }
 0x2a4   : >> { %v1108_v58 = vmul.f32 %v1093_v35, %v5264_v19  ;;  %v1106_v23 = vmul.f32 %v1093_v35, %v5265_v27  ;;  %v1109_v10 = vmul.f32 %v1093_v35, %v4102_v62  ;;  %v1107_v50 = vmul.f32 %v1093_v35, %v5266_v54  ;;  %v5280_v54 = vld [vmem:[#allocation12_spill] sm:$0xff]  ;;  %v5323_v6 = vld [vmem:[#allocation35_spill] sm:$0xff]  ;;  %v5326_v48 = vld [vmem:[#allocation34_spill] sm:$0xff] }
 0x2a5   : >> { %v1105_v1 = vmul.f32 %v1093_v35, %v5267_v8  ;;  %v1104_v43 = vmul.f32 %v1093_v35, %v4080_v32  ;;  %v1103_v0 = vmul.f32 %v1093_v35, %v4063_v29  ;;  %v1102_v5 = vmul.f32 %v1093_v35, %v5270_v20  ;;  %v5282_v8 = vld [vmem:[#allocation72_spill] sm:$0xff]  ;;  %v5322_v55 = vld [vmem:[#allocation37_spill] sm:$0xff]  ;;  %v5324_v39 = vld [vmem:[#allocation38_spill] sm:$0xff] }
 0x2a6   : >> { %v1124_v57 = vsub.f32 %v3811_v16, %v1108_v58  ;;  %v1122_v41 = vsub.f32 %v3801_v14, %v1106_v23  ;;  %v1125_v45 = vsub.f32 %v3816_v17, %v1109_v10  ;;  %v1123_v42 = vsub.f32 %v3806_v15, %v1107_v50  ;;  %v5278_v58 = vld [vmem:[#allocation77_spill] sm:$0xff]  ;;  %v5279_v23 = vld [vmem:[#allocation74_spill] sm:$0xff]  ;;  %v5325_v22 = vld [vmem:[#allocation36_spill] sm:$0xff] }
 0x2a7   : >> { %v1121_v33 = vsub.f32 %v5268_v13, %v1105_v1  ;;  %v1120_v18 = vsub.f32 %v5269_v12, %v1104_v43  ;;  %v1119_v34 = vsub.f32 %v5271_v11, %v1103_v0  ;;  %v1118_v3 = vsub.f32 %v5272_v30, %v1102_v5  ;;  %v5284_v43 = vld [vmem:[#allocation10_spill] sm:$0xff]  ;;  %v5286_v5 = vld [vmem:[#allocation73_spill] sm:$0xff]  ;;  %v5287_v30 = vld [vmem:[#allocation8_spill] sm:$0xff] }
 0x2a8   : >> { %1198 = vperm.xlu0 %3484, %v1124_v57   ;;  %1188 = vperm.xlu1 %3485, %v1122_v41   ;;  %v1101_v4 = vmul.f32 %v1093_v35, %v5273_v51  ;;  %v1100_v7 = vmul.f32 %v1093_v35, %v5274_v61  ;;  %v1099_v25 = vmul.f32 %v1093_v35, %v5275_v21  ;;  %v5281_v57 = vld [vmem:[#allocation11_spill] sm:$0xff]  ;;  %v5289_v61 = vld [vmem:[#allocation40_spill] sm:$0xff]  ;;  %v5291_v21 = vld [vmem:[#allocation42_spill] sm:$0xff] }
 0x2a9   : >> { %v1098_v27 = vmul.f32 %v1093_v35, %v5278_v58  ;;  %v1097_v10 = vmul.f32 %v1093_v35, %v5279_v23  ;;  %v1096_v1 = vmul.f32 %v1093_v35, %v5282_v8  ;;  %v5288_v51 = vld [vmem:[#allocation7_spill] sm:$0xff]  ;;  %v5298_v58 = vld [vmem:[#allocation57_spill] sm:$0xff]  ;;  %v5300_v23 = vld [vmem:[#allocation58_spill] sm:$0xff] }
 0x2aa   : >> { %v1117_v46 = vsub.f32 %v5276_v63, %v1101_v4  ;;  %v1116_v19 = vsub.f32 %v5277_v31, %v1100_v7  ;;  %v1115_v50 = vsub.f32 %v5280_v54, %v1099_v25  ;;  %v5290_v7 = vld [vmem:[#allocation39_spill] sm:$0xff]  ;;  %v5292_v25 = vld [vmem:[#allocation41_spill] sm:$0xff]  ;;  %v5296_v31 = vld [vmem:[#allocation56_spill] sm:$0xff] }
 0x2ab   : >> { %v1114_v41 = vsub.f32 %v5281_v57, %v1098_v27  ;;  %v1113_v0 = vsub.f32 %v5284_v43, %v1097_v10  ;;  %v5293_v63 = vld [vmem:[#allocation55_spill] sm:$0xff]  ;;  %v5299_v27 = vld [vmem:[#allocation46_spill] sm:$0xff]  ;;  %v5304_v57 = vld [vmem:[#allocation60_spill] sm:$0xff] }
 0x2ac   : >> { %1203 = vperm.xlu0 %3484, %v1125_v45   ;;  %1193 = vperm.xlu1 %3485, %v1123_v42   ;;  %v5283_v45 = vld [vmem:[#allocation75_spill] sm:$0xff]  ;;  %v5306_v8 = vld [vmem:[#allocation61_spill] sm:$0xff]  ;;  %v5330_v53 = vld [vmem:[#allocation30_spill] sm:$0xff] }
 0x2ad   : >> { %v1095_v42 = vmul.f32 %v1093_v35, %v5283_v45  ;;  %v5301_v10 = vld [vmem:[#allocation47_spill] sm:$0xff]  ;;  %v5308_v45 = vld [vmem:[#allocation62_spill] sm:$0xff]  ;;  %v5327_v59 = vld [vmem:[#allocation33_spill] sm:$0xff] }
 0x2ae   : >> { %v5302_v54 = vld [vmem:[#allocation59_spill] sm:$0xff]  ;;  %v5331_v2 = vld [vmem:[#allocation29_spill] sm:$0xff]  ;;  %v5332_v37 = vld [vmem:[#allocation28_spill] sm:$0xff] }
 0x2af   : >> { %v5310_v43 = vld [vmem:[#allocation63_spill] sm:$0xff]  ;;  %v5334_v47 = vld [vmem:[#allocation26_spill] sm:$0xff]  ;;  %v5335_v36 = vld [vmem:[#allocation25_spill] sm:$0xff] }
 0x2b0   : >> { %1183 = vperm.xlu1 %3485, %v1121_v33   ;;  %1178 = vperm.xlu0 %3484, %v1120_v18   ;;  %v5285_v33 = vld [vmem:[#allocation9_spill] sm:$0xff]  ;;  %v5329_v24 = vld [vmem:[#allocation31_spill] sm:$0xff]  ;;  %v5336_v44 = vld [vmem:[#allocation24_spill] sm:$0xff] }
 0x2b1   : >> { %v1112_v18 = vsub.f32 %v5285_v33, %v1096_v1  ;;  %v5307_v1 = vld [vmem:[#allocation50_spill] sm:$0xff]  ;;  %v5312_v33 = vld [vmem:[#allocation64_spill] sm:$0xff]  ;;  %v5333_v52 = vld [vmem:[#allocation27_spill] sm:$0xff] }
 0x2b2   : >> { %v5337_v28 = vld [vmem:[#allocation23_spill] sm:$0xff] }
 0x2b4   : >> { %1173 = vperm.xlu1 %3485, %v1119_v34   ;;  %1168 = vperm.xlu0 %3484, %v1118_v3   ;;  %v1094_v34 = vmul.f32 %v1093_v35, %v5286_v5  ;;  %v1111_v3 = vsub.f32 %v5287_v30, %v1095_v42  ;;  %v5295_v35 = vld [vmem:[#allocation44_spill] sm:$0xff]  ;;  %v5309_v42 = vld [vmem:[#allocation51_spill] sm:$0xff]  ;;  %v5314_v5 = vld [vmem:[#allocation65_spill] sm:$0xff] }
 0x2b5   : >> { %v5316_v30 = vld [vmem:[#allocation66_spill] sm:$0xff] }
 0x2b6   : >> { %v1110_v4 = vsub.f32 %v5288_v51, %v1094_v34  ;;  %v5315_v34 = vld [vmem:[#allocation54_spill] sm:$0xff]  ;;  %v5318_v51 = vld [vmem:[#allocation67_spill] sm:$0xff] }
 0x2b8   : >> { %1163 = vperm.xlu1 %3485, %v1117_v46   ;;  %1158 = vperm.xlu0 %3484, %v1116_v19   ;;  %v5294_v46 = vld [vmem:[#allocation43_spill] sm:$0xff]  ;;  %v5297_v19 = vld [vmem:[#allocation45_spill] sm:$0xff] }
 0x2bc   : >> { %1153 = vperm.xlu1 %3485, %v1115_v50   ;;  %1148 = vperm.xlu0 %3484, %v1114_v41   ;;  %v5303_v50 = vld [vmem:[#allocation48_spill] sm:$0xff]  ;;  %v5305_v41 = vld [vmem:[#allocation49_spill] sm:$0xff] }
 0x2c0   : >> { %1143 = vperm.xlu1 %3485, %v1113_v0   ;;  %1138 = vperm.xlu0 %3484, %v1112_v18   ;;  %v5311_v0 = vld [vmem:[#allocation52_spill] sm:$0xff]  ;;  %v5313_v18 = vld [vmem:[#allocation53_spill] sm:$0xff] }
 0x2c4   : >> { %1133 = vperm.xlu1 %3485, %v1111_v3   ;;  %1128 = vperm.xlu0 %3484, %v1110_v4   ;;  %v5317_v3 = vld [vmem:[#allocation68_spill] sm:$0xff]  ;;  %v5319_v4 = vld [vmem:[#allocation70_spill] sm:$0xff] }
 0x2c8   : >> { %1269 = vperm.xlu1 %3485, %v5289_v61   ;;  %1264 = vperm.xlu0 %3484, %v5290_v7   ;;  %v5320_v61 = vld [vmem:[#allocation69_spill] sm:$0xff]  ;;  %v5321_v7 = vld [vmem:[#allocation71_spill] sm:$0xff] }
 0x2cc   : >> { %1279 = vperm.xlu1 %3485, %v5291_v21   ;;  %1274 = vperm.xlu0 %3484, %v5292_v25  }
 0x2d0   : >> { %1521 = vperm.xlu1 %3485, %v5293_v63   ;;  %1284 = vperm.xlu0 %3484, %v5294_v46  }
 0x2d4   : >> { %1289 = vperm.xlu1 %3485, %v5295_v35   ;;  %1526 = vperm.xlu0 %3484, %v5296_v31  }
 0x2d8   : >> { %1294 = vperm.xlu1 %3485, %v5297_v19   ;;  %1531 = vperm.xlu0 %3484, %v5298_v58  }
 0x2dc   : >> { %1299 = vperm.xlu1 %3485, %v5299_v27   ;;  %1536 = vperm.xlu0 %3484, %v5300_v23  }
 0x2e0   : >> { %1304 = vperm.xlu1 %3485, %v5301_v10   ;;  %1541 = vperm.xlu0 %3484, %v5302_v54  }
 0x2e4   : >> { %1309 = vperm.xlu1 %3485, %v5303_v50   ;;  %1546 = vperm.xlu0 %3484, %v5304_v57  }
 0x2e8   : >> { %1314 = vperm.xlu1 %3485, %v5305_v41   ;;  %1551 = vperm.xlu0 %3484, %v5306_v8  }
 0x2ec   : >> { %1319 = vperm.xlu1 %3485, %v5307_v1   ;;  %1556 = vperm.xlu0 %3484, %v5308_v45  }
 0x2f0   : >> { %1324 = vperm.xlu1 %3485, %v5309_v42   ;;  %1561 = vperm.xlu0 %3484, %v5310_v43  }
 0x2f4   : >> { %1329 = vperm.xlu1 %3485, %v5311_v0   ;;  %1566 = vperm.xlu0 %3484, %v5312_v33  }
 0x2f8   : >> { %1334 = vperm.xlu1 %3485, %v5313_v18   ;;  %1571 = vperm.xlu0 %3484, %v5314_v5  }
 0x2fc   : >> { %1339 = vperm.xlu1 %3485, %v5315_v34   ;;  %1576 = vperm.xlu0 %3484, %v5316_v30  }
 0x300   : >> { %1586 = vperm.xlu1 %3485, %v5317_v3   ;;  %1581 = vperm.xlu0 %3484, %v5318_v51  }
 0x304   : >> { %1596 = vperm.xlu1 %3485, %v5319_v4   ;;  %1591 = vperm.xlu0 %3484, %v5320_v61  }
 0x308   : >> { %1638 = vperm.xlu0 %3484, %v5321_v7  }
 0x323   : >> { %v1199_v21 = vpop.permute.xlu0 %1198  ;;  %v1189_v25 = vpop.permute.xlu1 %1188 }
 0x324   : >> { %v1220_v63 = vadd.f32 %v1199_v21, %v5322_v55  ;;  %v1218_v46 = vadd.f32 %v1189_v25, %v5323_v6 }
 0x326   : >> { %v1236_v35 = vmul.f32 0.1, %v1220_v63  ;;  %v1234_v23 = vmul.f32 0.1, %v1218_v46 }
 0x327   : >> { %v1204_v31 = vpop.permute.xlu0 %1203  ;;  %v1194_v19 = vpop.permute.xlu1 %1193 }
 0x328   : >> { %v1221_v58 = vadd.f32 %v1204_v31, %v5324_v39  ;;  %v1219_v27 = vadd.f32 %v1194_v19, %v5325_v22  ;;  %v1252_v50 = vmax.f32 %v1220_v63, %v1236_v35  ;;  %v1250_v43 = vmax.f32 %v1218_v46, %v1234_v23 }
 0x32a   : >> { %v1237_v10 = vmul.f32 0.1, %v1221_v58  ;;  %v1235_v54 = vmul.f32 0.1, %v1219_v27 }
 0x32b   : >> { %v1184_v57 = vpop.permute.xlu1 %1183  ;;  %v1179_v41 = vpop.permute.xlu0 %1178 }
 0x32c   : >> { %v1253_v8 = vmax.f32 %v1221_v58, %v1237_v10  ;;  %v1251_v1 = vmax.f32 %v1219_v27, %v1235_v54  ;;  %v1217_v45 = vadd.f32 %v1184_v57, %v5326_v48  ;;  %v1216_v42 = vadd.f32 %v1179_v41, %v5327_v59 }
 0x32e   : >> { %v1261_v0 = vpack.c.bf16 %v1253_v8, %v1252_v50  ;;  %v1233_v33 = vmul.f32 0.1, %v1217_v45  ;;  %v1232_v18 = vmul.f32 0.1, %v1216_v42  ;;  %v1260_v5 = vpack.c.bf16 %v1251_v1, %v1250_v43 }
 0x32f   : >> { %v1174_v34 = vpop.permute.xlu1 %1173  ;;  %v1169_v30 = vpop.permute.xlu0 %1168 }
 0x330   : >> { %v1249_v3 = vmax.f32 %v1217_v45, %v1233_v33  ;;  %v1248_v51 = vmax.f32 %v1216_v42, %v1232_v18  ;;  %v1215_v4 = vadd.f32 %v1174_v34, %v5328_v38  ;;  %v1214_v61 = vadd.f32 %v1169_v30, %v5329_v24  ;;  %3182 = vmatprep.subr.bf16.mxu0 %v1261_v0 }
 0x331   : >> { %3294 = vmatprep.subr.bf16.mxu1 %v1261_v0  ;;  %3183 = vmatpush3.bf16.msra.mxu0 %v1261_v0 }
 0x332   : >> { %v1231_v7 = vmul.f32 0.1, %v1215_v4  ;;  %v1230_v21 = vmul.f32 0.1, %v1214_v61  ;;  %3302 = vmatpush3.bf16.msra.mxu1 %v1261_v0  ;;  %3184 = vmatprep.subr.bf16.mxu0 %v1260_v5  ;;  %v1259_v25 = vpack.c.bf16 %v1249_v3, %v1248_v51 }
 0x333   : >> { %3295 = vmatprep.subr.bf16.mxu1 %v1260_v5  ;;  %v1164_v63 = vpop.permute.xlu1 %1163  ;;  %v1159_v46 = vpop.permute.xlu0 %1158 }
 0x334   : >> { %v1247_v35 = vmax.f32 %v1215_v4, %v1231_v7  ;;  %v1246_v31 = vmax.f32 %v1214_v61, %v1230_v21  ;;  %v1213_v19 = vadd.f32 %v1164_v63, %v5330_v53  ;;  %v1212_v58 = vadd.f32 %v1159_v46, %v5331_v2 }
 0x335   : >> { %3185 = vmatpush3.bf16.msra.mxu0 %v1260_v5 }
 0x336   : >> { %v1229_v27 = vmul.f32 0.1, %v1213_v19  ;;  %v1228_v23 = vmul.f32 0.1, %v1212_v58  ;;  %3303 = vmatpush3.bf16.msra.mxu1 %v1260_v5  ;;  %3186 = vmatprep.subr.bf16.mxu0 %v1259_v25  ;;  %v1258_v10 = vpack.c.bf16 %v1247_v35, %v1246_v31 }
 0x337   : >> { %3296 = vmatprep.subr.bf16.mxu1 %v1259_v25  ;;  %v1154_v54 = vpop.permute.xlu1 %1153  ;;  %v1149_v50 = vpop.permute.xlu0 %1148 }
 0x338   : >> { %v1245_v57 = vmax.f32 %v1213_v19, %v1229_v27  ;;  %v1244_v41 = vmax.f32 %v1212_v58, %v1228_v23  ;;  %v1211_v8 = vadd.f32 %v1154_v54, %v5332_v37  ;;  %v1210_v1 = vadd.f32 %v1149_v50, %v5333_v52  ;;  %v5339_v54 = vld [vmem:[#allocation125_spill] sm:$0xff]  ;;  %v5340_v50 = vld [vmem:[#allocation126_spill] sm:$0xff] }
 0x339   : >> { %3187 = vmatpush3.bf16.msra.mxu0 %v1259_v25 }
 0x33a   : >> { %v1227_v45 = vmul.f32 0.1, %v1211_v8  ;;  %v1226_v42 = vmul.f32 0.1, %v1210_v1  ;;  %3304 = vmatpush3.bf16.msra.mxu1 %v1259_v25  ;;  %3188 = vmatprep.subr.bf16.mxu0 %v1258_v10  ;;  %v1257_v43 = vpack.c.bf16 %v1245_v57, %v1244_v41  ;;  %v5341_v57 = vld [vmem:[#allocation127_spill] sm:$0xff]  ;;  %v5342_v41 = vld [vmem:[#allocation128_spill] sm:$0xff] }
 0x33b   : >> { %3297 = vmatprep.subr.bf16.mxu1 %v1258_v10  ;;  %v1144_v0 = vpop.permute.xlu1 %1143  ;;  %v1139_v33 = vpop.permute.xlu0 %1138 }
 0x33c   : >> { %v1243_v18 = vmax.f32 %v1211_v8, %v1227_v45  ;;  %v1242_v5 = vmax.f32 %v1210_v1, %v1226_v42  ;;  %v1209_v34 = vadd.f32 %v1144_v0, %v5334_v47  ;;  %v1208_v30 = vadd.f32 %v1139_v33, %v5335_v36  ;;  %v5343_v8 = vld [vmem:[#allocation129_spill] sm:$0xff] }
 0x33d   : >> { %3189 = vmatpush3.bf16.msra.mxu0 %v1258_v10 }
 0x33e   : >> { %v1225_v3 = vmul.f32 0.1, %v1209_v34  ;;  %v1224_v51 = vmul.f32 0.1, %v1208_v30  ;;  %3305 = vmatpush3.bf16.msra.mxu1 %v1258_v10  ;;  %3190 = vmatprep.subr.bf16.mxu0 %v1257_v43  ;;  %v1256_v4 = vpack.c.bf16 %v1243_v18, %v1242_v5  ;;  %v5338_v10 = vld [vmem:[#allocation124_spill] sm:$0xff] }
 0x33f   : >> { %3298 = vmatprep.subr.bf16.mxu1 %v1257_v43  ;;  %v1134_v61 = vpop.permute.xlu1 %1133  ;;  %v1129_v7 = vpop.permute.xlu0 %1128 }
 0x340   : >> { %v1241_v21 = vmax.f32 %v1209_v34, %v1225_v3  ;;  %v1240_v25 = vmax.f32 %v1208_v30, %v1224_v51  ;;  %v1207_v63 = vadd.f32 %v1134_v61, %v5336_v44  ;;  %v1206_v46 = vadd.f32 %v1129_v7, %v5337_v28 }
 0x341   : >> { %3191 = vmatpush3.bf16.msra.mxu0 %v1257_v43 }
 0x342   : >> { %v1223_v35 = vmul.f32 0.1, %v1207_v63  ;;  %v1222_v31 = vmul.f32 0.1, %v1206_v46  ;;  %3306 = vmatpush3.bf16.msra.mxu1 %v1257_v43  ;;  %3192 = vmatprep.subr.bf16.mxu0 %v1256_v4  ;;  %v1255_v19 = vpack.c.bf16 %v1241_v21, %v1240_v25 }
 0x343   : >> { %3299 = vmatprep.subr.bf16.mxu1 %v1256_v4  ;;  %v1265_v1 = vpop.permute.xlu0 %1264  ;;  %v1270_v45 = vpop.permute.xlu1 %1269 }
 0x344   : >> { %v1239_v58 = vmax.f32 %v1207_v63, %v1223_v35  ;;  %v1238_v27 = vmax.f32 %v1206_v46, %v1222_v31 }
 0x345   : >> { %3193 = vmatpush3.bf16.msra.mxu0 %v1256_v4 }
 0x346   : >> { %3307 = vmatpush3.bf16.msra.mxu1 %v1256_v4  ;;  %3194 = vmatprep.subr.bf16.mxu0 %v1255_v19  ;;  %v1254_v23 = vpack.c.bf16 %v1239_v58, %v1238_v27 }
 0x347   : >> { %3300 = vmatprep.subr.bf16.mxu1 %v1255_v19  ;;  %v1275_v42 = vpop.permute.xlu0 %1274  ;;  %v1280_v43 = vpop.permute.xlu1 %1279 }
 0x349   : >> { %3195 = vmatpush3.bf16.msra.mxu0 %v1255_v19 }
 0x34a   : >> { %3308 = vmatpush3.bf16.msra.mxu1 %v1255_v19  ;;  %3196 = vmatprep.subr.bf16.mxu0 %v1254_v23 }
 0x34b   : >> { %3301 = vmatprep.subr.bf16.mxu1 %v1254_v23  ;;  %v1285_v0 = vpop.permute.xlu0 %1284  ;;  %v1522_v33 = vpop.permute.xlu1 %1521 }
 0x34d   : >> { %3197 = vmatpush3.bf16.msra.mxu0 %v1254_v23 }
 0x34e   : >> { %3309 = vmatpush3.bf16.msra.mxu1 %v1254_v23 }
 0x34f   : >> { %v1527_v18 = vpop.permute.xlu0 %1526  ;;  %v1290_v5 = vpop.permute.xlu1 %1289 }
 0x350   : >> { %3199 = vmatmul.mubr.bf16.vlgmr.msra.gmra.mxu0 %v5338_v10 }
 0x351   : >> { %3207 = vmatmul.mubr.bf16.vlgmr.msra.gmra.mxu1 %v5339_v54  ;;  %3202 = vmatprep.mubr.bf16.mxu0 %v5340_v50 }
 0x352   : >> { %3210 = vmatprep.mubr.bf16.mxu1 %v5341_v57 }
 0x353   : >> { %v1532_v34 = vpop.permute.xlu0 %1531  ;;  %v1295_v30 = vpop.permute.xlu1 %1294 }
 0x357   : >> { %v1537_v3 = vpop.permute.xlu0 %1536  ;;  %v1300_v51 = vpop.permute.xlu1 %1299 }
 0x358   : >> { %3203 = vmatmul.mubr.bf16.gmra.mxu0 %v5342_v41 }
 0x359   : >> { %3211 = vmatmul.mubr.bf16.gmra.mxu1 %v5343_v8 }
 0x35b   : >> { %v1542_v4 = vpop.permute.xlu0 %1541  ;;  %v1305_v61 = vpop.permute.xlu1 %1304 }
 0x35f   : >> { %v4534_v7 = vpop.permute.xlu0 %1546  ;;  %v1310_v21 = vpop.permute.xlu1 %1309 }
 0x363   : >> { %v4536_v25 = vpop.permute.xlu0 %1551  ;;  %v1315_v63 = vpop.permute.xlu1 %1314 }
 0x367   : >> { %v4538_v19 = vpop.permute.xlu0 %1556  ;;  %v1320_v54 = vpop.permute.xlu1 %1319 }
 0x36b   : >> { %v1562_v28 = vpop.permute.xlu0 %1561  ;;  %v1325_v44 = vpop.permute.xlu1 %1324 }
 0x410   : >> { %v3200_v46 = vpop.f32.mrf.mxu0 }
 0x411   : >> { %v3208_v35 = vpop.f32.mrf.mxu1  ;;  %v1433_v58 = vadd.f32 %v3200_v46, %v1275_v42 }
 0x412   : >> { %v1424_v31 = vpop.f32.mrf.mxu0 }
 0x413   : >> { %v1425_v27 = vadd.f32 %v1424_v31, %v1265_v1  ;;  %v1456_v23 = vpop.f32.mrf.mxu1  ;;  %v1489_v2 = vmul.f32 0.1, %v1433_v58 }
 0x414   : >> { %v3201_v10 = vpop.f32.mrf.mxu0  ;;  %v1457_v20 = vadd.f32 %v1456_v23, %v1305_v61 }
 0x415   : >> { %v1487_v50 = vmul.f32 0.1, %v1425_v27  ;;  %v1436_v57 = vadd.f32 %v3201_v10, %v1280_v43  ;;  %v3209_v41 = vpop.f32.mrf.mxu1  ;;  %v1505_v47 = vmax.f32 %v1433_v58, %v1489_v2  ;;  %v1330_v2 = vpop.permute.xlu1 %1329 }
 0x416   : >> { %v1427_v8 = vpop.f32.mrf.mxu0 }
 0x417   : >> { %v1428_v6 = vadd.f32 %v1427_v8, %v1270_v45  ;;  %v1459_v22 = vpop.f32.mrf.mxu1  ;;  %v1503_v36 = vmax.f32 %v1425_v27, %v1487_v50  ;;  %v1490_v37 = vmul.f32 0.1, %v1436_v57  ;;  %v1567_v8 = vpop.permute.xlu0 %1566  ;;  %v1601_v59 = vmul.f32 %v1532_v34, %v1505_v47 }
 0x418   : >> { %v3204_v24 = vpop.f32.mrf.mxu0 }
 0x419   : >> { %v1488_v38 = vmul.f32 0.1, %v1428_v6  ;;  %v3212_v1 = vpop.f32.mrf.mxu1  ;;  %v1449_v31 = vadd.f32 %v3204_v24, %v1295_v30  ;;  %v1599_v52 = vmul.f32 %v1522_v33, %v1503_v36  ;;  %v1506_v43 = vmax.f32 %v1436_v57, %v1490_v37  ;;  %v1335_v58 = vpop.permute.xlu1 %1334 }
 0x41a   : >> { %v1440_v39 = vpop.f32.mrf.mxu0  ;;  %v1465_v36 = vadd.f32 %v3208_v35, %v1315_v63 }
 0x41b   : >> { %v1504_v42 = vmax.f32 %v1428_v6, %v1488_v38  ;;  %v1441_v46 = vadd.f32 %v1440_v39, %v1285_v0  ;;  %v1472_v50 = vpop.f32.mrf.mxu1  ;;  %v1493_v12 = vmul.f32 0.1, %v1449_v31  ;;  %v1602_v38 = vmul.f32 %v1537_v3, %v1506_v43  ;;  %v1572_v47 = vpop.permute.xlu0 %1571 }
 0x41c   : >> { %v3205_v48 = vpop.f32.mrf.mxu0  ;;  %v1460_v39 = vadd.f32 %v1459_v22, %v1310_v21  ;;  %v1497_v3 = vmul.f32 0.1, %v1465_v36  ;;  %v1473_v21 = vadd.f32 %v1472_v50, %v1325_v44 }
 0x41d   : >> { %v1600_v10 = vmul.f32 %v1527_v18, %v1504_v42  ;;  %v1491_v53 = vmul.f32 0.1, %v1441_v46  ;;  %v1452_v55 = vadd.f32 %v3205_v48, %v1300_v51  ;;  %v3213_v18 = vpop.f32.mrf.mxu1  ;;  %v1495_v48 = vmul.f32 0.1, %v1457_v20 }
 0x41e   : >> { %v1443_v45 = vpop.f32.mrf.mxu0  ;;  %v1509_v30 = vmax.f32 %v1449_v31, %v1493_v12  ;;  %v1496_v34 = vmul.f32 0.1, %v1460_v39  ;;  %v1513_v57 = vmax.f32 %v1465_v36, %v1497_v3  ;;  %v1499_v42 = vmul.f32 0.1, %v1473_v21 }
 0x41f   : >> { %v1615_v11 = vadd.f32 %v1600_v10, %v1599_v52  ;;  %v1507_v27 = vmax.f32 %v1441_v46, %v1491_v53  ;;  %v1444_v13 = vadd.f32 %v1443_v45, %v1290_v5  ;;  %v1494_v24 = vmul.f32 0.1, %v1452_v55  ;;  %v1340_v46 = vpop.permute.xlu1 %1339 }
 0x420   : >> { %v1468_v52 = vadd.f32 %v3209_v41, %v1320_v54  ;;  %v1605_v22 = vmul.f32 %v4536_v25, %v1509_v30  ;;  %v1512_v35 = vmax.f32 %v1460_v39, %v1496_v34  ;;  %v1577_v54 = vpop.permute.xlu0 %1576  ;;  %v1609_v44 = vmul.f32 %v1572_v47, %v1513_v57 }
 0x421   : >> { %v1616_v6 = vadd.f32 %v1615_v11, %v1601_v59  ;;  %v1492_v0 = vmul.f32 0.1, %v1444_v13  ;;  %v1603_v37 = vmul.f32 %v1542_v4, %v1507_v27  ;;  %v1510_v61 = vmax.f32 %v1452_v55, %v1494_v24  ;;  %v1475_v11 = vpop.f32.mrf.mxu1 }
 0x422   : >> { %v1511_v59 = vmax.f32 %v1457_v20, %v1495_v48  ;;  %v1498_v63 = vmul.f32 0.1, %v1468_v52  ;;  %v1476_v23 = vadd.f32 %v1475_v11, %v1330_v2  ;;  %v1481_v55 = vadd.f32 %v3212_v1, %v1335_v58  ;;  %v5344_v11 = vld [vmem:[#allocation88_spill] sm:$0xff] }
 0x423   : >> { %v1617_v33 = vadd.f32 %v1616_v6, %v1602_v38  ;;  %v1508_v51 = vmax.f32 %v1444_v13, %v1492_v0  ;;  %v1606_v12 = vmul.f32 %v4538_v19, %v1510_v61  ;;  %v1608_v43 = vmul.f32 %v1567_v8, %v1512_v35  ;;  %v1587_v24 = vpop.permute.xlu1 %1586  ;;  %v5345_v35 = vld [vmem:[#allocation87_spill] sm:$0xff] }
 0x424   : >> { %v1607_v41 = vmul.f32 %v1562_v28, %v1511_v59  ;;  %v1514_v31 = vmax.f32 %v1468_v52, %v1498_v63  ;;  %v1484_v20 = vadd.f32 %v3213_v18, %v1340_v46  ;;  %v1500_v25 = vmul.f32 0.1, %v1476_v23  ;;  %v1582_v38 = vpop.permute.xlu0 %1581 }
 0x425   : >> { %v1618_v53 = vadd.f32 %v1617_v33, %v1603_v37  ;;  %v1604_v5 = vmul.f32 %v4534_v7, %v1508_v51  ;;  %v1501_v45 = vmul.f32 0.1, %v1481_v55  ;;  %v1515_v27 = vmax.f32 %v1473_v21, %v1499_v42 }
 0x426   : >> { %v1610_v19 = vmul.f32 %v1577_v54, %v1514_v31  ;;  %v1502_v6 = vmul.f32 0.1, %v1484_v20  ;;  %v1516_v2 = vmax.f32 %v1476_v23, %v1500_v25 }
 0x427   : >> { %v1619_v4 = vadd.f32 %v1618_v53, %v1604_v5  ;;  %v1517_v28 = vmax.f32 %v1481_v55, %v1501_v45  ;;  %v1611_v1 = vmul.f32 %v1582_v38, %v1515_v27  ;;  %v1597_v30 = vpop.permute.xlu1 %1596 }
 0x428   : >> { %v1518_v36 = vmax.f32 %v1484_v20, %v1502_v6  ;;  %v1612_v37 = vmul.f32 %v1587_v24, %v1516_v2  ;;  %v1592_v8 = vpop.permute.xlu0 %1591 }
 0x429   : >> { %v1620_v13 = vadd.f32 %v1619_v4, %v1605_v22  ;;  %v1613_v18 = vmul.f32 %v1592_v8, %v1517_v28  ;;  %v1650_v4 = vstv %s3614_s12  ;;  %s1088_s12 = sadd.s32 1, %s3614_s12  }
 0x42a   : >> { %v1614_v51 = vmul.f32 %v1597_v30, %v1518_v36  ;;  %vm1651_vm2 = vcmp.eq.s32.totalorder %v5345_v35, %v1650_v4  ;;  %vm1652_vm3 = vcmp.eq.s32.totalorder %v5225_v40, %v1650_v4  ;;  %p1085_p7 = scmp.ge.s32.totalorder %s1088_s12, 9  }
 0x42b   : >> { %v1621_v7 = vadd.f32 %v1620_v13, %v1606_v12  ;;  %v4561_v54 = vld [vmem:[%s4117_s25 + $0x2] sm:$0x1] (%p1085_p7)  ;;  %v5351_v42 = vld [vmem:[#allocation96_spill] sm:$0xff] (%p1085_p7)  ;;  %v5353_v46 = vld [vmem:[#allocation90_spill] sm:$0xff] (%p1085_p7)  ;;  %s4617_s15 = smov (%p1085_p7), 0  }
 0x42c   : >> { %v1639_v58 = vpop.permute.xlu0 %1638  ;;  %v5363_v27 = vld [vmem:[#allocation102_spill] sm:$0xff] (%p1085_p7)  ;;  %v5365_v38 = vld [vmem:[#allocation108_spill] sm:$0xff] (%p1085_p7) }
 0x42d   : >> { %v1622_v10 = vadd.f32 %v1621_v7, %v1607_v41  ;;  %v1644_v59 = vrot.slane %v1639_v58, %v5344_v11  ;;  %v5349_v41 = vld [vmem:[#allocation92_spill] sm:$0xff] (%p1085_p7)  ;;  %v5367_v6 = vld [vmem:[#allocation106_spill] sm:$0xff] (%p1085_p7) }
 0x42e   : > { %v5371_v28 = vld [vmem:[#allocation110_spill] sm:$0xff] (%p1085_p7)  ;;  %v5377_v8 = vld [vmem:[#allocation120_spill] sm:$0xff] (%p1085_p7) }
 0x42f   : >> { %v1623_v50 = vadd.f32 %v1622_v10, %v1608_v43  ;;  %v5355_v43 = vld [vmem:[#allocation94_spill] sm:$0xff] (%p1085_p7) }
 0x430   : > { %v5359_v10 = vld [vmem:[#allocation98_spill] sm:$0xff] (%p1085_p7) }
 0x431   : >> { %v1624_v39 = vadd.f32 %v1623_v50, %v1609_v44  ;;  %v5361_v44 = vld [vmem:[#allocation104_spill] sm:$0xff] (%p1085_p7) }
 0x433   : >> { %v1625_v0 = vadd.f32 %v1624_v39, %v1610_v19  ;;  %v5369_v39 = vld [vmem:[#allocation112_spill] sm:$0xff] (%p1085_p7) }
 0x435   : >> { %v1626_v33 = vadd.f32 %v1625_v0, %v1611_v1  ;;  %v5373_v0 = vld [vmem:[#allocation116_spill] sm:$0xff] (%p1085_p7) }
 0x437   : >> { %v1627_v48 = vadd.f32 %v1626_v33, %v1612_v37  ;;  %v5375_v37 = vld [vmem:[#allocation114_spill] sm:$0xff] (%p1085_p7) }
 0x439   : >> { %v1628_v47 = vadd.f32 %v1627_v48, %v1613_v18  ;;  %v5379_v48 = vld [vmem:[#allocation118_spill] sm:$0xff] (%p1085_p7) }
 0x43b   : >> { %v1629_v52 = vadd.f32 %v1628_v47, %v1614_v51  ;;  %v4613_v51 = vmov (%p1085_p7), 0.0   ;;  %v4615_v47 = vmov (%p1085_p7), 0.0  }
 0x43d   : >> { %v1630_v53 = vrot.slane %v1629_v52, 4 }
 0x43f   : >> { %v1631_v34 = vadd.f32 %v1630_v53, %v1629_v52 }
 0x441   : >> { %v1632_v61 = vrot.slane %v1631_v34, 2 }
 0x443   : >> { %v1633_v5 = vadd.f32 %v1632_v61, %v1631_v34 }
 0x445   : >> { %v1634_v3 = vrot.slane %v1633_v5, 1 }
 0x447   : >> { %v1635_v22 = vadd.f32 %v1634_v3, %v1633_v5 }
 0x449   : >> { %v1645_v21 = vadd.f32 %v1644_v59, %v1635_v22 }
 0x44b   : >> { %v1646_v63 = vmul.f32 %v4377_v26, %v1645_v21 }
 0x44c   : > { %1087 = sbr.rel (!%p1085_p7) target bundleno = 671 (0x29f), region = 151 }
 0x44d   : >> { %v1661_v12 = vrot.slane %v1646_v63, %v5344_v11 }
 0x44f   : >> { %v1663_v13 = vsel %vm1651_vm2, %v1661_v12, %v3610_v9   ;;  %v1664_v23 = vsel %vm1652_vm3, %v1661_v12, %v3606_v56  }
 0x450   : >> { %v5346_v56 = vmov %v1664_v23  ;;  %v5347_v9 = vmov %v1663_v13  ;;  %3056 = vst [vmem:[%s4208_s28 + $0x8] sm:$0xff] (%p1085_p7), %v1663_v13  ;;  %3057 = vst [vmem:[%s4208_s28 + $0x28] sm:$0x1] (%p1085_p7), %v1664_v23 }
 0x451   : > { %v5348_v9 = vld [vmem:[#allocation88_spill] sm:$0xff] }
 0x452   : > { %v1674_v57 = vrot.slane %v4561_v54, %v5348_v9  ;;  %v5357_v56 = vld [vmem:[#allocation100_spill] sm:$0xff] }
 0x454   : > { %v4566_v55 = vmul.f32 %v1674_v57, %v5349_v41  ;;  %v4569_v7 = vmul.f32 %v1674_v57, %v5351_v42  ;;  %v4572_v31 = vmul.f32 %v1674_v57, %v5353_v46  ;;  %v4575_v26 = vmul.f32 %v1674_v57, %v5355_v43 }
 0x455   : > { %v4578_v20 = vmul.f32 %v1674_v57, %v5357_v56  ;;  %v4581_v25 = vmul.f32 %v1674_v57, %v5359_v10  ;;  %v4584_v45 = vmul.f32 %v1674_v57, %v5361_v44  ;;  %v4587_v50 = vmul.f32 %v1674_v57, %v5363_v27 }
 0x456   : > { %5350 = vst [vmem:[#allocation89_spill] sm:$0xff] %v4566_v55  ;;  %5352 = vst [vmem:[#allocation91_spill] sm:$0xff] %v4569_v7  ;;  %v4590_v19 = vmul.f32 %v1674_v57, %v5365_v38  ;;  %v4593_v2 = vmul.f32 %v1674_v57, %v5367_v6  ;;  %v4596_v24 = vmul.f32 %v1674_v57, %v5369_v39 }
 0x457   : > { %5354 = vst [vmem:[#allocation93_spill] sm:$0xff] %v4572_v31  ;;  %5356 = vst [vmem:[#allocation95_spill] sm:$0xff] %v4575_v26  ;;  %v4599_v1 = vmul.f32 %v1674_v57, %v5371_v28  ;;  %v4602_v36 = vmul.f32 %v1674_v57, %v5373_v0  ;;  %v4605_v33 = vmul.f32 %v1674_v57, %v5375_v37 }
 0x458   : > { %5358 = vst [vmem:[#allocation97_spill] sm:$0xff] %v4578_v20  ;;  %5360 = vst [vmem:[#allocation99_spill] sm:$0xff] %v4581_v25  ;;  %v4608_v18 = vmul.f32 %v1674_v57, %v5377_v8  ;;  %v4611_v30 = vmul.f32 %v1674_v57, %v5379_v48 }
 0x459   : > { %5362 = vst [vmem:[#allocation101_spill] sm:$0xff] %v4584_v45  ;;  %5364 = vst [vmem:[#allocation103_spill] sm:$0xff] %v4587_v50 }
 0x45a   : > { %5366 = vst [vmem:[#allocation105_spill] sm:$0xff] %v4590_v19  ;;  %5368 = vst [vmem:[#allocation107_spill] sm:$0xff] %v4593_v2 }
 0x45b   : > { %5370 = vst [vmem:[#allocation109_spill] sm:$0xff] %v4596_v24  ;;  %5372 = vst [vmem:[#allocation111_spill] sm:$0xff] %v4599_v1 }
 0x45c   : > { %5374 = vst [vmem:[#allocation113_spill] sm:$0xff] %v4602_v36  ;;  %5376 = vst [vmem:[#allocation115_spill] sm:$0xff] %v4605_v33 }
 0x45d   : > { %5378 = vst [vmem:[#allocation117_spill] sm:$0xff] %v4608_v18  ;;  %5380 = vst [vmem:[#allocation119_spill] sm:$0xff] %v4611_v30 }
 0x45e LB: >> { %3230 = vmatprep.mubr.bf16.mxu0 %v4264_v49  ;;  %3238 = vmatprep.mubr.bf16.mxu1 %v4268_v60  ;;  %v3646_v52 = vmov 0   ;;  %s1700_s16 = scvt.s32.f32 %s3626_s15  ;;  %v5381_v34 = vld [vmem:[#allocation86_spill] sm:$0xff]  ;;  %v5382_v5 = vld [vmem:[#allocation85_spill] sm:$0xff]  ;;  %v5383_v11 = vld [vmem:[#allocation84_spill] sm:$0xff]  ;;  %s3626_s15 = sphi %s4617_s15, %s1697_s15   ;;  %v3622_v47 = vphi %v4615_v47, %v5464_v47   ;;  %v3618_v51 = vphi %v4613_v51, %v5463_v51  }
 0x45f   : >> { %3487 = vset.pattern.permute.xlu1 %v3646_v52  ;;  %3486 = vset.pattern.permute.xlu0 %v3646_v52  ;;  %v5384_v4 = vld [vmem:[#allocation82_spill] sm:$0xff]  ;;  %v5386_v41 = vld [vmem:[#allocation17_spill] sm:$0xff]  ;;  %v5388_v56 = vld [vmem:[#allocation16_spill] sm:$0xff] }
 0x460   : >> { %s1701_s17 = smul.f32 0.125, %s1700_s16  ;;  %v5385_v9 = vld [vmem:[#allocation18_spill] sm:$0xff]  ;;  %v5387_v46 = vld [vmem:[#allocation81_spill] sm:$0xff]  ;;  %v5389_v44 = vld [vmem:[#allocation15_spill] sm:$0xff] }
 0x461   : >> { %v5390_v38 = vld [vmem:[#allocation78_spill] sm:$0xff]  ;;  %v5391_v39 = vld [vmem:[#allocation79_spill] sm:$0xff]  ;;  %v5392_v0 = vld [vmem:[#allocation76_spill] sm:$0xff] }
 0x462   : >> { %v1702_v53 = vstv %s1701_s17  ;;  %v5393_v8 = vld [vmem:[#allocation14_spill] sm:$0xff]  ;;  %v5394_v52 = vld [vmem:[#allocation13_spill] sm:$0xff]  ;;  %v5443_v1 = vld [vmem:[#allocation111_spill] sm:$0xff] }
 0x463   : >> { %v1717_v61 = vmul.f32 %v1702_v53, %v5381_v34  ;;  %v1715_v58 = vmul.f32 %v1702_v53, %v5382_v5  ;;  %v1718_v3 = vmul.f32 %v1702_v53, %v4102_v62  ;;  %v1716_v59 = vmul.f32 %v1702_v53, %v5383_v11  ;;  %v5397_v11 = vld [vmem:[#allocation12_spill] sm:$0xff]  ;;  %v5440_v36 = vld [vmem:[#allocation113_spill] sm:$0xff]  ;;  %v5442_v33 = vld [vmem:[#allocation115_spill] sm:$0xff] }
 0x464   : >> { %v1714_v63 = vmul.f32 %v1702_v53, %v5384_v4  ;;  %v1713_v13 = vmul.f32 %v1702_v53, %v4080_v32  ;;  %v1712_v23 = vmul.f32 %v1702_v53, %v4063_v29  ;;  %v1711_v43 = vmul.f32 %v1702_v53, %v5387_v46  ;;  %v5399_v4 = vld [vmem:[#allocation72_spill] sm:$0xff]  ;;  %v5439_v18 = vld [vmem:[#allocation117_spill] sm:$0xff]  ;;  %v5441_v30 = vld [vmem:[#allocation119_spill] sm:$0xff] }
 0x465   : >> { %v1733_v22 = vsub.f32 %v3811_v16, %v1717_v61  ;;  %v1731_v21 = vsub.f32 %v3801_v14, %v1715_v58  ;;  %v1734_v35 = vsub.f32 %v3816_v17, %v1718_v3  ;;  %v1732_v12 = vsub.f32 %v3806_v15, %v1716_v59  ;;  %v5395_v61 = vld [vmem:[#allocation77_spill] sm:$0xff]  ;;  %v5396_v58 = vld [vmem:[#allocation74_spill] sm:$0xff]  ;;  %v5404_v46 = vld [vmem:[#allocation8_spill] sm:$0xff] }
 0x466   : >> { %v1730_v57 = vsub.f32 %v5385_v9, %v1714_v63  ;;  %v1729_v42 = vsub.f32 %v5386_v41, %v1713_v13  ;;  %v1728_v10 = vsub.f32 %v5388_v56, %v1712_v23  ;;  %v1727_v27 = vsub.f32 %v5389_v44, %v1711_v43  ;;  %v5401_v13 = vld [vmem:[#allocation10_spill] sm:$0xff]  ;;  %v5402_v9 = vld [vmem:[#allocation9_spill] sm:$0xff]  ;;  %v5405_v56 = vld [vmem:[#allocation7_spill] sm:$0xff] }
 0x467   : >> { %1807 = vperm.xlu0 %3486, %v1733_v22   ;;  %1797 = vperm.xlu1 %3487, %v1731_v21   ;;  %v1710_v6 = vmul.f32 %v1702_v53, %v5390_v38  ;;  %v1709_v28 = vmul.f32 %v1702_v53, %v5391_v39  ;;  %v1708_v37 = vmul.f32 %v1702_v53, %v5392_v0  ;;  %v5398_v22 = vld [vmem:[#allocation11_spill] sm:$0xff]  ;;  %v5403_v41 = vld [vmem:[#allocation73_spill] sm:$0xff]  ;;  %v5406_v44 = vld [vmem:[#allocation40_spill] sm:$0xff] }
 0x468   : >> { %v1707_v5 = vmul.f32 %v1702_v53, %v5395_v61  ;;  %v1706_v3 = vmul.f32 %v1702_v53, %v5396_v58  ;;  %v1705_v63 = vmul.f32 %v1702_v53, %v5399_v4  ;;  %v5408_v38 = vld [vmem:[#allocation42_spill] sm:$0xff]  ;;  %v5410_v39 = vld [vmem:[#allocation55_spill] sm:$0xff]  ;;  %v5413_v0 = vld [vmem:[#allocation56_spill] sm:$0xff] }
 0x469   : >> { %v1726_v48 = vsub.f32 %v5393_v8, %v1710_v6  ;;  %v1725_v34 = vsub.f32 %v5394_v52, %v1709_v28  ;;  %v1724_v59 = vsub.f32 %v5397_v11, %v1708_v37  ;;  %v5409_v6 = vld [vmem:[#allocation41_spill] sm:$0xff]  ;;  %v5411_v28 = vld [vmem:[#allocation43_spill] sm:$0xff]  ;;  %v5417_v52 = vld [vmem:[#allocation58_spill] sm:$0xff] }
 0x46a   : >> { %v1723_v21 = vsub.f32 %v5398_v22, %v1707_v5  ;;  %v1722_v23 = vsub.f32 %v5401_v13, %v1706_v3  ;;  %v5414_v37 = vld [vmem:[#allocation45_spill] sm:$0xff]  ;;  %v5419_v61 = vld [vmem:[#allocation59_spill] sm:$0xff]  ;;  %v5420_v5 = vld [vmem:[#allocation48_spill] sm:$0xff] }
 0x46b   : >> { %1812 = vperm.xlu0 %3486, %v1734_v35   ;;  %1802 = vperm.xlu1 %3487, %v1732_v12   ;;  %v5400_v35 = vld [vmem:[#allocation75_spill] sm:$0xff]  ;;  %v5415_v8 = vld [vmem:[#allocation57_spill] sm:$0xff]  ;;  %v5421_v58 = vld [vmem:[#allocation60_spill] sm:$0xff] }
 0x46c   : >> { %v1704_v12 = vmul.f32 %v1702_v53, %v5400_v35  ;;  %v5422_v3 = vld [vmem:[#allocation49_spill] sm:$0xff]  ;;  %v5425_v22 = vld [vmem:[#allocation62_spill] sm:$0xff]  ;;  %v5427_v4 = vld [vmem:[#allocation63_spill] sm:$0xff] }
 0x46d   : >> { %v5423_v11 = vld [vmem:[#allocation61_spill] sm:$0xff]  ;;  %v5429_v35 = vld [vmem:[#allocation64_spill] sm:$0xff]  ;;  %v5445_v2 = vld [vmem:[#allocation107_spill] sm:$0xff] }
 0x46e   : >> { %v1720_v43 = vsub.f32 %v5404_v46, %v1704_v12  ;;  %v5430_v12 = vld [vmem:[#allocation53_spill] sm:$0xff]  ;;  %v5447_v50 = vld [vmem:[#allocation103_spill] sm:$0xff] }
 0x46f   : >> { %1792 = vperm.xlu1 %3487, %v1730_v57   ;;  %1787 = vperm.xlu0 %3486, %v1729_v42   ;;  %v1721_v57 = vsub.f32 %v5402_v9, %v1705_v63  ;;  %v1703_v42 = vmul.f32 %v1702_v53, %v5403_v41  ;;  %v5412_v53 = vld [vmem:[#allocation44_spill] sm:$0xff]  ;;  %v5431_v13 = vld [vmem:[#allocation65_spill] sm:$0xff]  ;;  %v5433_v9 = vld [vmem:[#allocation66_spill] sm:$0xff] }
 0x470   : >> { %v5428_v63 = vld [vmem:[#allocation52_spill] sm:$0xff]  ;;  %v5435_v41 = vld [vmem:[#allocation67_spill] sm:$0xff]  ;;  %v5437_v46 = vld [vmem:[#allocation69_spill] sm:$0xff] }
 0x471   : >> { %v5444_v24 = vld [vmem:[#allocation109_spill] sm:$0xff]  ;;  %v5449_v25 = vld [vmem:[#allocation99_spill] sm:$0xff] }
 0x472   : >> { %v5446_v19 = vld [vmem:[#allocation105_spill] sm:$0xff]  ;;  %v5451_v26 = vld [vmem:[#allocation95_spill] sm:$0xff] }
 0x473   : >> { %1782 = vperm.xlu1 %3487, %v1728_v10   ;;  %1777 = vperm.xlu0 %3486, %v1727_v27   ;;  %v1719_v10 = vsub.f32 %v5405_v56, %v1703_v42  ;;  %v5407_v27 = vld [vmem:[#allocation39_spill] sm:$0xff]  ;;  %v5436_v42 = vld [vmem:[#allocation70_spill] sm:$0xff]  ;;  %v5448_v45 = vld [vmem:[#allocation101_spill] sm:$0xff] }
 0x474   : >> { %v5450_v20 = vld [vmem:[#allocation97_spill] sm:$0xff]  ;;  %v5453_v7 = vld [vmem:[#allocation91_spill] sm:$0xff] }
 0x475   : >> { %v5452_v31 = vld [vmem:[#allocation93_spill] sm:$0xff] }
 0x476   : >> { %v5454_v55 = vld [vmem:[#allocation89_spill] sm:$0xff] }
 0x477   : >> { %1772 = vperm.xlu1 %3487, %v1726_v48   ;;  %1767 = vperm.xlu0 %3486, %v1725_v34   ;;  %v5416_v48 = vld [vmem:[#allocation46_spill] sm:$0xff]  ;;  %v5418_v34 = vld [vmem:[#allocation47_spill] sm:$0xff] }
 0x47b   : >> { %1762 = vperm.xlu1 %3487, %v1724_v59   ;;  %1757 = vperm.xlu0 %3486, %v1723_v21   ;;  %v5424_v59 = vld [vmem:[#allocation50_spill] sm:$0xff]  ;;  %v5426_v21 = vld [vmem:[#allocation51_spill] sm:$0xff] }
 0x47f   : >> { %1752 = vperm.xlu1 %3487, %v1722_v23   ;;  %1747 = vperm.xlu0 %3486, %v1721_v57   ;;  %v5432_v23 = vld [vmem:[#allocation54_spill] sm:$0xff]  ;;  %v5434_v57 = vld [vmem:[#allocation68_spill] sm:$0xff] }
 0x483   : >> { %1742 = vperm.xlu1 %3487, %v1720_v43   ;;  %1737 = vperm.xlu0 %3486, %v1719_v10   ;;  %v5438_v43 = vld [vmem:[#allocation71_spill] sm:$0xff] }
 0x487   : >> { %1878 = vperm.xlu1 %3487, %v5406_v44   ;;  %1873 = vperm.xlu0 %3486, %v5407_v27  }
 0x48b   : >> { %1888 = vperm.xlu1 %3487, %v5408_v38   ;;  %1883 = vperm.xlu0 %3486, %v5409_v6  }
 0x48f   : >> { %2130 = vperm.xlu1 %3487, %v5410_v39   ;;  %1893 = vperm.xlu0 %3486, %v5411_v28  }
 0x493   : >> { %1898 = vperm.xlu1 %3487, %v5412_v53   ;;  %2135 = vperm.xlu0 %3486, %v5413_v0  }
 0x497   : >> { %1903 = vperm.xlu1 %3487, %v5414_v37   ;;  %2140 = vperm.xlu0 %3486, %v5415_v8  }
 0x49b   : >> { %1908 = vperm.xlu1 %3487, %v5416_v48   ;;  %2145 = vperm.xlu0 %3486, %v5417_v52  }
 0x49f   : >> { %1913 = vperm.xlu1 %3487, %v5418_v34   ;;  %2150 = vperm.xlu0 %3486, %v5419_v61  }
 0x4a3   : >> { %1918 = vperm.xlu1 %3487, %v5420_v5   ;;  %2155 = vperm.xlu0 %3486, %v5421_v58  }
 0x4a7   : >> { %1923 = vperm.xlu1 %3487, %v5422_v3   ;;  %2160 = vperm.xlu0 %3486, %v5423_v11  }
 0x4ab   : >> { %1928 = vperm.xlu1 %3487, %v5424_v59   ;;  %2165 = vperm.xlu0 %3486, %v5425_v22  }
 0x4af   : >> { %1933 = vperm.xlu1 %3487, %v5426_v21   ;;  %2170 = vperm.xlu0 %3486, %v5427_v4  }
 0x4b3   : >> { %1938 = vperm.xlu1 %3487, %v5428_v63   ;;  %2175 = vperm.xlu0 %3486, %v5429_v35  }
 0x4b7   : >> { %1943 = vperm.xlu1 %3487, %v5430_v12   ;;  %2180 = vperm.xlu0 %3486, %v5431_v13  }
 0x4bb   : >> { %1948 = vperm.xlu1 %3487, %v5432_v23   ;;  %2185 = vperm.xlu0 %3486, %v5433_v9  }
 0x4bf   : >> { %2195 = vperm.xlu1 %3487, %v5434_v57   ;;  %2190 = vperm.xlu0 %3486, %v5435_v41  }
 0x4c3   : >> { %2205 = vperm.xlu1 %3487, %v5436_v42   ;;  %2200 = vperm.xlu0 %3486, %v5437_v46  }
 0x4c7   : >> { %2247 = vperm.xlu0 %3486, %v5438_v43  }
 0x4e2   : >> { %v1808_v56 = vpop.permute.xlu0 %1807  ;;  %v1798_v10 = vpop.permute.xlu1 %1797 }
 0x4e3   : >> { %v1829_v44 = vadd.f32 %v1808_v56, %v5439_v18  ;;  %v1827_v27 = vadd.f32 %v1798_v10, %v5440_v36 }
 0x4e5   : >> { %v1845_v38 = vmul.f32 0.1, %v1829_v44  ;;  %v1843_v0 = vmul.f32 0.1, %v1827_v27 }
 0x4e6   : >> { %v1813_v6 = vpop.permute.xlu0 %1812  ;;  %v1803_v39 = vpop.permute.xlu1 %1802 }
 0x4e7   : >> { %v1830_v28 = vadd.f32 %v1813_v6, %v5441_v30  ;;  %v1828_v53 = vadd.f32 %v1803_v39, %v5442_v33  ;;  %v1861_v48 = vmax.f32 %v1829_v44, %v1845_v38  ;;  %v1859_v11 = vmax.f32 %v1827_v27, %v1843_v0 }
 0x4e9   : >> { %v1846_v37 = vmul.f32 0.1, %v1830_v28  ;;  %v1844_v8 = vmul.f32 0.1, %v1828_v53 }
 0x4ea   : >> { %v1793_v52 = vpop.permute.xlu1 %1792  ;;  %v1788_v34 = vpop.permute.xlu0 %1787 }
 0x4eb   : >> { %v1862_v61 = vmax.f32 %v1830_v28, %v1846_v37  ;;  %v1860_v5 = vmax.f32 %v1828_v53, %v1844_v8  ;;  %v1826_v58 = vadd.f32 %v1793_v52, %v5443_v1  ;;  %v1825_v3 = vadd.f32 %v1788_v34, %v5444_v24 }
 0x4ed   : >> { %v1870_v59 = vpack.c.bf16 %v1862_v61, %v1861_v48  ;;  %v1842_v22 = vmul.f32 0.1, %v1826_v58  ;;  %v1841_v21 = vmul.f32 0.1, %v1825_v3  ;;  %v1869_v4 = vpack.c.bf16 %v1860_v5, %v1859_v11 }
 0x4ee   : >> { %v1783_v63 = vpop.permute.xlu1 %1782  ;;  %v1778_v35 = vpop.permute.xlu0 %1777 }
 0x4ef   : >> { %v1858_v12 = vmax.f32 %v1826_v58, %v1842_v22  ;;  %v1857_v13 = vmax.f32 %v1825_v3, %v1841_v21  ;;  %v1824_v23 = vadd.f32 %v1783_v63, %v5445_v2  ;;  %v1823_v9 = vadd.f32 %v1778_v35, %v5446_v19  ;;  %3214 = vmatprep.subr.bf16.mxu0 %v1870_v59 }
 0x4f0   : >> { %3310 = vmatprep.subr.bf16.mxu1 %v1870_v59  ;;  %3215 = vmatpush3.bf16.msra.mxu0 %v1870_v59 }
 0x4f1   : >> { %v1840_v57 = vmul.f32 0.1, %v1824_v23  ;;  %v1839_v41 = vmul.f32 0.1, %v1823_v9  ;;  %3318 = vmatpush3.bf16.msra.mxu1 %v1870_v59  ;;  %3216 = vmatprep.subr.bf16.mxu0 %v1869_v4  ;;  %v1868_v42 = vpack.c.bf16 %v1858_v12, %v1857_v13 }
 0x4f2   : >> { %3311 = vmatprep.subr.bf16.mxu1 %v1869_v4  ;;  %v1773_v46 = vpop.permute.xlu1 %1772  ;;  %v1768_v43 = vpop.permute.xlu0 %1767 }
 0x4f3   : >> { %v1856_v56 = vmax.f32 %v1824_v23, %v1840_v57  ;;  %v1855_v10 = vmax.f32 %v1823_v9, %v1839_v41  ;;  %v1822_v44 = vadd.f32 %v1773_v46, %v5447_v50  ;;  %v1821_v27 = vadd.f32 %v1768_v43, %v5448_v45 }
 0x4f4   : >> { %3217 = vmatpush3.bf16.msra.mxu0 %v1869_v4 }
 0x4f5   : >> { %v1838_v38 = vmul.f32 0.1, %v1822_v44  ;;  %v1837_v6 = vmul.f32 0.1, %v1821_v27  ;;  %3319 = vmatpush3.bf16.msra.mxu1 %v1869_v4  ;;  %3218 = vmatprep.subr.bf16.mxu0 %v1868_v42  ;;  %v1867_v39 = vpack.c.bf16 %v1856_v56, %v1855_v10 }
 0x4f6   : >> { %3312 = vmatprep.subr.bf16.mxu1 %v1868_v42  ;;  %v1763_v28 = vpop.permute.xlu1 %1762  ;;  %v1758_v53 = vpop.permute.xlu0 %1757 }
 0x4f7   : >> { %v1854_v0 = vmax.f32 %v1822_v44, %v1838_v38  ;;  %v1853_v37 = vmax.f32 %v1821_v27, %v1837_v6  ;;  %v1820_v8 = vadd.f32 %v1763_v28, %v5449_v25  ;;  %v1819_v48 = vadd.f32 %v1758_v53, %v5450_v20  ;;  %v5455_v44 = vld [vmem:[#allocation124_spill] sm:$0xff]  ;;  %v5456_v27 = vld [vmem:[#allocation125_spill] sm:$0xff]  ;;  %v5457_v38 = vld [vmem:[#allocation126_spill] sm:$0xff] }
 0x4f8   : >> { %3219 = vmatpush3.bf16.msra.mxu0 %v1868_v42  ;;  %v5458_v6 = vld [vmem:[#allocation127_spill] sm:$0xff]  ;;  %v5460_v28 = vld [vmem:[#allocation129_spill] sm:$0xff] }
 0x4f9   : >> { %v1836_v52 = vmul.f32 0.1, %v1820_v8  ;;  %v1835_v34 = vmul.f32 0.1, %v1819_v48  ;;  %3320 = vmatpush3.bf16.msra.mxu1 %v1868_v42  ;;  %3220 = vmatprep.subr.bf16.mxu0 %v1867_v39  ;;  %v1866_v61 = vpack.c.bf16 %v1854_v0, %v1853_v37 }
 0x4fa   : >> { %3313 = vmatprep.subr.bf16.mxu1 %v1867_v39  ;;  %v1753_v5 = vpop.permute.xlu1 %1752  ;;  %v1748_v58 = vpop.permute.xlu0 %1747 }
 0x4fb   : >> { %v1852_v3 = vmax.f32 %v1820_v8, %v1836_v52  ;;  %v1851_v11 = vmax.f32 %v1819_v48, %v1835_v34  ;;  %v1818_v59 = vadd.f32 %v1753_v5, %v5451_v26  ;;  %v1817_v22 = vadd.f32 %v1748_v58, %v5452_v31 }
 0x4fc   : >> { %3221 = vmatpush3.bf16.msra.mxu0 %v1867_v39 }
 0x4fd   : >> { %v1834_v21 = vmul.f32 0.1, %v1818_v59  ;;  %v1833_v4 = vmul.f32 0.1, %v1817_v22  ;;  %3321 = vmatpush3.bf16.msra.mxu1 %v1867_v39  ;;  %3222 = vmatprep.subr.bf16.mxu0 %v1866_v61  ;;  %v1865_v63 = vpack.c.bf16 %v1852_v3, %v1851_v11  ;;  %v5459_v39 = vld [vmem:[#allocation128_spill] sm:$0xff] }
 0x4fe   : >> { %3314 = vmatprep.subr.bf16.mxu1 %v1866_v61  ;;  %v1743_v35 = vpop.permute.xlu1 %1742  ;;  %v1738_v12 = vpop.permute.xlu0 %1737 }
 0x4ff   : >> { %v1850_v13 = vmax.f32 %v1818_v59, %v1834_v21  ;;  %v1849_v23 = vmax.f32 %v1817_v22, %v1833_v4  ;;  %v1816_v9 = vadd.f32 %v1743_v35, %v5453_v7  ;;  %v1815_v57 = vadd.f32 %v1738_v12, %v5454_v55 }
 0x500   : >> { %3223 = vmatpush3.bf16.msra.mxu0 %v1866_v61 }
 0x501   : >> { %v1832_v41 = vmul.f32 0.1, %v1816_v9  ;;  %v1831_v42 = vmul.f32 0.1, %v1815_v57  ;;  %3322 = vmatpush3.bf16.msra.mxu1 %v1866_v61  ;;  %3224 = vmatprep.subr.bf16.mxu0 %v1865_v63  ;;  %v1864_v46 = vpack.c.bf16 %v1850_v13, %v1849_v23 }
 0x502   : >> { %3315 = vmatprep.subr.bf16.mxu1 %v1865_v63  ;;  %v1874_v53 = vpop.permute.xlu0 %1873  ;;  %v1879_v0 = vpop.permute.xlu1 %1878 }
 0x503   : >> { %v1848_v43 = vmax.f32 %v1816_v9, %v1832_v41  ;;  %v1847_v56 = vmax.f32 %v1815_v57, %v1831_v42 }
 0x504   : >> { %3225 = vmatpush3.bf16.msra.mxu0 %v1865_v63 }
 0x505   : >> { %3323 = vmatpush3.bf16.msra.mxu1 %v1865_v63  ;;  %3226 = vmatprep.subr.bf16.mxu0 %v1864_v46  ;;  %v1863_v10 = vpack.c.bf16 %v1848_v43, %v1847_v56 }
 0x506   : >> { %3316 = vmatprep.subr.bf16.mxu1 %v1864_v46  ;;  %v1884_v37 = vpop.permute.xlu0 %1883  ;;  %v1889_v8 = vpop.permute.xlu1 %1888 }
 0x508   : >> { %3227 = vmatpush3.bf16.msra.mxu0 %v1864_v46 }
 0x509   : >> { %3324 = vmatpush3.bf16.msra.mxu1 %v1864_v46  ;;  %3228 = vmatprep.subr.bf16.mxu0 %v1863_v10 }
 0x50a   : >> { %3317 = vmatprep.subr.bf16.mxu1 %v1863_v10  ;;  %v1894_v48 = vpop.permute.xlu0 %1893  ;;  %v2131_v52 = vpop.permute.xlu1 %2130 }
 0x50c   : >> { %3229 = vmatpush3.bf16.msra.mxu0 %v1863_v10 }
 0x50d   : >> { %3325 = vmatpush3.bf16.msra.mxu1 %v1863_v10 }
 0x50e   : >> { %v2136_v34 = vpop.permute.xlu0 %2135  ;;  %v1899_v61 = vpop.permute.xlu1 %1898 }
 0x50f   : >> { %3231 = vmatmul.mubr.bf16.vlgmr.msra.gmra.mxu0 %v5455_v44 }
 0x510   : >> { %3239 = vmatmul.mubr.bf16.vlgmr.msra.gmra.mxu1 %v5456_v27  ;;  %3234 = vmatprep.mubr.bf16.mxu0 %v5457_v38 }
 0x511   : >> { %3242 = vmatprep.mubr.bf16.mxu1 %v5458_v6 }
 0x512   : >> { %v2141_v5 = vpop.permute.xlu0 %2140  ;;  %v1904_v58 = vpop.permute.xlu1 %1903 }
 0x516   : >> { %v2146_v3 = vpop.permute.xlu0 %2145  ;;  %v1909_v11 = vpop.permute.xlu1 %1908 }
 0x517   : >> { %3235 = vmatmul.mubr.bf16.gmra.mxu0 %v5459_v39 }
 0x518   : >> { %3243 = vmatmul.mubr.bf16.gmra.mxu1 %v5460_v28 }
 0x51a   : >> { %v2151_v59 = vpop.permute.xlu0 %2150  ;;  %v1914_v22 = vpop.permute.xlu1 %1913 }
 0x51e   : >> { %v4718_v21 = vpop.permute.xlu0 %2155  ;;  %v1919_v4 = vpop.permute.xlu1 %1918 }
 0x522   : >> { %v4720_v63 = vpop.permute.xlu0 %2160  ;;  %v1924_v35 = vpop.permute.xlu1 %1923 }
 0x526   : >> { %v4722_v9 = vpop.permute.xlu0 %2165  ;;  %v1929_v43 = vpop.permute.xlu1 %1928 }
 0x52a   : >> { %v2171_v1 = vpop.permute.xlu0 %2170  ;;  %v1934_v20 = vpop.permute.xlu1 %1933 }
 0x5cf   : >> { %v3232_v12 = vpop.f32.mrf.mxu0 }
 0x5d0   : >> { %v3240_v13 = vpop.f32.mrf.mxu1  ;;  %v2042_v57 = vadd.f32 %v3232_v12, %v1884_v37 }
 0x5d1   : >> { %v2033_v23 = vpop.f32.mrf.mxu0 }
 0x5d2   : >> { %v2034_v41 = vadd.f32 %v2033_v23, %v1874_v53  ;;  %v2065_v42 = vpop.f32.mrf.mxu1  ;;  %v2098_v38 = vmul.f32 0.1, %v2042_v57 }
 0x5d3   : >> { %v3233_v46 = vpop.f32.mrf.mxu0  ;;  %v2066_v45 = vadd.f32 %v2065_v42, %v1914_v22 }
 0x5d4   : >> { %v2096_v56 = vmul.f32 0.1, %v2034_v41  ;;  %v2045_v10 = vadd.f32 %v3233_v46, %v1889_v8  ;;  %v3241_v44 = vpop.f32.mrf.mxu1  ;;  %v2114_v24 = vmax.f32 %v2042_v57, %v2098_v38  ;;  %v1939_v57 = vpop.permute.xlu1 %1938 }
 0x5d5   : >> { %v2036_v27 = vpop.f32.mrf.mxu0 }
 0x5d6   : >> { %v2037_v6 = vadd.f32 %v2036_v27, %v1879_v0  ;;  %v2068_v39 = vpop.f32.mrf.mxu1  ;;  %v2112_v2 = vmax.f32 %v2034_v41, %v2096_v56  ;;  %v2099_v7 = vmul.f32 0.1, %v2045_v10  ;;  %v2176_v27 = vpop.permute.xlu0 %2175  ;;  %v2210_v33 = vmul.f32 %v2141_v5, %v2114_v24 }
 0x5d7   : >> { %v3236_v28 = vpop.f32.mrf.mxu0 }
 0x5d8   : >> { %v2097_v18 = vmul.f32 0.1, %v2037_v6  ;;  %v3244_v53 = vpop.f32.mrf.mxu1  ;;  %v2058_v23 = vadd.f32 %v3236_v28, %v1904_v58  ;;  %v2208_v26 = vmul.f32 %v2131_v52, %v2112_v2  ;;  %v2115_v8 = vmax.f32 %v2045_v10, %v2099_v7  ;;  %v1944_v42 = vpop.permute.xlu1 %1943 }
 0x5d9   : >> { %v2049_v19 = vpop.f32.mrf.mxu0  ;;  %v2074_v2 = vadd.f32 %v3240_v13, %v1924_v35 }
 0x5da   : >> { %v2113_v37 = vmax.f32 %v2037_v6, %v2097_v18  ;;  %v2050_v12 = vadd.f32 %v2049_v19, %v1894_v48  ;;  %v2081_v56 = vpop.f32.mrf.mxu1  ;;  %v2102_v50 = vmul.f32 0.1, %v2058_v23  ;;  %v2211_v18 = vmul.f32 %v2146_v3, %v2115_v8  ;;  %v2181_v24 = vpop.permute.xlu0 %2180 }
 0x5db   : >> { %v3237_v25 = vpop.f32.mrf.mxu0  ;;  %v2069_v19 = vadd.f32 %v2068_v39, %v1919_v4  ;;  %v2106_v3 = vmul.f32 0.1, %v2074_v2  ;;  %v2082_v35 = vadd.f32 %v2081_v56, %v1934_v20 }
 0x5dc   : >> { %v2209_v46 = vmul.f32 %v2136_v34, %v2113_v37  ;;  %v2100_v30 = vmul.f32 0.1, %v2050_v12  ;;  %v2061_v31 = vadd.f32 %v3237_v25, %v1909_v11  ;;  %v3245_v34 = vpop.f32.mrf.mxu1  ;;  %v2104_v25 = vmul.f32 0.1, %v2066_v45 }
 0x5dd   : >> { %v2052_v0 = vpop.f32.mrf.mxu0  ;;  %v2118_v11 = vmax.f32 %v2058_v23, %v2102_v50  ;;  %v2105_v5 = vmul.f32 0.1, %v2069_v19  ;;  %v2108_v37 = vmul.f32 0.1, %v2082_v35 }
 0x5de   : >> { %v2224_v36 = vadd.f32 %v2209_v46, %v2208_v26  ;;  %v2116_v41 = vmax.f32 %v2050_v12, %v2100_v30  ;;  %v2053_v55 = vadd.f32 %v2052_v0, %v1899_v61  ;;  %v2103_v48 = vmul.f32 0.1, %v2061_v31  ;;  %v1949_v12 = vpop.permute.xlu1 %1948 }
 0x5df   : >> { %v2077_v26 = vadd.f32 %v3241_v44, %v1929_v43  ;;  %v2214_v4 = vmul.f32 %v4720_v63, %v2118_v11  ;;  %v2121_v6 = vmax.f32 %v2069_v19, %v2105_v5  ;;  %v2186_v43 = vpop.permute.xlu0 %2185  ;;  %v2122_v44 = vmax.f32 %v2074_v2, %v2106_v3 }
 0x5e0   : >> { %v2225_v38 = vadd.f32 %v2224_v36, %v2210_v33  ;;  %v2101_v58 = vmul.f32 0.1, %v2053_v55  ;;  %v2212_v7 = vmul.f32 %v2151_v59, %v2116_v41  ;;  %v2119_v22 = vmax.f32 %v2061_v31, %v2103_v48  ;;  %v2084_v36 = vpop.f32.mrf.mxu1 }
 0x5e1   : >> { %v2120_v33 = vmax.f32 %v2066_v45, %v2104_v25  ;;  %v2107_v13 = vmul.f32 0.1, %v2077_v26  ;;  %v2085_v39 = vadd.f32 %v2084_v36, %v1939_v57  ;;  %v2090_v31 = vadd.f32 %v3244_v53, %v1944_v42  ;;  %v5461_v36 = vld [vmem:[#allocation88_spill] sm:$0xff] }
 0x5e2   : >> { %v2226_v52 = vadd.f32 %v2225_v38, %v2211_v18  ;;  %v2117_v10 = vmax.f32 %v2053_v55, %v2101_v58  ;;  %v2215_v50 = vmul.f32 %v4722_v9, %v2119_v22  ;;  %v2217_v8 = vmul.f32 %v2176_v27, %v2121_v6  ;;  %v2196_v48 = vpop.permute.xlu1 %2195  ;;  %v5462_v6 = vld [vmem:[#allocation87_spill] sm:$0xff] }
 0x5e3   : >> { %v2216_v28 = vmul.f32 %v2171_v1, %v2120_v33  ;;  %v2123_v23 = vmax.f32 %v2077_v26, %v2107_v13  ;;  %v2093_v45 = vadd.f32 %v3245_v34, %v1949_v12  ;;  %v2109_v63 = vmul.f32 0.1, %v2085_v39  ;;  %v2191_v18 = vpop.permute.xlu0 %2190 }
 0x5e4   : >> { %v2227_v30 = vadd.f32 %v2226_v52, %v2212_v7  ;;  %v2213_v61 = vmul.f32 %v4718_v21, %v2117_v10  ;;  %v2218_v20 = vmul.f32 %v2181_v24, %v2122_v44  ;;  %v2110_v0 = vmul.f32 0.1, %v2090_v31 }
 0x5e5   : >> { %v2124_v41 = vmax.f32 %v2082_v35, %v2108_v37  ;;  %v2219_v9 = vmul.f32 %v2186_v43, %v2123_v23  ;;  %v2111_v38 = vmul.f32 0.1, %v2093_v45  ;;  %v2125_v57 = vmax.f32 %v2085_v39, %v2109_v63 }
 0x5e6   : >> { %v2228_v59 = vadd.f32 %v2227_v30, %v2213_v61  ;;  %v2126_v1 = vmax.f32 %v2090_v31, %v2110_v0  ;;  %v2206_v11 = vpop.permute.xlu1 %2205 }
 0x5e7   : >> { %v2220_v53 = vmul.f32 %v2191_v18, %v2124_v41  ;;  %v2127_v2 = vmax.f32 %v2093_v45, %v2111_v38  ;;  %v2221_v7 = vmul.f32 %v2196_v48, %v2125_v57  ;;  %v2201_v27 = vpop.permute.xlu0 %2200 }
 0x5e8   : >> { %v2229_v55 = vadd.f32 %v2228_v59, %v2214_v4  ;;  %v2222_v34 = vmul.f32 %v2201_v27, %v2126_v1  ;;  %v2259_v59 = vstv %s3626_s15  ;;  %s1697_s15 = sadd.s32 1, %s3626_s15  }
 0x5e9   : >> { %v2223_v10 = vmul.f32 %v2206_v11, %v2127_v2  ;;  %vm2260_vm4 = vcmp.eq.s32.totalorder %v5462_v6, %v2259_v59  ;;  %vm2261_vm5 = vcmp.eq.s32.totalorder %v5225_v40, %v2259_v59  ;;  %p1694_p8 = scmp.ge.s32.totalorder %s1697_s15, 9  }
 0x5ea   : >> { %v2230_v21 = vadd.f32 %v2229_v55, %v2215_v50  ;;  %v4745_v43 = vld [vmem:[%s4117_s25 + $0x3] sm:$0x1] (%p1694_p8)  ;;  %v5468_v37 = vld [vmem:[#allocation96_spill] sm:$0xff] (%p1694_p8)  ;;  %v5470_v12 = vld [vmem:[#allocation90_spill] sm:$0xff] (%p1694_p8)  ;;  %s4801_s18 = smov (%p1694_p8), 0  }
 0x5eb   : >> { %v2248_v42 = vpop.permute.xlu0 %2247  ;;  %v5478_v41 = vld [vmem:[#allocation102_spill] sm:$0xff] (%p1694_p8)  ;;  %v5479_v18 = vld [vmem:[#allocation108_spill] sm:$0xff] (%p1694_p8) }
 0x5ec   : >> { %v2231_v46 = vadd.f32 %v2230_v21, %v2216_v28  ;;  %v2253_v33 = vrot.slane %v2248_v42, %v5461_v36  ;;  %v5466_v28 = vld [vmem:[#allocation92_spill] sm:$0xff] (%p1694_p8)  ;;  %v5481_v38 = vld [vmem:[#allocation106_spill] sm:$0xff] (%p1694_p8) }
 0x5ed   : > { %v5484_v1 = vld [vmem:[#allocation110_spill] sm:$0xff] (%p1694_p8)  ;;  %v5488_v27 = vld [vmem:[#allocation120_spill] sm:$0xff] (%p1694_p8) }
 0x5ee   : >> { %v2232_v56 = vadd.f32 %v2231_v46, %v2217_v8  ;;  %v5472_v8 = vld [vmem:[#allocation94_spill] sm:$0xff] (%p1694_p8) }
 0x5ef   : > { %v5475_v46 = vld [vmem:[#allocation98_spill] sm:$0xff] (%p1694_p8) }
 0x5f0   : >> { %v2233_v19 = vadd.f32 %v2232_v56, %v2218_v20  ;;  %v5476_v20 = vld [vmem:[#allocation104_spill] sm:$0xff] (%p1694_p8) }
 0x5f2   : >> { %v2234_v58 = vadd.f32 %v2233_v19, %v2219_v9  ;;  %v5482_v19 = vld [vmem:[#allocation112_spill] sm:$0xff] (%p1694_p8) }
 0x5f4   : >> { %v2235_v52 = vadd.f32 %v2234_v58, %v2220_v53  ;;  %v5485_v58 = vld [vmem:[#allocation116_spill] sm:$0xff] (%p1694_p8) }
 0x5f6   : >> { %v2236_v25 = vadd.f32 %v2235_v52, %v2221_v7  ;;  %v5487_v7 = vld [vmem:[#allocation114_spill] sm:$0xff] (%p1694_p8) }
 0x5f8   : >> { %v2237_v24 = vadd.f32 %v2236_v25, %v2222_v34  ;;  %v5490_v25 = vld [vmem:[#allocation118_spill] sm:$0xff] (%p1694_p8) }
 0x5fa   : >> { %v2238_v26 = vadd.f32 %v2237_v24, %v2223_v10  ;;  %v4797_v10 = vmov (%p1694_p8), 0.0   ;;  %v4799_v24 = vmov (%p1694_p8), 0.0  }
 0x5fc   : >> { %v2239_v30 = vrot.slane %v2238_v26, 4 }
 0x5fe   : >> { %v2240_v5 = vadd.f32 %v2239_v30, %v2238_v26 }
 0x600   : >> { %v2241_v22 = vrot.slane %v2240_v5, 2 }
 0x602   : >> { %v2242_v61 = vadd.f32 %v2241_v22, %v2240_v5 }
 0x604   : >> { %v2243_v3 = vrot.slane %v2242_v61, 1 }
 0x606   : >> { %v2244_v4 = vadd.f32 %v2243_v3, %v2242_v61 }
 0x608   : >> { %v2254_v35 = vadd.f32 %v2253_v33, %v2244_v4 }
 0x60a   : >> { %v2255_v13 = vmul.f32 %v4561_v54, %v2254_v35 }
 0x60b   : > { %1696 = sbr.rel (!%p1694_p8) target bundleno = 1118 (0x45e), region = 162 }
 0x60c   : >> { %v2270_v50 = vrot.slane %v2255_v13, %v5461_v36 }
 0x60e   : >> { %v2272_v55 = vsel %vm2260_vm4, %v2270_v50, %v3622_v47   ;;  %v2273_v39 = vsel %vm2261_vm5, %v2270_v50, %v3618_v51  }
 0x60f   : >> { %v5463_v51 = vmov %v2273_v39  ;;  %v5464_v47 = vmov %v2272_v55  ;;  %3067 = vst [vmem:[%s4208_s28 + $0x10] sm:$0xff] (%p1694_p8), %v2272_v55  ;;  %3068 = vst [vmem:[%s4208_s28 + $0x30] sm:$0x1] (%p1694_p8), %v2273_v39 }
 0x610   : > { %v5465_v47 = vld [vmem:[#allocation88_spill] sm:$0xff] }
 0x611   : > { %v2283_v44 = vrot.slane %v4745_v43, %v5465_v47  ;;  %v5473_v51 = vld [vmem:[#allocation100_spill] sm:$0xff] }
 0x613   : > { %v4750_v31 = vmul.f32 %v2283_v44, %v5466_v28  ;;  %v4753_v21 = vmul.f32 %v2283_v44, %v5468_v37  ;;  %v4756_v23 = vmul.f32 %v2283_v44, %v5470_v12  ;;  %v4759_v54 = vmul.f32 %v2283_v44, %v5472_v8 }
 0x614   : > { %v4762_v45 = vmul.f32 %v2283_v44, %v5473_v51  ;;  %v4765_v63 = vmul.f32 %v2283_v44, %v5475_v46  ;;  %v4768_v0 = vmul.f32 %v2283_v44, %v5476_v20  ;;  %v4771_v56 = vmul.f32 %v2283_v44, %v5478_v41 }
 0x615   : > { %5467 = vst [vmem:[#allocation121_spill] sm:$0xff] %v4750_v31  ;;  %5469 = vst [vmem:[#allocation23_spill] sm:$0xff] %v4753_v21  ;;  %v4774_v9 = vmul.f32 %v2283_v44, %v5479_v18  ;;  %v4777_v57 = vmul.f32 %v2283_v44, %v5481_v38  ;;  %v4780_v48 = vmul.f32 %v2283_v44, %v5482_v19 }
 0x616   : > { %5471 = vst [vmem:[#allocation24_spill] sm:$0xff] %v4756_v23  ;;  %5474 = vst [vmem:[#allocation25_spill] sm:$0xff] %v4762_v45  ;;  %v4783_v53 = vmul.f32 %v2283_v44, %v5484_v1  ;;  %v4786_v2 = vmul.f32 %v2283_v44, %v5485_v58  ;;  %v4789_v52 = vmul.f32 %v2283_v44, %v5487_v7 }
 0x617   : > { %5477 = vst [vmem:[#allocation26_spill] sm:$0xff] %v4768_v0  ;;  %5480 = vst [vmem:[#allocation27_spill] sm:$0xff] %v4774_v9  ;;  %v4792_v34 = vmul.f32 %v2283_v44, %v5488_v27  ;;  %v4795_v11 = vmul.f32 %v2283_v44, %v5490_v25 }
 0x618   : > { %5483 = vst [vmem:[#allocation28_spill] sm:$0xff] %v4780_v48  ;;  %5486 = vst [vmem:[#allocation29_spill] sm:$0xff] %v4786_v2 }
 0x619   : > { %5489 = vst [vmem:[#allocation30_spill] sm:$0xff] %v4792_v34  ;;  %5491 = vst [vmem:[#allocation31_spill] sm:$0xff] %v4795_v11 }
 0x61a LB: >> { %3262 = vmatprep.mubr.bf16.mxu0 %v4264_v49  ;;  %3270 = vmatprep.mubr.bf16.mxu1 %v4268_v60  ;;  %v3647_v26 = vmov 0   ;;  %s2309_s19 = scvt.s32.f32 %s3638_s18  ;;  %v5492_v5 = vld [vmem:[#allocation86_spill] sm:$0xff]  ;;  %v5493_v61 = vld [vmem:[#allocation85_spill] sm:$0xff]  ;;  %v5494_v36 = vld [vmem:[#allocation84_spill] sm:$0xff]  ;;  %s3638_s18 = sphi %s4801_s18, %s2306_s18   ;;  %v3634_v24 = vphi %v4799_v24, %v5575_v24   ;;  %v3630_v10 = vphi %v4797_v10, %v5574_v10  }
 0x61b   : >> { %3489 = vset.pattern.permute.xlu1 %v3647_v26  ;;  %3488 = vset.pattern.permute.xlu0 %v3647_v26  ;;  %v5495_v16 = vld [vmem:[#allocation21_spill] sm:$0xff]  ;;  %v5496_v14 = vld [vmem:[#allocation19_spill] sm:$0xff]  ;;  %v5497_v59 = vld [vmem:[#allocation82_spill] sm:$0xff] }
 0x61c   : >> { %s2310_s20 = smul.f32 0.125, %s2309_s19  ;;  %v5498_v17 = vld [vmem:[#allocation22_spill] sm:$0xff]  ;;  %v5499_v15 = vld [vmem:[#allocation20_spill] sm:$0xff]  ;;  %v5500_v32 = vld [vmem:[#allocation83_spill] sm:$0xff] }
 0x61d   : >> { %v5501_v29 = vld [vmem:[#allocation80_spill] sm:$0xff]  ;;  %v5502_v47 = vld [vmem:[#allocation18_spill] sm:$0xff]  ;;  %v5503_v28 = vld [vmem:[#allocation17_spill] sm:$0xff] }
 0x61e   : >> { %v2311_v30 = vstv %s2310_s20  ;;  %v5504_v12 = vld [vmem:[#allocation81_spill] sm:$0xff]  ;;  %v5505_v51 = vld [vmem:[#allocation16_spill] sm:$0xff]  ;;  %v5506_v20 = vld [vmem:[#allocation15_spill] sm:$0xff] }
 0x61f   : >> { %v2326_v22 = vmul.f32 %v2311_v30, %v5492_v5  ;;  %v2324_v42 = vmul.f32 %v2311_v30, %v5493_v61  ;;  %v2327_v3 = vmul.f32 %v2311_v30, %v4102_v62  ;;  %v2325_v33 = vmul.f32 %v2311_v30, %v5494_v36  ;;  %v5507_v18 = vld [vmem:[#allocation78_spill] sm:$0xff]  ;;  %v5508_v19 = vld [vmem:[#allocation79_spill] sm:$0xff]  ;;  %v5509_v58 = vld [vmem:[#allocation76_spill] sm:$0xff] }
 0x620   : >> { %v2323_v13 = vmul.f32 %v2311_v30, %v5497_v59  ;;  %v2322_v55 = vmul.f32 %v2311_v30, %v5500_v32  ;;  %v2321_v39 = vmul.f32 %v2311_v30, %v5501_v29  ;;  %v2320_v8 = vmul.f32 %v2311_v30, %v5504_v12  ;;  %v5510_v27 = vld [vmem:[#allocation14_spill] sm:$0xff]  ;;  %v5511_v26 = vld [vmem:[#allocation13_spill] sm:$0xff]  ;;  %v5514_v36 = vld [vmem:[#allocation12_spill] sm:$0xff] }
 0x621   : >> { %v2342_v4 = vsub.f32 %v5495_v16, %v2326_v22  ;;  %v2340_v35 = vsub.f32 %v5496_v14, %v2324_v42  ;;  %v2343_v6 = vsub.f32 %v5498_v17, %v2327_v3  ;;  %v2341_v50 = vsub.f32 %v5499_v15, %v2325_v33  ;;  %v5512_v22 = vld [vmem:[#allocation77_spill] sm:$0xff]  ;;  %v5513_v42 = vld [vmem:[#allocation74_spill] sm:$0xff]  ;;  %v5516_v59 = vld [vmem:[#allocation72_spill] sm:$0xff] }
 0x622   : >> { %v2339_v44 = vsub.f32 %v5502_v47, %v2323_v13  ;;  %v2338_v37 = vsub.f32 %v5503_v28, %v2322_v55  ;;  %v2337_v46 = vsub.f32 %v5505_v51, %v2321_v39  ;;  %v2336_v41 = vsub.f32 %v5506_v20, %v2320_v8  ;;  %v5518_v55 = vld [vmem:[#allocation10_spill] sm:$0xff]  ;;  %v5519_v47 = vld [vmem:[#allocation9_spill] sm:$0xff]  ;;  %v5521_v12 = vld [vmem:[#allocation8_spill] sm:$0xff] }
 0x623   : >> { %2416 = vperm.xlu0 %3488, %v2342_v4   ;;  %2406 = vperm.xlu1 %3489, %v2340_v35   ;;  %v2319_v38 = vmul.f32 %v2311_v30, %v5507_v18  ;;  %v2318_v1 = vmul.f32 %v2311_v30, %v5508_v19  ;;  %v2317_v7 = vmul.f32 %v2311_v30, %v5509_v58  ;;  %v5515_v4 = vld [vmem:[#allocation11_spill] sm:$0xff]  ;;  %v5520_v28 = vld [vmem:[#allocation73_spill] sm:$0xff]  ;;  %v5523_v20 = vld [vmem:[#allocation40_spill] sm:$0xff] }
 0x624   : >> { %v2316_v61 = vmul.f32 %v2311_v30, %v5512_v22  ;;  %v2315_v3 = vmul.f32 %v2311_v30, %v5513_v42  ;;  %v2314_v13 = vmul.f32 %v2311_v30, %v5516_v59  ;;  %v5522_v51 = vld [vmem:[#allocation7_spill] sm:$0xff]  ;;  %v5525_v18 = vld [vmem:[#allocation42_spill] sm:$0xff]  ;;  %v5530_v58 = vld [vmem:[#allocation56_spill] sm:$0xff] }
 0x625   : >> { %v2335_v25 = vsub.f32 %v5510_v27, %v2319_v38  ;;  %v2334_v5 = vsub.f32 %v5511_v26, %v2318_v1  ;;  %v2333_v33 = vsub.f32 %v5514_v36, %v2317_v7  ;;  %v5526_v38 = vld [vmem:[#allocation41_spill] sm:$0xff]  ;;  %v5527_v19 = vld [vmem:[#allocation55_spill] sm:$0xff]  ;;  %v5534_v26 = vld [vmem:[#allocation58_spill] sm:$0xff] }
 0x626   : >> { %v2332_v35 = vsub.f32 %v5515_v4, %v2316_v61  ;;  %v2331_v39 = vsub.f32 %v5518_v55, %v2315_v3  ;;  %v5528_v1 = vld [vmem:[#allocation43_spill] sm:$0xff]  ;;  %v5531_v7 = vld [vmem:[#allocation45_spill] sm:$0xff]  ;;  %v5537_v61 = vld [vmem:[#allocation48_spill] sm:$0xff] }
 0x627   : >> { %2421 = vperm.xlu0 %3488, %v2343_v6   ;;  %2411 = vperm.xlu1 %3489, %v2341_v50   ;;  %v5517_v6 = vld [vmem:[#allocation75_spill] sm:$0xff]  ;;  %v5532_v27 = vld [vmem:[#allocation57_spill] sm:$0xff]  ;;  %v5538_v42 = vld [vmem:[#allocation60_spill] sm:$0xff] }
 0x628   : >> { %v2313_v50 = vmul.f32 %v2311_v30, %v5517_v6  ;;  %v5536_v22 = vld [vmem:[#allocation59_spill] sm:$0xff]  ;;  %v5539_v3 = vld [vmem:[#allocation49_spill] sm:$0xff]  ;;  %v5542_v4 = vld [vmem:[#allocation62_spill] sm:$0xff] }
 0x629   : >> { %v5540_v36 = vld [vmem:[#allocation61_spill] sm:$0xff]  ;;  %v5544_v59 = vld [vmem:[#allocation63_spill] sm:$0xff]  ;;  %v5546_v6 = vld [vmem:[#allocation64_spill] sm:$0xff] }
 0x62a   : >> { %v2329_v8 = vsub.f32 %v5521_v12, %v2313_v50  ;;  %v5547_v50 = vld [vmem:[#allocation53_spill] sm:$0xff]  ;;  %v5556_v34 = vld [vmem:[#allocation30_spill] sm:$0xff]  ;;  %v5558_v11 = vld [vmem:[#allocation31_spill] sm:$0xff] }
 0x62b   : >> { %2401 = vperm.xlu1 %3489, %v2339_v44   ;;  %2396 = vperm.xlu0 %3488, %v2338_v37   ;;  %v2330_v44 = vsub.f32 %v5519_v47, %v2314_v13  ;;  %v2312_v37 = vmul.f32 %v2311_v30, %v5520_v28  ;;  %v5529_v30 = vld [vmem:[#allocation44_spill] sm:$0xff]  ;;  %v5548_v55 = vld [vmem:[#allocation65_spill] sm:$0xff]  ;;  %v5550_v47 = vld [vmem:[#allocation66_spill] sm:$0xff] }
 0x62c   : >> { %v5545_v13 = vld [vmem:[#allocation52_spill] sm:$0xff]  ;;  %v5552_v28 = vld [vmem:[#allocation67_spill] sm:$0xff]  ;;  %v5554_v12 = vld [vmem:[#allocation69_spill] sm:$0xff] }
 0x62d   : >> { %v5557_v2 = vld [vmem:[#allocation29_spill] sm:$0xff]  ;;  %v5559_v48 = vld [vmem:[#allocation28_spill] sm:$0xff]  ;;  %v5560_v9 = vld [vmem:[#allocation27_spill] sm:$0xff] }
 0x62e   : >> { %v5561_v0 = vld [vmem:[#allocation26_spill] sm:$0xff]  ;;  %v5562_v45 = vld [vmem:[#allocation25_spill] sm:$0xff]  ;;  %v5563_v23 = vld [vmem:[#allocation24_spill] sm:$0xff] }
 0x62f   : >> { %2391 = vperm.xlu1 %3489, %v2337_v46   ;;  %2386 = vperm.xlu0 %3488, %v2336_v41   ;;  %v2328_v46 = vsub.f32 %v5522_v51, %v2312_v37  ;;  %v5524_v41 = vld [vmem:[#allocation39_spill] sm:$0xff]  ;;  %v5553_v37 = vld [vmem:[#allocation70_spill] sm:$0xff]  ;;  %v5565_v31 = vld [vmem:[#allocation121_spill] sm:$0xff] }
 0x630   : >> { %v5564_v21 = vld [vmem:[#allocation23_spill] sm:$0xff] }
 0x633   : >> { %2381 = vperm.xlu1 %3489, %v2335_v25   ;;  %2376 = vperm.xlu0 %3488, %v2334_v5   ;;  %v5533_v25 = vld [vmem:[#allocation46_spill] sm:$0xff]  ;;  %v5535_v5 = vld [vmem:[#allocation47_spill] sm:$0xff] }
 0x637   : >> { %2371 = vperm.xlu1 %3489, %v2333_v33   ;;  %2366 = vperm.xlu0 %3488, %v2332_v35   ;;  %v5541_v33 = vld [vmem:[#allocation50_spill] sm:$0xff]  ;;  %v5543_v35 = vld [vmem:[#allocation51_spill] sm:$0xff] }
 0x63b   : >> { %2361 = vperm.xlu1 %3489, %v2331_v39   ;;  %2356 = vperm.xlu0 %3488, %v2330_v44   ;;  %v5549_v39 = vld [vmem:[#allocation54_spill] sm:$0xff]  ;;  %v5551_v44 = vld [vmem:[#allocation68_spill] sm:$0xff] }
 0x63f   : >> { %2351 = vperm.xlu1 %3489, %v2329_v8   ;;  %2346 = vperm.xlu0 %3488, %v2328_v46   ;;  %v5555_v8 = vld [vmem:[#allocation71_spill] sm:$0xff] }
 0x643   : >> { %2487 = vperm.xlu1 %3489, %v5523_v20   ;;  %2482 = vperm.xlu0 %3488, %v5524_v41  }
 0x647   : >> { %2497 = vperm.xlu1 %3489, %v5525_v18   ;;  %2492 = vperm.xlu0 %3488, %v5526_v38  }
 0x64b   : >> { %2739 = vperm.xlu1 %3489, %v5527_v19   ;;  %2502 = vperm.xlu0 %3488, %v5528_v1  }
 0x64f   : >> { %2507 = vperm.xlu1 %3489, %v5529_v30   ;;  %2744 = vperm.xlu0 %3488, %v5530_v58  }
 0x653   : >> { %2512 = vperm.xlu1 %3489, %v5531_v7   ;;  %2749 = vperm.xlu0 %3488, %v5532_v27  }
 0x657   : >> { %2517 = vperm.xlu1 %3489, %v5533_v25   ;;  %2754 = vperm.xlu0 %3488, %v5534_v26  }
 0x65b   : >> { %2522 = vperm.xlu1 %3489, %v5535_v5   ;;  %2759 = vperm.xlu0 %3488, %v5536_v22  }
 0x65f   : >> { %2527 = vperm.xlu1 %3489, %v5537_v61   ;;  %2764 = vperm.xlu0 %3488, %v5538_v42  }
 0x663   : >> { %2532 = vperm.xlu1 %3489, %v5539_v3   ;;  %2769 = vperm.xlu0 %3488, %v5540_v36  }
 0x667   : >> { %2537 = vperm.xlu1 %3489, %v5541_v33   ;;  %2774 = vperm.xlu0 %3488, %v5542_v4  }
 0x66b   : >> { %2542 = vperm.xlu1 %3489, %v5543_v35   ;;  %2779 = vperm.xlu0 %3488, %v5544_v59  }
 0x66f   : >> { %2547 = vperm.xlu1 %3489, %v5545_v13   ;;  %2784 = vperm.xlu0 %3488, %v5546_v6  }
 0x673   : >> { %2552 = vperm.xlu1 %3489, %v5547_v50   ;;  %2789 = vperm.xlu0 %3488, %v5548_v55  }
 0x677   : >> { %2557 = vperm.xlu1 %3489, %v5549_v39   ;;  %2794 = vperm.xlu0 %3488, %v5550_v47  }
 0x67b   : >> { %2804 = vperm.xlu1 %3489, %v5551_v44   ;;  %2799 = vperm.xlu0 %3488, %v5552_v28  }
 0x67f   : >> { %2814 = vperm.xlu1 %3489, %v5553_v37   ;;  %2809 = vperm.xlu0 %3488, %v5554_v12  }
 0x683   : >> { %2856 = vperm.xlu0 %3488, %v5555_v8  }
 0x69e   : >> { %v2417_v51 = vpop.permute.xlu0 %2416  ;;  %v2407_v46 = vpop.permute.xlu1 %2406 }
 0x69f   : >> { %v2438_v20 = vadd.f32 %v2417_v51, %v5556_v34  ;;  %v2436_v41 = vadd.f32 %v2407_v46, %v5557_v2 }
 0x6a1   : >> { %v2454_v18 = vmul.f32 0.1, %v2438_v20  ;;  %v2452_v58 = vmul.f32 0.1, %v2436_v41 }
 0x6a2   : >> { %v2422_v38 = vpop.permute.xlu0 %2421  ;;  %v2412_v19 = vpop.permute.xlu1 %2411 }
 0x6a3   : >> { %v2439_v1 = vadd.f32 %v2422_v38, %v5558_v11  ;;  %v2437_v30 = vadd.f32 %v2412_v19, %v4789_v52  ;;  %v2470_v25 = vmax.f32 %v2438_v20, %v2454_v18  ;;  %v2468_v36 = vmax.f32 %v2436_v41, %v2452_v58 }
 0x6a5   : >> { %v2455_v7 = vmul.f32 0.1, %v2439_v1  ;;  %v2453_v27 = vmul.f32 0.1, %v2437_v30 }
 0x6a6   : >> { %v2402_v26 = vpop.permute.xlu1 %2401  ;;  %v2397_v5 = vpop.permute.xlu0 %2396 }
 0x6a7   : >> { %v2471_v22 = vmax.f32 %v2439_v1, %v2455_v7  ;;  %v2469_v61 = vmax.f32 %v2437_v30, %v2453_v27  ;;  %v2435_v42 = vadd.f32 %v2402_v26, %v4783_v53  ;;  %v2434_v3 = vadd.f32 %v2397_v5, %v5559_v48 }
 0x6a9   : >> { %v2479_v33 = vpack.c.bf16 %v2471_v22, %v2470_v25  ;;  %v2451_v4 = vmul.f32 0.1, %v2435_v42  ;;  %v2450_v35 = vmul.f32 0.1, %v2434_v3  ;;  %v2478_v59 = vpack.c.bf16 %v2469_v61, %v2468_v36 }
 0x6aa   : >> { %v2392_v13 = vpop.permute.xlu1 %2391  ;;  %v2387_v6 = vpop.permute.xlu0 %2386 }
 0x6ab   : >> { %v2467_v50 = vmax.f32 %v2435_v42, %v2451_v4  ;;  %v2466_v55 = vmax.f32 %v2434_v3, %v2450_v35  ;;  %v2433_v39 = vadd.f32 %v2392_v13, %v4777_v57  ;;  %v2432_v47 = vadd.f32 %v2387_v6, %v5560_v9  ;;  %3246 = vmatprep.subr.bf16.mxu0 %v2479_v33 }
 0x6ac   : >> { %3326 = vmatprep.subr.bf16.mxu1 %v2479_v33  ;;  %3247 = vmatpush3.bf16.msra.mxu0 %v2479_v33 }
 0x6ad   : >> { %v2449_v44 = vmul.f32 0.1, %v2433_v39  ;;  %v2448_v28 = vmul.f32 0.1, %v2432_v47  ;;  %3334 = vmatpush3.bf16.msra.mxu1 %v2479_v33  ;;  %3248 = vmatprep.subr.bf16.mxu0 %v2478_v59  ;;  %v2477_v37 = vpack.c.bf16 %v2467_v50, %v2466_v55 }
 0x6ae   : >> { %3327 = vmatprep.subr.bf16.mxu1 %v2478_v59  ;;  %v2382_v12 = vpop.permute.xlu1 %2381  ;;  %v2377_v8 = vpop.permute.xlu0 %2376 }
 0x6af   : >> { %v2465_v51 = vmax.f32 %v2433_v39, %v2449_v44  ;;  %v2464_v46 = vmax.f32 %v2432_v47, %v2448_v28  ;;  %v2431_v20 = vadd.f32 %v2382_v12, %v4771_v56  ;;  %v2430_v41 = vadd.f32 %v2377_v8, %v5561_v0 }
 0x6b0   : >> { %3249 = vmatpush3.bf16.msra.mxu0 %v2478_v59 }
 0x6b1   : >> { %v2447_v18 = vmul.f32 0.1, %v2431_v20  ;;  %v2446_v38 = vmul.f32 0.1, %v2430_v41  ;;  %3335 = vmatpush3.bf16.msra.mxu1 %v2478_v59  ;;  %3250 = vmatprep.subr.bf16.mxu0 %v2477_v37  ;;  %v2476_v19 = vpack.c.bf16 %v2465_v51, %v2464_v46 }
 0x6b2   : >> { %3328 = vmatprep.subr.bf16.mxu1 %v2477_v37  ;;  %v2372_v1 = vpop.permute.xlu1 %2371  ;;  %v2367_v30 = vpop.permute.xlu0 %2366 }
 0x6b3   : >> { %v2463_v58 = vmax.f32 %v2431_v20, %v2447_v18  ;;  %v2462_v7 = vmax.f32 %v2430_v41, %v2446_v38  ;;  %v2429_v27 = vadd.f32 %v2372_v1, %v4765_v63  ;;  %v2428_v25 = vadd.f32 %v2367_v30, %v5562_v45  ;;  %v5566_v20 = vld [vmem:[#allocation124_spill] sm:$0xff]  ;;  %v5567_v41 = vld [vmem:[#allocation125_spill] sm:$0xff]  ;;  %v5568_v18 = vld [vmem:[#allocation126_spill] sm:$0xff] }
 0x6b4   : >> { %3251 = vmatpush3.bf16.msra.mxu0 %v2477_v37  ;;  %v5569_v38 = vld [vmem:[#allocation127_spill] sm:$0xff]  ;;  %v5571_v1 = vld [vmem:[#allocation129_spill] sm:$0xff] }
 0x6b5   : >> { %v2445_v26 = vmul.f32 0.1, %v2429_v27  ;;  %v2444_v5 = vmul.f32 0.1, %v2428_v25  ;;  %3336 = vmatpush3.bf16.msra.mxu1 %v2477_v37  ;;  %3252 = vmatprep.subr.bf16.mxu0 %v2476_v19  ;;  %v2475_v22 = vpack.c.bf16 %v2463_v58, %v2462_v7 }
 0x6b6   : >> { %3329 = vmatprep.subr.bf16.mxu1 %v2476_v19  ;;  %v2362_v61 = vpop.permute.xlu1 %2361  ;;  %v2357_v42 = vpop.permute.xlu0 %2356 }
 0x6b7   : >> { %v2461_v3 = vmax.f32 %v2429_v27, %v2445_v26  ;;  %v2460_v36 = vmax.f32 %v2428_v25, %v2444_v5  ;;  %v2427_v33 = vadd.f32 %v2362_v61, %v4759_v54  ;;  %v2426_v4 = vadd.f32 %v2357_v42, %v5563_v23 }
 0x6b8   : >> { %3253 = vmatpush3.bf16.msra.mxu0 %v2476_v19 }
 0x6b9   : >> { %v2443_v35 = vmul.f32 0.1, %v2427_v33  ;;  %v2442_v59 = vmul.f32 0.1, %v2426_v4  ;;  %3337 = vmatpush3.bf16.msra.mxu1 %v2476_v19  ;;  %3254 = vmatprep.subr.bf16.mxu0 %v2475_v22  ;;  %v2474_v13 = vpack.c.bf16 %v2461_v3, %v2460_v36  ;;  %v5570_v19 = vld [vmem:[#allocation128_spill] sm:$0xff] }
 0x6ba   : >> { %3330 = vmatprep.subr.bf16.mxu1 %v2475_v22  ;;  %v2352_v6 = vpop.permute.xlu1 %2351  ;;  %v2347_v50 = vpop.permute.xlu0 %2346 }
 0x6bb   : >> { %v2459_v55 = vmax.f32 %v2427_v33, %v2443_v35  ;;  %v2458_v39 = vmax.f32 %v2426_v4, %v2442_v59  ;;  %v2425_v47 = vadd.f32 %v2352_v6, %v5564_v21  ;;  %v2424_v44 = vadd.f32 %v2347_v50, %v5565_v31 }
 0x6bc   : >> { %3255 = vmatpush3.bf16.msra.mxu0 %v2475_v22 }
 0x6bd   : >> { %v2441_v28 = vmul.f32 0.1, %v2425_v47  ;;  %v2440_v37 = vmul.f32 0.1, %v2424_v44  ;;  %3338 = vmatpush3.bf16.msra.mxu1 %v2475_v22  ;;  %3256 = vmatprep.subr.bf16.mxu0 %v2474_v13  ;;  %v2473_v12 = vpack.c.bf16 %v2459_v55, %v2458_v39 }
 0x6be   : >> { %3331 = vmatprep.subr.bf16.mxu1 %v2474_v13  ;;  %v2483_v30 = vpop.permute.xlu0 %2482  ;;  %v2488_v58 = vpop.permute.xlu1 %2487 }
 0x6bf   : >> { %v2457_v8 = vmax.f32 %v2425_v47, %v2441_v28  ;;  %v2456_v51 = vmax.f32 %v2424_v44, %v2440_v37 }
 0x6c0   : >> { %3257 = vmatpush3.bf16.msra.mxu0 %v2474_v13 }
 0x6c1   : >> { %3339 = vmatpush3.bf16.msra.mxu1 %v2474_v13  ;;  %3258 = vmatprep.subr.bf16.mxu0 %v2473_v12  ;;  %v2472_v46 = vpack.c.bf16 %v2457_v8, %v2456_v51 }
 0x6c2   : >> { %3332 = vmatprep.subr.bf16.mxu1 %v2473_v12  ;;  %v2493_v7 = vpop.permute.xlu0 %2492  ;;  %v2498_v27 = vpop.permute.xlu1 %2497 }
 0x6c4   : >> { %3259 = vmatpush3.bf16.msra.mxu0 %v2473_v12 }
 0x6c5   : >> { %3340 = vmatpush3.bf16.msra.mxu1 %v2473_v12  ;;  %3260 = vmatprep.subr.bf16.mxu0 %v2472_v46 }
 0x6c6   : >> { %3333 = vmatprep.subr.bf16.mxu1 %v2472_v46  ;;  %v2503_v25 = vpop.permute.xlu0 %2502  ;;  %v2740_v26 = vpop.permute.xlu1 %2739 }
 0x6c8   : >> { %3261 = vmatpush3.bf16.msra.mxu0 %v2472_v46 }
 0x6c9   : >> { %3341 = vmatpush3.bf16.msra.mxu1 %v2472_v46 }
 0x6ca   : >> { %v2745_v5 = vpop.permute.xlu0 %2744  ;;  %v2508_v22 = vpop.permute.xlu1 %2507 }
 0x6cb   : >> { %3263 = vmatmul.mubr.bf16.vlgmr.msra.gmra.mxu0 %v5566_v20 }
 0x6cc   : >> { %3271 = vmatmul.mubr.bf16.vlgmr.msra.gmra.mxu1 %v5567_v41  ;;  %3266 = vmatprep.mubr.bf16.mxu0 %v5568_v18 }
 0x6cd   : >> { %3274 = vmatprep.mubr.bf16.mxu1 %v5569_v38 }
 0x6ce   : >> { %v2750_v61 = vpop.permute.xlu0 %2749  ;;  %v2513_v42 = vpop.permute.xlu1 %2512 }
 0x6d2   : >> { %v2755_v3 = vpop.permute.xlu0 %2754  ;;  %v2518_v36 = vpop.permute.xlu1 %2517 }
 0x6d3   : >> { %3267 = vmatmul.mubr.bf16.gmra.mxu0 %v5570_v19 }
 0x6d4   : >> { %3275 = vmatmul.mubr.bf16.gmra.mxu1 %v5571_v1 }
 0x6d6   : >> { %v2760_v33 = vpop.permute.xlu0 %2759  ;;  %v2523_v4 = vpop.permute.xlu1 %2522 }
 0x6da   : >> { %v4902_v35 = vpop.permute.xlu0 %2764  ;;  %v2528_v59 = vpop.permute.xlu1 %2527 }
 0x6de   : >> { %v4904_v13 = vpop.permute.xlu0 %2769  ;;  %v2533_v6 = vpop.permute.xlu1 %2532 }
 0x6e2   : >> { %v4906_v47 = vpop.permute.xlu0 %2774  ;;  %v2538_v8 = vpop.permute.xlu1 %2537 }
 0x6e6   : >> { %v2780_v0 = vpop.permute.xlu0 %2779  ;;  %v2543_v15 = vpop.permute.xlu1 %2542 }
 0x78b   : >> { %v3264_v50 = vpop.f32.mrf.mxu0 }
 0x78c   : >> { %v3272_v55 = vpop.f32.mrf.mxu1  ;;  %v2651_v44 = vadd.f32 %v3264_v50, %v2493_v7 }
 0x78d   : >> { %v2642_v39 = vpop.f32.mrf.mxu0 }
 0x78e   : >> { %v2643_v28 = vadd.f32 %v2642_v39, %v2483_v30  ;;  %v2674_v37 = vpop.f32.mrf.mxu1  ;;  %v2707_v18 = vmul.f32 0.1, %v2651_v44 }
 0x78f   : >> { %v3265_v12 = vpop.f32.mrf.mxu0  ;;  %v2675_v34 = vadd.f32 %v2674_v37, %v2523_v4 }
 0x790   : >> { %v2705_v51 = vmul.f32 0.1, %v2643_v28  ;;  %v2654_v46 = vadd.f32 %v3265_v12, %v2498_v27  ;;  %v3273_v20 = vpop.f32.mrf.mxu1  ;;  %v2723_v16 = vmax.f32 %v2651_v44, %v2707_v18  ;;  %v2548_v44 = vpop.permute.xlu1 %2547 }
 0x791   : >> { %v2645_v41 = vpop.f32.mrf.mxu0 }
 0x792   : >> { %v2646_v38 = vadd.f32 %v2645_v41, %v2488_v58  ;;  %v2677_v19 = vpop.f32.mrf.mxu1  ;;  %v2721_v2 = vmax.f32 %v2643_v28, %v2705_v51  ;;  %v2708_v9 = vmul.f32 0.1, %v2654_v46  ;;  %v2785_v41 = vpop.permute.xlu0 %2784  ;;  %v2819_v31 = vmul.f32 %v2750_v61, %v2723_v16 }
 0x793   : >> { %v3268_v1 = vpop.f32.mrf.mxu0 }
 0x794   : >> { %v2706_v11 = vmul.f32 0.1, %v2646_v38  ;;  %v3276_v30 = vpop.f32.mrf.mxu1  ;;  %v2667_v39 = vadd.f32 %v3268_v1, %v2513_v42  ;;  %v2817_v21 = vmul.f32 %v2740_v26, %v2721_v2  ;;  %v2724_v27 = vmax.f32 %v2654_v46, %v2708_v9  ;;  %v2553_v37 = vpop.permute.xlu1 %2552 }
 0x795   : >> { %v2658_v14 = vpop.f32.mrf.mxu0  ;;  %v2683_v2 = vadd.f32 %v3272_v55, %v2533_v6 }
 0x796   : >> { %v2722_v7 = vmax.f32 %v2646_v38, %v2706_v11  ;;  %v2659_v50 = vadd.f32 %v2658_v14, %v2503_v25  ;;  %v2690_v51 = vpop.f32.mrf.mxu1  ;;  %v2711_v45 = vmul.f32 0.1, %v2667_v39  ;;  %v2820_v11 = vmul.f32 %v2755_v3, %v2724_v27  ;;  %v2790_v16 = vpop.permute.xlu0 %2789 }
 0x797   : >> { %v3269_v17 = vpop.f32.mrf.mxu0  ;;  %v2678_v14 = vadd.f32 %v2677_v19, %v2528_v59  ;;  %v2715_v3 = vmul.f32 0.1, %v2683_v2  ;;  %v2691_v6 = vadd.f32 %v2690_v51, %v2543_v15 }
 0x798   : >> { %v2818_v12 = vmul.f32 %v2745_v5, %v2722_v7  ;;  %v2709_v23 = vmul.f32 0.1, %v2659_v50  ;;  %v2670_v29 = vadd.f32 %v3269_v17, %v2518_v36  ;;  %v3277_v5 = vpop.f32.mrf.mxu1  ;;  %v2713_v17 = vmul.f32 0.1, %v2675_v34 }
 0x799   : >> { %v2661_v58 = vpop.f32.mrf.mxu0  ;;  %v2727_v36 = vmax.f32 %v2667_v39, %v2711_v45  ;;  %v2714_v61 = vmul.f32 0.1, %v2678_v14  ;;  %v2717_v7 = vmul.f32 0.1, %v2691_v6 }
 0x79a   : >> { %v2833_v32 = vadd.f32 %v2818_v12, %v2817_v21  ;;  %v2725_v28 = vmax.f32 %v2659_v50, %v2709_v23  ;;  %v2662_v48 = vadd.f32 %v2661_v58, %v2508_v22  ;;  %v2712_v25 = vmul.f32 0.1, %v2670_v29  ;;  %v2558_v50 = vpop.permute.xlu1 %2557 }
 0x79b   : >> { %v2686_v21 = vadd.f32 %v3273_v20, %v2538_v8  ;;  %v2823_v59 = vmul.f32 %v4904_v13, %v2727_v36  ;;  %v2730_v38 = vmax.f32 %v2678_v14, %v2714_v61  ;;  %v2795_v8 = vpop.permute.xlu0 %2794  ;;  %v2731_v20 = vmax.f32 %v2683_v2, %v2715_v3 }
 0x79c   : >> { %v2834_v18 = vadd.f32 %v2833_v32, %v2819_v31  ;;  %v2710_v42 = vmul.f32 0.1, %v2662_v48  ;;  %v2821_v9 = vmul.f32 %v2760_v33, %v2725_v28  ;;  %v2728_v4 = vmax.f32 %v2670_v29, %v2712_v25  ;;  %v2693_v32 = vpop.f32.mrf.mxu1 }
 0x79d   : >> { %v2729_v31 = vmax.f32 %v2675_v34, %v2713_v17  ;;  %v2716_v55 = vmul.f32 0.1, %v2686_v21  ;;  %v2694_v19 = vadd.f32 %v2693_v32, %v2548_v44  ;;  %v2699_v29 = vadd.f32 %v3276_v30, %v2553_v37  ;;  %v5572_v32 = vld [vmem:[#allocation88_spill] sm:$0xff] }
 0x79e   : >> { %v2835_v26 = vadd.f32 %v2834_v18, %v2820_v11  ;;  %v2726_v46 = vmax.f32 %v2662_v48, %v2710_v42  ;;  %v2824_v45 = vmul.f32 %v4906_v47, %v2728_v4  ;;  %v2826_v27 = vmul.f32 %v2785_v41, %v2730_v38  ;;  %v2805_v25 = vpop.permute.xlu1 %2804  ;;  %v5573_v38 = vld [vmem:[#allocation87_spill] sm:$0xff] }
 0x79f   : >> { %v2825_v1 = vmul.f32 %v2780_v0, %v2729_v31  ;;  %v2732_v39 = vmax.f32 %v2686_v21, %v2716_v55  ;;  %v2702_v34 = vadd.f32 %v3277_v5, %v2558_v50  ;;  %v2718_v13 = vmul.f32 0.1, %v2694_v19  ;;  %v2800_v11 = vpop.permute.xlu0 %2799 }
 0x7a0   : >> { %v2836_v23 = vadd.f32 %v2835_v26, %v2821_v9  ;;  %v2822_v22 = vmul.f32 %v4902_v35, %v2726_v46  ;;  %v2827_v15 = vmul.f32 %v2790_v16, %v2731_v20  ;;  %v2719_v58 = vmul.f32 0.1, %v2699_v29 }
 0x7a1   : >> { %v2733_v28 = vmax.f32 %v2691_v6, %v2717_v7  ;;  %v2828_v47 = vmul.f32 %v2795_v8, %v2732_v39  ;;  %v2720_v18 = vmul.f32 0.1, %v2702_v34  ;;  %v2734_v44 = vmax.f32 %v2694_v19, %v2718_v13 }
 0x7a2   : >> { %v2837_v33 = vadd.f32 %v2836_v23, %v2822_v22  ;;  %v2735_v0 = vmax.f32 %v2699_v29, %v2719_v58  ;;  %v2815_v36 = vpop.permute.xlu1 %2814 }
 0x7a3   : >> { %v2829_v30 = vmul.f32 %v2800_v11, %v2733_v28  ;;  %v2736_v2 = vmax.f32 %v2702_v34, %v2720_v18  ;;  %v2830_v9 = vmul.f32 %v2805_v25, %v2734_v44  ;;  %v2810_v41 = vpop.permute.xlu0 %2809 }
 0x7a4   : >> { %v2838_v48 = vadd.f32 %v2837_v33, %v2823_v59  ;;  %v2831_v5 = vmul.f32 %v2810_v41, %v2735_v0  ;;  %v2868_v33 = vstv %s3638_s18  ;;  %s2306_s18 = sadd.s32 1, %s3638_s18  }
 0x7a5   : >> { %v2832_v46 = vmul.f32 %v2815_v36, %v2736_v2  ;;  %vm2869_vm6 = vcmp.eq.s32.totalorder %v5573_v38, %v2868_v33  ;;  %vm2870_vm7 = vcmp.eq.s32.totalorder %v5225_v40, %v2868_v33  ;;  %p2303_p9 = scmp.ge.s32.totalorder %s2306_s18, 9  }
 0x7a6   : >> { %v2839_v35 = vadd.f32 %v2838_v48, %v2824_v45 }
 0x7a7   : >> { %v2857_v37 = vpop.permute.xlu0 %2856 }
 0x7a8   : >> { %v2840_v12 = vadd.f32 %v2839_v35, %v2825_v1  ;;  %v2862_v31 = vrot.slane %v2857_v37, %v5572_v32 }
 0x7aa   : >> { %v2841_v51 = vadd.f32 %v2840_v12, %v2826_v27 }
 0x7ac   : >> { %v2842_v14 = vadd.f32 %v2841_v51, %v2827_v15 }
 0x7ae   : >> { %v2843_v42 = vadd.f32 %v2842_v14, %v2828_v47 }
 0x7b0   : >> { %v2844_v26 = vadd.f32 %v2843_v42, %v2829_v30 }
 0x7b2   : >> { %v2845_v17 = vadd.f32 %v2844_v26, %v2830_v9 }
 0x7b4   : >> { %v2846_v16 = vadd.f32 %v2845_v17, %v2831_v5 }
 0x7b6   : >> { %v2847_v21 = vadd.f32 %v2846_v16, %v2832_v46 }
 0x7b8   : >> { %v2848_v23 = vrot.slane %v2847_v21, 4 }
 0x7ba   : >> { %v2849_v61 = vadd.f32 %v2848_v23, %v2847_v21 }
 0x7bc   : >> { %v2850_v4 = vrot.slane %v2849_v61, 2 }
 0x7be   : >> { %v2851_v22 = vadd.f32 %v2850_v4, %v2849_v61 }
 0x7c0   : >> { %v2852_v3 = vrot.slane %v2851_v22, 1 }
 0x7c2   : >> { %v2853_v59 = vadd.f32 %v2852_v3, %v2851_v22 }
 0x7c4   : >> { %v2863_v6 = vadd.f32 %v2862_v31, %v2853_v59 }
 0x7c6   : >> { %v2864_v55 = vmul.f32 %v4745_v43, %v2863_v6 }
 0x7c7   : > { %2305 = sbr.rel (!%p2303_p9) target bundleno = 1562 (0x61a), region = 173 }
 0x7c8   : >> { %v2879_v45 = vrot.slane %v2864_v55, %v5572_v32 }
 0x7ca   : >> { %v2881_v48 = vsel %vm2869_vm6, %v2879_v45, %v3634_v24   ;;  %v2882_v19 = vsel %vm2870_vm7, %v2879_v45, %v3630_v10  }
 0x7cb   : >> { %v5574_v10 = vmov %v2882_v19  ;;  %v5575_v24 = vmov %v2881_v48  ;;  %3078 = vst [vmem:[%s4208_s28 + $0x18] sm:$0xff] (%p2303_p9), %v2881_v48  ;;  %3079 = vst [vmem:[%s4208_s28 + $0x38] sm:$0x1] (%p2303_p9), %v2882_v19 }
 0x7cc   : > { %2892 = sbr.rel (!%p3716_p4) target bundleno = 2005 (0x7d5), region = 84  ;;  %s3085_s21 = sshll.u32 (%p3716_p4), %s3704_s6, 5  ;;  %v2908_v24 = vld [vmem:[%s4208_s28] sm:$0xff] (%p3716_p4)  ;;  %v2910_v8 = vld [vmem:[%s4208_s28 + $0x8] sm:$0xff] (%p3716_p4)  ;;  %v2912_v20 = vld [vmem:[%s4208_s28 + $0x10] sm:$0xff] (%p3716_p4) }
 0x7cd   : > { %s2895_s23 = scalar_lea.vmem (%p3716_p4), %s4959_s7, %s3085_s21  ;;  %v2916_v49 = vld [vmem:[%s4208_s28 + $0x20] sm:$0xff] (%p3716_p4)  ;;  %v2918_v60 = vld [vmem:[%s4208_s28 + $0x28] sm:$0xff] (%p3716_p4)  ;;  %v2920_v40 = vld [vmem:[%s4208_s28 + $0x30] sm:$0xff] (%p3716_p4) }
 0x7ce   : > { %2909 = vst [vmem:[%s2895_s23] sm:$0xff] (%p3716_p4), %v2908_v24  ;;  %2911 = vst [vmem:[%s2895_s23 + $0x8] sm:$0xff] (%p3716_p4), %v2910_v8 }
 0x7cf   : > { %2913 = vst [vmem:[%s2895_s23 + $0x10] sm:$0xff] (%p3716_p4), %v2912_v20  ;;  %2917 = vst [vmem:[%s2895_s23 + $0x40] sm:$0xff] (%p3716_p4), %v2916_v49 }
 0x7d0   : > { %2919 = vst [vmem:[%s2895_s23 + $0x48] sm:$0xff] (%p3716_p4), %v2918_v60  ;;  %2921 = vst [vmem:[%s2895_s23 + $0x50] sm:$0xff] (%p3716_p4), %v2920_v40 }
 0x7d2   : > { %v2914_v62 = vld [vmem:[%s4208_s28 + $0x18] sm:$0xff] }
 0x7d3   : > { %2915 = vst [vmem:[%s2895_s23 + $0x18] sm:$0xff] %v2914_v62  ;;  %v2922_v43 = vld [vmem:[%s4208_s28 + $0x38] sm:$0xff] }
 0x7d4   : > { %2923 = vst [vmem:[%s2895_s23 + $0x58] sm:$0xff] %v2922_v43 }
 0x7d5 PF: > { %p17_p4 = scmp.ge.s32.totalorder %s3706_s29, 4   ;;  %s5576_s26 = smov %s3586_s27 }
 0x7d6   : > { %s5577_s27 = smov %s3714_s9  ;;  %s5578_s28 = smov %s3706_s29 }
 0x7d7   :  { %19 = sbr.rel (!%p17_p4) target bundleno = 5 (0x5), region = 184 }
 0x7dc   :  { %2939 = vsyncpa [#allocation4], 1 }
 0x7dd   :  { %2941 = vsyncpa [#allocation4 + $0x1], 1 }

</bundles_post_ra>
